<compile_context>
chip_gen: v6e
topology: v6e:2x2x1
jax: 0.10.0
libtpu: 0.0.40
codegen_flags: <defaults>
</compile_context>

<pallas_src>
import functools

import jax
import jax.numpy as jnp
from jax import lax
from jax.experimental import pallas as pl
from jax.experimental.pallas import tpu as pltpu

LANES = 128
ACC_SUBLANES = 8
MAX_BLOCK_ROWS = 4096        # (4096,128) f32 = 2 MiB per input per buffer
FAST_PATH_ELEMS = 64 * 1024  # below this, kernel launch overhead dominates


def _cdiv(a, b):
    return -(-a // b)


def _round_up(a, m):
    return _cdiv(a, m) * m


def _tensorcores_per_chip():
    # 2 TensorCores per chip on v7x; 1 on v5e / v6e.
    try:
        kind = str(jax.devices()[0].device_kind)
    except Exception:
        return 1
    return 2 if "7" in kind else 1


def _smooth_l1_elem(d):
    # SmoothL1, beta=1:  0.5*d^2 if |d|<1 else |d|-0.5.
    # min-form is algebraically identical to the where() form and one VPU op cheaper.
    ad = jnp.abs(d)
    c = jnp.minimum(ad, 1.0)
    return c * (ad - 0.5 * c)


def _partial_sum_kernel(x_ref, y_ref, o_ref, acc_ref, *, rows, block_rows,
                        steps_per_part, needs_mask):
    part = pl.program_id(0)
    step = pl.program_id(1)

    @pl.when(step == 0)
    def _():
        acc_ref[...] = jnp.zeros_like(acc_ref)

    d = x_ref[...].astype(jnp.float32) - y_ref[...].astype(jnp.float32)
    elem = _smooth_l1_elem(d)

    if needs_mask:
        # Ragged last block: OOB rows of the DMA'd block are unspecified data,
        # mask them out before they reach the accumulator.
        row0 = (part * steps_per_part + step) * block_rows
        rid = lax.broadcasted_iota(jnp.int32, elem.shape, 0) + row0
        elem = jnp.where(rid < rows, elem, 0.0)

    # Fold (block_rows,128) onto the resident (8,128) accumulator: pure VPU adds,
    # no cross-lane (XLU) work until the final wrapper-side jnp.sum.
    acc_ref[...] += jnp.sum(elem.reshape(-1, ACC_SUBLANES, LANES), axis=0)

    @pl.when(step == steps_per_part - 1)
    def _():
        o_ref[...] = acc_ref[...]        # single lane-dense store per part


def _smooth_l1_sum_pallas(x, y):
    n = x.size
    xf = x.reshape(-1)
    yf = y.reshape(-1)

    rem = n % LANES
    if rem:
        # TODO(synk): lane-ragged totals (n % 128 != 0) take one small pad-copy
        # to the next lane multiple; the model's NCHW maps are lane-aligned so
        # this path is normally dead.
        xf = jnp.pad(xf, (0, LANES - rem))
        yf = jnp.pad(yf, (0, LANES - rem))
    rows = xf.size // LANES

    # Sublane granularity of the native packed tile: 8 (f32) / 16 (bf16) / 32 (8-bit).
    sub = max(8, 32 // min(x.dtype.itemsize, y.dtype.itemsize))
    if rows < 4 * sub:
        d = x.astype(jnp.float32) - y.astype(jnp.float32)
        return jnp.sum(_smooth_l1_elem(d))

    parts = 2 if _tensorcores_per_chip() == 2 else 1

    # Largest legal block that never exceeds the array, then just enough blocks
    # to cover `rows`, rounded up to a multiple of `parts` so both TensorCores
    # run the same number of steps and no grid cell maps outside the array.
    max_rows = min(MAX_BLOCK_ROWS, (rows // sub) * sub)
    nblk = _round_up(_cdiv(rows, max_rows), parts)
    block_rows = min(max_rows, _round_up(_cdiv(rows, nblk), sub))
    # Paranoia: never let the last block start past the end of the array.
    while nblk > parts and (nblk - 1) * block_rows >= rows:
        nblk -= parts
        block_rows = min(max_rows, _round_up(_cdiv(rows, nblk), sub))

    spp = nblk // parts                      # steps per part (reduction axis)
    needs_mask = nblk * block_rows > rows    # ragged last block -> in-kernel mask

    x2 = xf.reshape(rows, LANES)
    y2 = yf.reshape(rows, LANES)

    kernel = functools.partial(
        _partial_sum_kernel, rows=rows, block_rows=block_rows,
        steps_per_part=spp, needs_mask=needs_mask)

    in_map = lambda pi, i: (pi * spp + i, 0)

    partials = pl.pallas_call(
        kernel,
        out_shape=jax.ShapeDtypeStruct((parts * ACC_SUBLANES, LANES), jnp.float32),
        grid_spec=pltpu.PrefetchScalarGridSpec(
            num_scalar_prefetch=0,
            grid=(parts, spp),
            in_specs=[pl.BlockSpec((block_rows, LANES), in_map),
                      pl.BlockSpec((block_rows, LANES), in_map)],
            out_specs=pl.BlockSpec((ACC_SUBLANES, LANES), lambda pi, i: (pi, 0)),
            scratch_shapes=[pltpu.VMEM((ACC_SUBLANES, LANES), jnp.float32)],
        ),
        compiler_params=pltpu.CompilerParams(
            dimension_semantics=("parallel", "arbitrary"),
            vmem_limit_bytes=32 * 1024 * 1024,
        ),
    )(x2, y2)

    # Tiny final reduce (parts*8*128 floats) in the wrapper.
    return jnp.sum(partials)


def smooth_l1_sum(x, y):
    """sum(SmoothL1(x - y, beta=1.0)) over all elements, computed in float32."""
    assert x.shape == y.shape
    if x.size == 0:
        return jnp.float32(0.0)
    if x.size < FAST_PATH_ELEMS:
        # Tiny-input fast path: kernel launch/pipeline overhead would dominate.
        d = x.astype(jnp.float32) - y.astype(jnp.float32)
        return jnp.sum(_smooth_l1_elem(d))
    return _smooth_l1_sum_pallas(x, y)


def smooth_l1_loss(preds, targets):
    """F.smooth_l1_loss(preds, targets, reduction='sum') / batch_size (previous semantics)."""
    return (smooth_l1_sum(preds, targets) / jnp.float32(preds.shape[0])).astype(jnp.float32)


def custom_loss_forward(preds, targets, alpha=1.0, beta=1.0):
    """CustomLoss.forward for the common layout: preds/targets [B, 7, H, W]
    (1 class channel + 6 regression channels), use_iou=False.
    Returns (loss, cls_loss, loc_loss); the torch module's `corner` term is 0 here.
    """
    assert preds.shape == targets.shape and preds.shape[1] == 7
    cls_p = preds[:, :1].astype(jnp.float32)
    cls_t = targets[:, :1].astype(jnp.float32)
    loc_p = preds[:, 1:7]
    loc_t = targets[:, 1:7]

    # binary_cross_entropy(reduction='mean'), log clamped at -100 like torch.
    log_p = jnp.maximum(jnp.log(cls_p), -100.0)
    log_np = jnp.maximum(jnp.log(1.0 - cls_p), -100.0)
    cls_loss = -jnp.mean(cls_t * log_p + (1.0 - cls_t) * log_np) * alpha

    pos_pixels = jnp.sum(cls_t)
    # smooth_l1_loss(cls_t * loc_p, loc_t, reduction='sum') / pos_pixels * beta.
    # TODO(synk): the cls_t broadcast-multiply stays in XLA; only the large
    # sum-reduction runs in the Pallas kernel.
    sl1 = smooth_l1_sum(cls_t * loc_p, loc_t)
    safe_pos = jnp.where(pos_pixels > 0, pos_pixels, 1.0)
    loc_loss = jnp.where(pos_pixels > 0, sl1 / safe_pos * beta, 0.0)
    return cls_loss + loc_loss, cls_loss, loc_loss


# ------------------------- pure-JAX references -------------------------
def _ref_smooth_l1_sum(x, y):
    d = x.astype(jnp.float32) - y.astype(jnp.float32)
    ad = jnp.abs(d)
    return jnp.sum(jnp.where(ad < 1.0, 0.5 * d * d, ad - 0.5))


def _ref_smooth_l1_loss(p, t):
    return _ref_smooth_l1_sum(p, t) / p.shape[0]


def _ref_custom_loss(preds, targets, alpha=1.0, beta=1.0):
    cls_p = preds[:, :1].astype(jnp.float32)
    cls_t = targets[:, :1].astype(jnp.float32)
    loc_p = preds[:, 1:7]
    loc_t = targets[:, 1:7]
    log_p = jnp.maximum(jnp.log(cls_p), -100.0)
    log_np = jnp.maximum(jnp.log(1.0 - cls_p), -100.0)
    cls_loss = -jnp.mean(cls_t * log_p + (1.0 - cls_t) * log_np) * alpha
    pos = jnp.sum(cls_t)
    sl1 = _ref_smooth_l1_sum(cls_t * loc_p, loc_t)
    safe = jnp.where(pos > 0, pos, 1.0)
    loc_loss = jnp.where(pos > 0, sl1 / safe * beta, 0.0)
    return cls_loss + loc_loss, cls_loss, loc_loss


if __name__ == "__main__":
    keys = jax.random.split(jax.random.PRNGKey(0), 12)

    # 1) tiny shape (fast path): previous-semantics smooth_l1_loss
    p1 = jax.random.normal(keys[0], (2, 7, 16, 16), jnp.float32)
    t1 = jax.random.normal(keys[1], (2, 7, 16, 16), jnp.float32)
    l1 = smooth_l1_loss(p1, t1)
    jax.block_until_ready(l1)
    assert jnp.allclose(l1, _ref_smooth_l1_loss(p1, t1), rtol=1e-5, atol=1e-5)

    # 2) kernel path, evenly tiled (no in-kernel mask)
    p2 = jax.random.normal(keys[2], (2, 7, 128, 176), jnp.float32)
    t2 = jax.random.normal(keys[3], (2, 7, 128, 176), jnp.float32)
    l2 = smooth_l1_loss(p2, t2)
    jax.block_until_ready(l2)
    assert jnp.allclose(l2, _ref_smooth_l1_loss(p2, t2), rtol=1e-4, atol=1e-4)

    # 3) kernel path with a ragged (in-kernel masked) last block
    p3 = jax.random.normal(keys[4], (3, 7, 100, 128), jnp.float32)
    t3 = jax.random.normal(keys[5], (3, 7, 100, 128), jnp.float32)
    l3 = smooth_l1_loss(p3, t3)
    jax.block_until_ready(l3)
    assert jnp.allclose(l3, _ref_smooth_l1_loss(p3, t3), rtol=1e-4, atol=1e-4)

    # 4) bf16 inputs streamed directly (half the HBM bytes)
    p4, t4 = p2.astype(jnp.bfloat16), t2.astype(jnp.bfloat16)
    l4 = smooth_l1_loss(p4, t4)
    jax.block_until_ready(l4)
    assert jnp.allclose(l4, _ref_smooth_l1_loss(p4, t4), rtol=1e-4, atol=1e-4)

    # 5) full CustomLoss.forward (7 channels = 1 cls + 6 loc, no IOU)
    B, H, W = 2, 128, 176
    cls_p = jax.nn.sigmoid(jax.random.normal(keys[6], (B, 1, H, W), jnp.float32))
    loc_p = jax.random.normal(keys[7], (B, 6, H, W), jnp.float32)
    cls_t = (jax.random.uniform(keys[8], (B, 1, H, W)) < 0.15).astype(jnp.float32)
    loc_t = jax.random.normal(keys[9], (B, 6, H, W), jnp.float32)
    preds5 = jnp.concatenate([cls_p, loc_p], axis=1)
    targs5 = jnp.concatenate([cls_t, loc_t], axis=1)
    loss5, cls5, loc5 = custom_loss_forward(preds5, targs5, alpha=1.0, beta=1.0)
    jax.block_until_ready(loss5)
    rloss5, rcls5, rloc5 = _ref_custom_loss(preds5, targs5, 1.0, 1.0)
    assert jnp.allclose(loss5, rloss5, rtol=1e-4, atol=1e-4), (loss5, rloss5)
    assert jnp.allclose(cls5, rcls5, rtol=1e-5, atol=1e-6)
    assert jnp.allclose(loc5, rloc5, rtol=1e-4, atol=1e-4)

    print("KERNEL_OK")
</pallas_src>

<mosaic_0001>
module attributes {stable_mosaic.version = 11 : i64} {
  func.func @_partial_sum_kernel(%arg0: i32, %arg1: i32, %arg2: memref<2464x128xf32, #tpu.memory_space<vmem>>, %arg3: memref<2464x128xf32, #tpu.memory_space<vmem>>, %arg4: memref<8x128xf32, #tpu.memory_space<vmem>>, %arg5: memref<8x128xf32, #tpu.memory_space<vmem>>) attributes {dimension_semantics = [#tpu.dimension_semantics<parallel>, #tpu.dimension_semantics<arbitrary>], iteration_bounds = array<i64: 1, 1>, scalar_prefetch = 0 : i64, scratch_operands = 1 : i64, tpu.core_type = #tpu.core_type<tc>, window_params = [{transform_indices = @transform_0, window_bounds = array<i64: 2464, 128>}, {transform_indices = @transform_1, window_bounds = array<i64: 2464, 128>}, {transform_indices = @transform_2, window_bounds = array<i64: 8, 128>}]} {
    %c0_i32 = arith.constant 0 : i32
    %0 = arith.cmpi eq, %arg1, %c0_i32 : i32
    %1 = arith.extui %0 : i1 to i32
    %c0_i32_0 = arith.constant 0 : i32
    %2 = arith.cmpi ne, %1, %c0_i32_0 : i32
    scf.if %2 {
      %cst_12 = arith.constant 0.000000e+00 : f32
      %21 = vector.broadcast %cst_12 : f32 to vector<8x128xf32>
      %c0_13 = arith.constant 0 : index
      %c0_14 = arith.constant 0 : index
      %22 = vector.load %arg5[%c0_13, %c0_14] : memref<8x128xf32, #tpu.memory_space<vmem>>, vector<8x128xf32>
      tpu.vector_store %arg5[%c0_13, %c0_14], %21 {strides = array<i32>} : memref<8x128xf32, #tpu.memory_space<vmem>>, vector<8x128xf32>,
    } else {
    }
    %c0 = arith.constant 0 : index
    %c0_1 = arith.constant 0 : index
    %3 = vector.load %arg2[%c0, %c0_1] : memref<2464x128xf32, #tpu.memory_space<vmem>>, vector<2464x128xf32>
    %c0_2 = arith.constant 0 : index
    %c0_3 = arith.constant 0 : index
    %4 = vector.load %arg3[%c0_2, %c0_3] : memref<2464x128xf32, #tpu.memory_space<vmem>>, vector<2464x128xf32>
    %5 = arith.subf %3, %4 : vector<2464x128xf32>
    %6 = math.absf %5 : vector<2464x128xf32>
    %cst = arith.constant 1.000000e+00 : f32
    %7 = vector.broadcast %cst : f32 to vector<2464x128xf32>
    %8 = arith.minimumf %6, %7 : vector<2464x128xf32>
    %cst_4 = arith.constant 5.000000e-01 : f32
    %9 = vector.broadcast %cst_4 : f32 to vector<2464x128xf32>
    %10 = arith.mulf %9, %8 : vector<2464x128xf32>
    %11 = arith.subf %6, %10 : vector<2464x128xf32>
    %12 = arith.mulf %8, %11 : vector<2464x128xf32>
    %c0_5 = arith.constant 0 : index
    %c0_6 = arith.constant 0 : index
    %13 = vector.load %arg5[%c0_5, %c0_6] : memref<8x128xf32, #tpu.memory_space<vmem>>, vector<8x128xf32>
    %14 = vector.shape_cast %12 : vector<2464x128xf32> to vector<308x8x128xf32>
    %cst_7 = arith.constant dense<0.000000e+00> : vector<8x128xf32>
    %15 = vector.multi_reduction <add>, %14, %cst_7 [0] : vector<308x8x128xf32> to vector<8x128xf32>
    %16 = arith.addf %13, %15 : vector<8x128xf32>
    %c0_8 = arith.constant 0 : index
    %c0_9 = arith.constant 0 : index
    %17 = vector.load %arg5[%c0_8, %c0_9] : memref<8x128xf32, #tpu.memory_space<vmem>>, vector<8x128xf32>
    tpu.vector_store %arg5[%c0_8, %c0_9], %16 {strides = array<i32>} : memref<8x128xf32, #tpu.memory_space<vmem>>, vector<8x128xf32>,
    %c0_i32_10 = arith.constant 0 : i32
    %18 = arith.cmpi eq, %arg1, %c0_i32_10 : i32
    %19 = arith.extui %18 : i1 to i32
    %c0_i32_11 = arith.constant 0 : i32
    %20 = arith.cmpi ne, %19, %c0_i32_11 : i32
    scf.if %20 {
      %c0_12 = arith.constant 0 : index
      %c0_13 = arith.constant 0 : index
      %21 = vector.load %arg5[%c0_12, %c0_13] : memref<8x128xf32, #tpu.memory_space<vmem>>, vector<8x128xf32>
      %c0_14 = arith.constant 0 : index
      %c0_15 = arith.constant 0 : index
      %22 = vector.load %arg4[%c0_14, %c0_15] : memref<8x128xf32, #tpu.memory_space<vmem>>, vector<8x128xf32>
      tpu.vector_store %arg4[%c0_14, %c0_15], %21 {strides = array<i32>} : memref<8x128xf32, #tpu.memory_space<vmem>>, vector<8x128xf32>,
    } else {
    }
    return
  }
  func.func @transform_0(%arg0: i32, %arg1: i32) -> (i32, i32) {
    %c1_i32 = arith.constant 1 : i32
    %0 = arith.muli %arg0, %c1_i32 : i32
    %1 = arith.addi %0, %arg1 : i32
    %c0_i32 = arith.constant 0 : i32
    %c0_i32_0 = arith.constant 0 : i32
    return %1, %c0_i32 : i32, i32
  }
  func.func @transform_1(%arg0: i32, %arg1: i32) -> (i32, i32) {
    %c1_i32 = arith.constant 1 : i32
    %0 = arith.muli %arg0, %c1_i32 : i32
    %1 = arith.addi %0, %arg1 : i32
    %c0_i32 = arith.constant 0 : i32
    %c0_i32_0 = arith.constant 0 : i32
    return %1, %c0_i32 : i32, i32
  }
  func.func @transform_2(%arg0: i32, %arg1: i32) -> (i32, i32) {
    %c0_i32 = arith.constant 0 : i32
    %c0_i32_0 = arith.constant 0 : i32
    return %arg0, %c0_i32 : i32, i32
  }
}

</mosaic_0001>

<bundles_post_ra>
// kernel: tpu_custom_call.1
= control target key start
LH: loop header
LB: loop body
LE: loop exit
PB: predicated region body
PF: predicated region fallthrough
CT: control target
= control target key end

     0   :  { %7 = vsyncpa [#allocation4], 0  ;;  %s4140_s0 = inlined_call_operand.hbm [shape: f32[2464,128], index: 0, kind: input, shape index: {}]   ;;  %s4141_s1 = inlined_call_operand.hbm [shape: f32[2464,128], index: 1, kind: input, shape index: {}]   ;;  %s4142_s2 = inlined_call_operand.hbm [shape: f32[8,128], index: 2, kind: output, shape index: {}]  }
   0x1   :  { %8 = vsyncpa [#allocation7], 0 }
   0x2   :  { %9 = vsyncpa [#allocation5], 0  ;;  %s2923_s9 = smov [#allocation3]  }
   0x3   :  { %s19_s10 = sshll.u32 %s2923_s9, 4  ;;  %s20_s10 = int_to_ptr.vmem [resolvable:$true] %s19_s10 }
   0x4   :  { %s2865_s11 = scalar_lea.vmem %s20_s10, 39424  ;;  %p2870_p1 = scmp.lt.s32.totalorder %s20_s10, %s20_s10 }
   0x5   :  { %p2866_p0 = scmp.ne.s32.totalorder %s20_s10, %s2865_s11  ;;  %p2871_p2 = scmp.lt.s32.totalorder %s2865_s11, %s2865_s11 }
   0x7   :  { %p2872_p3 = por %p2871_p2, %p2870_p1 }
   0x9   :  { %p2873_p4 = pnand %p2872_p3, %p2866_p0 }
   0xb   :  { %2876 = shalt.err (!%p2873_p4)
}
   0xc   :  { %s2924_s12 = smov 128   ;;  %s2925_s13 = smov 8  }
   0xd   :  { %25 = dma.hbm_to_vmem [thread:$0]  %s4140_s0, 39424, %s20_s10, [#allocation4], %s2924_s12, %s2924_s12, %s2925_s13  }
   0xe   :  { %s2926_s16 = smov [#allocation6]  }
   0xf   :  { %s35_s17 = sshll.u32 %s2926_s16, 4  ;;  %s36_s17 = int_to_ptr.vmem [resolvable:$true] %s35_s17 }
  0x10   :  { %s2885_s18 = scalar_lea.vmem %s36_s17, 39424  ;;  %p2890_p6 = scmp.lt.s32.totalorder %s36_s17, %s36_s17 }
  0x11   :  { %p2886_p5 = scmp.ne.s32.totalorder %s36_s17, %s2885_s18  ;;  %p2891_p7 = scmp.lt.s32.totalorder %s2885_s18, %s2885_s18 }
  0x13   :  { %p2892_p8 = por %p2891_p7, %p2890_p6 }
  0x15   :  { %p2893_p9 = pnand %p2892_p8, %p2886_p5 }
  0x17   :  { %2896 = shalt.err (!%p2893_p9)
}
  0x18   :  { %41 = dma.hbm_to_vmem [thread:$0]  %s4141_s1, 39424, %s36_s17, [#allocation7], %s2924_s12, %s2924_s12, %s2925_s13  }
  0x19   :  { %2917 = dma.done.wait [#allocation4], 39424  }
  0x1a   :  { %2918 = vsyncadd [#allocation4], 4294927872 }
  0x1b   :  { %2919 = dma.done.wait [#allocation7], 39424  }
  0x1c   :  { %2920 = vsyncadd [#allocation7], 4294927872  ;;  %v57_v0 = vld [vmem:[#allocation3] sm:$0xff]  ;;  %v58_v1 = vld [vmem:[#allocation3 + $0x8] sm:$0xff]  ;;  %s2927_s0 = smov [#allocation8]  }
  0x1d   :  { %v365_v2 = vld [vmem:[#allocation6] sm:$0xff]  ;;  %v366_v3 = vld [vmem:[#allocation6 + $0x8] sm:$0xff]  ;;  %v59_v4 = vld [vmem:[#allocation3 + $0x10] sm:$0xff]  ;;  %s2842_s1 = sshll.u32 %s2927_s0, 4  ;;  %s2843_s1 = int_to_ptr.vmem [resolvable:$true] %s2842_s1 }
  0x1e   :  { %v367_v5 = vld [vmem:[#allocation6 + $0x10] sm:$0xff]  ;;  %v673_v6 = vsub.f32 %v57_v0, %v365_v2  ;;  %v674_v7 = vsub.f32 %v58_v1, %v366_v3  ;;  %v60_v8 = vld [vmem:[#allocation3 + $0x18] sm:$0xff]  ;;  %v61_v11 = vld [vmem:[#allocation3 + $0x20] sm:$0xff]  ;;  %s2897_s21 = scalar_lea.vmem %s2843_s1, 128  ;;  %p2902_p11 = scmp.lt.s32.totalorder %s2843_s1, %s2843_s1 }
  0x1f   :  { %v368_v9 = vld [vmem:[#allocation6 + $0x18] sm:$0xff]  ;;  %v675_v10 = vsub.f32 %v59_v4, %v367_v5  ;;  %v369_v12 = vld [vmem:[#allocation6 + $0x20] sm:$0xff]  ;;  %v62_v16 = vld [vmem:[#allocation3 + $0x28] sm:$0xff]  ;;  %p2898_p10 = scmp.ne.s32.totalorder %s2843_s1, %s2897_s21  ;;  %p2903_p12 = scmp.lt.s32.totalorder %s2897_s21, %s2897_s21 }
  0x20   :  { %v676_v13 = vsub.f32 %v60_v8, %v368_v9  ;;  %v981_v14 = vand.u32 2147483647, %v673_v6  ;;  %v982_v15 = vand.u32 2147483647, %v674_v7  ;;  %v370_v17 = vld [vmem:[#allocation6 + $0x28] sm:$0xff]  ;;  %v677_v18 = vsub.f32 %v61_v11, %v369_v12  ;;  %v63_v20 = vld [vmem:[#allocation3 + $0x30] sm:$0xff] }
  0x21   :  { %v983_v19 = vand.u32 2147483647, %v675_v10  ;;  %v371_v21 = vld [vmem:[#allocation6 + $0x30] sm:$0xff]  ;;  %v64_v22 = vld [vmem:[#allocation3 + $0x38] sm:$0xff]  ;;  %v678_v24 = vsub.f32 %v62_v16, %v370_v17  ;;  %v65_v31 = vld [vmem:[#allocation3 + $0x40] sm:$0xff]  ;;  %p2904_p13 = por %p2903_p12, %p2902_p11 }
  0x22   :  { %v372_v23 = vld [vmem:[#allocation6 + $0x38] sm:$0xff]  ;;  %v984_v25 = vand.u32 2147483647, %v676_v13  ;;  %v1289_v26 = vmin.f32 %v981_v14, 1.0  ;;  %v1290_v27 = vmin.f32 %v982_v15, 1.0  ;;  %v679_v28 = vsub.f32 %v63_v20, %v371_v21  ;;  %v66_v32 = vld [vmem:[#allocation3 + $0x48] sm:$0xff] }
  0x23   :  { %v2949_v29 = vand.u32 2147483647, %v677_v18  ;;  %v1291_v30 = vmin.f32 %v983_v19, 1.0  ;;  %v373_v33 = vld [vmem:[#allocation6 + $0x40] sm:$0xff]  ;;  %v680_v34 = vsub.f32 %v64_v22, %v372_v23  ;;  %v374_v35 = vld [vmem:[#allocation6 + $0x48] sm:$0xff]  ;;  %v67_v40 = vld [vmem:[#allocation3 + $0x50] sm:$0xff]  ;;  %p2905_p0 = pnand %p2904_p13, %p2898_p10 }
  0x24   :  { %v2951_v36 = vand.u32 2147483647, %v678_v24  ;;  %v1292_v37 = vmin.f32 %v984_v25, 1.0  ;;  %v1597_v38 = vmul.f32 0.5, %v1289_v26  ;;  %v1598_v39 = vmul.f32 0.5, %v1290_v27  ;;  %v375_v41 = vld [vmem:[#allocation6 + $0x50] sm:$0xff] }
  0x25   :  { %v681_v42 = vsub.f32 %v65_v31, %v373_v33  ;;  %v2953_v43 = vand.u32 2147483647, %v679_v28  ;;  %v1293_v44 = vmin.f32 %v2949_v29, 1.0  ;;  %v1599_v45 = vmul.f32 0.5, %v1291_v30  ;;  %v68_v48 = vld [vmem:[#allocation3 + $0x58] sm:$0xff]  ;;  %v69_v55 = vld [vmem:[#allocation3 + $0x60] sm:$0xff] }
  0x26   :  { %v682_v46 = vsub.f32 %v66_v32, %v374_v35  ;;  %v2956_v47 = vand.u32 2147483647, %v680_v34  ;;  %v376_v49 = vld [vmem:[#allocation6 + $0x58] sm:$0xff]  ;;  %v1294_v50 = vmin.f32 %v2951_v36, 1.0  ;;  %v1600_v51 = vmul.f32 0.5, %v1292_v37  ;;  %v377_v56 = vld [vmem:[#allocation6 + $0x60] sm:$0xff] }
  0x27   :  { %v1905_v52 = vsub.f32 %v981_v14, %v1597_v38  ;;  %v1906_v53 = vsub.f32 %v982_v15, %v1598_v39  ;;  %v683_v54 = vsub.f32 %v67_v40, %v375_v41  ;;  %v2959_v57 = vand.u32 2147483647, %v681_v42  ;;  %v70_v0 = vld [vmem:[#allocation3 + $0x68] sm:$0xff]  ;;  %v71_v8 = vld [vmem:[#allocation3 + $0x70] sm:$0xff]  ;;  %v72_v17 = vld [vmem:[#allocation3 + $0x78] sm:$0xff] }
  0x28   :  { %v1295_v58 = vmin.f32 %v2953_v43, 1.0  ;;  %v1601_v59 = vmul.f32 0.5, %v1293_v44  ;;  %v1907_v60 = vsub.f32 %v983_v19, %v1599_v45  ;;  %v684_v61 = vsub.f32 %v68_v48, %v376_v49  ;;  %v378_v1 = vld [vmem:[#allocation6 + $0x68] sm:$0xff]  ;;  %v379_v9 = vld [vmem:[#allocation6 + $0x70] sm:$0xff]  ;;  %v380_v18 = vld [vmem:[#allocation6 + $0x78] sm:$0xff] }
  0x29   :  { %v2962_v62 = vand.u32 2147483647, %v682_v46  ;;  %v1296_v63 = vmin.f32 %v2956_v47, 1.0  ;;  %v1602_v2 = vmul.f32 0.5, %v1294_v50  ;;  %v1908_v3 = vsub.f32 %v984_v25, %v1600_v51  ;;  %v74_v35 = vld [vmem:[#allocation3 + $0x88] sm:$0xff] }
  0x2a   :  { %v2213_v4 = vmul.f32 %v1905_v52, %v1289_v26  ;;  %v2214_v5 = vmul.f32 %v1906_v53, %v1290_v27  ;;  %v685_v6 = vsub.f32 %v69_v55, %v377_v56  ;;  %v2965_v7 = vand.u32 2147483647, %v683_v54  ;;  %v73_v26 = vld [vmem:[#allocation3 + $0x80] sm:$0xff] }
  0x2b   :  { %v1297_v10 = vmin.f32 %v2959_v57, 1.0  ;;  %v1603_v11 = vmul.f32 0.5, %v1295_v58  ;;  %v1909_v12 = vsub.f32 %v2949_v29, %v1601_v59  ;;  %v2215_v13 = vmul.f32 %v1907_v60, %v1291_v30  ;;  %v381_v27 = vld [vmem:[#allocation6 + $0x80] sm:$0xff] }
  0x2c   :  { %v686_v14 = vsub.f32 %v70_v0, %v378_v1  ;;  %v2969_v15 = vand.u32 2147483647, %v684_v61  ;;  %v1298_v16 = vmin.f32 %v2962_v62, 1.0  ;;  %v1604_v19 = vmul.f32 0.5, %v1296_v63 }
  0x2d   :  { %v1910_v20 = vsub.f32 %v2951_v36, %v1602_v2  ;;  %v2216_v21 = vmul.f32 %v1908_v3, %v1292_v37  ;;  %v2522_v22 = vadd.f32 %v2214_v5, %v2213_v4  ;;  %v687_v23 = vsub.f32 %v71_v8, %v379_v9  ;;  %v382_v36 = vld [vmem:[#allocation6 + $0x88] sm:$0xff] }
  0x2e   :  { %v2973_v24 = vand.u32 2147483647, %v685_v6  ;;  %v1299_v25 = vmin.f32 %v2965_v7, 1.0  ;;  %v1605_v28 = vmul.f32 0.5, %v1297_v10  ;;  %v1911_v29 = vsub.f32 %v2953_v43, %v1603_v11  ;;  %v75_v43 = vld [vmem:[#allocation3 + $0x90] sm:$0xff] }
  0x2f   :  { %v2217_v30 = vmul.f32 %v1909_v12, %v1293_v44  ;;  %v2523_v31 = vadd.f32 %v2522_v22, %v2215_v13  ;;  %v688_v32 = vsub.f32 %v72_v17, %v380_v18  ;;  %v2977_v33 = vand.u32 2147483647, %v686_v14  ;;  %v383_v44 = vld [vmem:[#allocation6 + $0x90] sm:$0xff] }
  0x30   :  { %v1300_v34 = vmin.f32 %v2969_v15, 1.0  ;;  %v1606_v37 = vmul.f32 0.5, %v1298_v16  ;;  %v1912_v38 = vsub.f32 %v2956_v47, %v1604_v19  ;;  %v2218_v39 = vmul.f32 %v1910_v20, %v1294_v50  ;;  %v76_v47 = vld [vmem:[#allocation3 + $0x98] sm:$0xff] }
  0x31   :  { %v2524_v40 = vadd.f32 %v2523_v31, %v2216_v21  ;;  %v689_v41 = vsub.f32 %v73_v26, %v381_v27  ;;  %v2981_v42 = vand.u32 2147483647, %v687_v23  ;;  %v1301_v45 = vmin.f32 %v2973_v24, 1.0  ;;  %v384_v50 = vld [vmem:[#allocation6 + $0x98] sm:$0xff] }
  0x32   :  { %v1607_v46 = vmul.f32 0.5, %v1299_v25  ;;  %v1913_v48 = vsub.f32 %v2959_v57, %v1605_v28  ;;  %v2219_v49 = vmul.f32 %v1911_v29, %v1295_v58  ;;  %v690_v52 = vsub.f32 %v74_v35, %v382_v36  ;;  %v77_v57 = vld [vmem:[#allocation3 + $0xa0] sm:$0xff] }
  0x33   :  { %v2525_v51 = vadd.f32 %v2524_v40, %v2217_v30  ;;  %v2985_v53 = vand.u32 2147483647, %v688_v32  ;;  %v1302_v54 = vmin.f32 %v2977_v33, 1.0  ;;  %v1608_v55 = vmul.f32 0.5, %v1300_v34  ;;  %v385_v58 = vld [vmem:[#allocation6 + $0xa0] sm:$0xff] }
  0x34   :  { %v1914_v56 = vsub.f32 %v2962_v62, %v1606_v37  ;;  %v2220_v59 = vmul.f32 %v1912_v38, %v1296_v63  ;;  %v691_v61 = vsub.f32 %v75_v43, %v383_v44  ;;  %v2989_v0 = vand.u32 2147483647, %v689_v41  ;;  %v78_v62 = vld [vmem:[#allocation3 + $0xa8] sm:$0xff] }
  0x35   :  { %v2526_v60 = vadd.f32 %v2525_v51, %v2218_v39  ;;  %v1303_v1 = vmin.f32 %v2981_v42, 1.0  ;;  %v1609_v2 = vmul.f32 0.5, %v1301_v45  ;;  %v1915_v3 = vsub.f32 %v2965_v7, %v1607_v46  ;;  %v386_v63 = vld [vmem:[#allocation6 + $0xa8] sm:$0xff]  ;;  %v79_v7 = vld [vmem:[#allocation3 + $0xb0] sm:$0xff] }
  0x36   :  { %v2221_v4 = vmul.f32 %v1913_v48, %v1297_v10  ;;  %v692_v6 = vsub.f32 %v76_v47, %v384_v50  ;;  %v2993_v8 = vand.u32 2147483647, %v690_v52  ;;  %v1304_v9 = vmin.f32 %v2985_v53, 1.0  ;;  %v387_v10 = vld [vmem:[#allocation6 + $0xb0] sm:$0xff] }
  0x37   :  { %v2527_v5 = vadd.f32 %v2526_v60, %v2219_v49  ;;  %v1610_v11 = vmul.f32 0.5, %v1302_v54  ;;  %v1916_v12 = vsub.f32 %v2969_v15, %v1608_v55  ;;  %v2222_v13 = vmul.f32 %v1914_v56, %v1298_v16  ;;  %v80_v15 = vld [vmem:[#allocation3 + $0xb8] sm:$0xff] }
  0x38   :  { %v693_v17 = vsub.f32 %v77_v57, %v385_v58  ;;  %v2997_v18 = vand.u32 2147483647, %v691_v61  ;;  %v1305_v19 = vmin.f32 %v2989_v0, 1.0  ;;  %v1611_v20 = vmul.f32 0.5, %v1303_v1  ;;  %v388_v16 = vld [vmem:[#allocation6 + $0xb8] sm:$0xff] }
  0x39   :  { %v2528_v14 = vadd.f32 %v2527_v5, %v2220_v59  ;;  %v1917_v21 = vsub.f32 %v2973_v24, %v1609_v2  ;;  %v2223_v22 = vmul.f32 %v1915_v3, %v1299_v25  ;;  %v694_v26 = vsub.f32 %v78_v62, %v386_v63  ;;  %v81_v24 = vld [vmem:[#allocation3 + $0xc0] sm:$0xff] }
  0x3a   :  { %v3001_v27 = vand.u32 2147483647, %v692_v6  ;;  %v1306_v28 = vmin.f32 %v2993_v8, 1.0  ;;  %v1612_v29 = vmul.f32 0.5, %v1304_v9  ;;  %v1918_v30 = vsub.f32 %v2977_v33, %v1610_v11  ;;  %v389_v25 = vld [vmem:[#allocation6 + $0xc0] sm:$0xff]  ;;  %v82_v33 = vld [vmem:[#allocation3 + $0xc8] sm:$0xff] }
  0x3b   :  { %v2529_v23 = vadd.f32 %v2528_v14, %v2221_v4  ;;  %v2224_v31 = vmul.f32 %v1916_v12, %v1300_v34  ;;  %v695_v35 = vsub.f32 %v79_v7, %v387_v10  ;;  %v3005_v36 = vand.u32 2147483647, %v693_v17  ;;  %v390_v34 = vld [vmem:[#allocation6 + $0xc8] sm:$0xff] }
  0x3c   :  { %v1307_v37 = vmin.f32 %v2997_v18, 1.0  ;;  %v1613_v38 = vmul.f32 0.5, %v1305_v19  ;;  %v1919_v39 = vsub.f32 %v2981_v42, %v1611_v20  ;;  %v2225_v40 = vmul.f32 %v1917_v21, %v1301_v45  ;;  %v83_v42 = vld [vmem:[#allocation3 + $0xd0] sm:$0xff] }
  0x3d   :  { %v2530_v32 = vadd.f32 %v2529_v23, %v2222_v13  ;;  %v696_v43 = vsub.f32 %v80_v15, %v388_v16  ;;  %v3009_v44 = vand.u32 2147483647, %v694_v26  ;;  %v1308_v46 = vmin.f32 %v3001_v27, 1.0  ;;  %v391_v45 = vld [vmem:[#allocation6 + $0xd0] sm:$0xff] }
  0x3e   :  { %v1614_v48 = vmul.f32 0.5, %v1306_v28  ;;  %v1920_v49 = vsub.f32 %v2985_v53, %v1612_v29  ;;  %v2226_v51 = vmul.f32 %v1918_v30, %v1302_v54  ;;  %v697_v47 = vsub.f32 %v81_v24, %v389_v25  ;;  %v84_v53 = vld [vmem:[#allocation3 + $0xd8] sm:$0xff] }
  0x3f   :  { %v2531_v41 = vadd.f32 %v2530_v32, %v2223_v22  ;;  %v3013_v50 = vand.u32 2147483647, %v695_v35  ;;  %v1309_v55 = vmin.f32 %v3005_v36, 1.0  ;;  %v1615_v56 = vmul.f32 0.5, %v1307_v37  ;;  %v392_v54 = vld [vmem:[#allocation6 + $0xd8] sm:$0xff] }
  0x40   :  { %v1921_v59 = vsub.f32 %v2989_v0, %v1613_v38  ;;  %v2227_v60 = vmul.f32 %v1919_v39, %v1303_v1  ;;  %v698_v57 = vsub.f32 %v82_v33, %v390_v34  ;;  %v3017_v58 = vand.u32 2147483647, %v696_v43  ;;  %v85_v0 = vld [vmem:[#allocation3 + $0xe0] sm:$0xff] }
  0x41   :  { %v2532_v52 = vadd.f32 %v2531_v41, %v2224_v31  ;;  %v1310_v2 = vmin.f32 %v3009_v44, 1.0  ;;  %v1616_v3 = vmul.f32 0.5, %v1308_v46  ;;  %v1922_v4 = vsub.f32 %v2993_v8, %v1614_v48  ;;  %v393_v1 = vld [vmem:[#allocation6 + $0xe0] sm:$0xff]  ;;  %v86_v8 = vld [vmem:[#allocation3 + $0xe8] sm:$0xff] }
  0x42   :  { %v2228_v5 = vmul.f32 %v1920_v49, %v1304_v9  ;;  %v699_v62 = vsub.f32 %v83_v42, %v391_v45  ;;  %v3021_v63 = vand.u32 2147483647, %v697_v47  ;;  %v1311_v11 = vmin.f32 %v3013_v50, 1.0  ;;  %v394_v9 = vld [vmem:[#allocation6 + $0xe8] sm:$0xff] }
  0x43   :  { %v2533_v61 = vadd.f32 %v2532_v52, %v2225_v40  ;;  %v1617_v12 = vmul.f32 0.5, %v1309_v55  ;;  %v1923_v13 = vsub.f32 %v2997_v18, %v1615_v56  ;;  %v2229_v14 = vmul.f32 %v1921_v59, %v1305_v19  ;;  %v87_v18 = vld [vmem:[#allocation3 + $0xf0] sm:$0xff] }
  0x44   :  { %v700_v7 = vsub.f32 %v84_v53, %v392_v54  ;;  %v3025_v10 = vand.u32 2147483647, %v698_v57  ;;  %v1312_v20 = vmin.f32 %v3017_v58, 1.0  ;;  %v1618_v21 = vmul.f32 0.5, %v1310_v2  ;;  %v395_v19 = vld [vmem:[#allocation6 + $0xf0] sm:$0xff] }
  0x45   :  { %v2534_v6 = vadd.f32 %v2533_v61, %v2226_v51  ;;  %v1924_v22 = vsub.f32 %v3001_v27, %v1616_v3  ;;  %v2230_v23 = vmul.f32 %v1922_v4, %v1306_v28  ;;  %v701_v15 = vsub.f32 %v85_v0, %v393_v1  ;;  %v88_v27 = vld [vmem:[#allocation3 + $0xf8] sm:$0xff] }
  0x46   :  { %v3029_v16 = vand.u32 2147483647, %v699_v62  ;;  %v1313_v29 = vmin.f32 %v3021_v63, 1.0  ;;  %v1619_v30 = vmul.f32 0.5, %v1311_v11  ;;  %v1925_v31 = vsub.f32 %v3005_v36, %v1617_v12  ;;  %v396_v28 = vld [vmem:[#allocation6 + $0xf8] sm:$0xff]  ;;  %v89_v36 = vld [vmem:[#allocation3 + $0x100] sm:$0xff] }
  0x47   :  { %v2535_v17 = vadd.f32 %v2534_v6, %v2227_v60  ;;  %v2231_v32 = vmul.f32 %v1923_v13, %v1307_v37  ;;  %v702_v24 = vsub.f32 %v86_v8, %v394_v9  ;;  %v3033_v25 = vand.u32 2147483647, %v700_v7  ;;  %v397_v37 = vld [vmem:[#allocation6 + $0x100] sm:$0xff] }
  0x48   :  { %v1314_v38 = vmin.f32 %v3025_v10, 1.0  ;;  %v1620_v39 = vmul.f32 0.5, %v1312_v20  ;;  %v1926_v40 = vsub.f32 %v3009_v44, %v1618_v21  ;;  %v2232_v41 = vmul.f32 %v1924_v22, %v1308_v46  ;;  %v90_v44 = vld [vmem:[#allocation3 + $0x108] sm:$0xff] }
  0x49   :  { %v2536_v26 = vadd.f32 %v2535_v17, %v2228_v5  ;;  %v703_v33 = vsub.f32 %v87_v18, %v395_v19  ;;  %v3037_v34 = vand.u32 2147483647, %v701_v15  ;;  %v1315_v48 = vmin.f32 %v3029_v16, 1.0  ;;  %v398_v46 = vld [vmem:[#allocation6 + $0x108] sm:$0xff] }
  0x4a   :  { %v1621_v49 = vmul.f32 0.5, %v1313_v29  ;;  %v1927_v51 = vsub.f32 %v3013_v50, %v1619_v30  ;;  %v2233_v52 = vmul.f32 %v1925_v31, %v1309_v55  ;;  %v704_v42 = vsub.f32 %v88_v27, %v396_v28  ;;  %v91_v50 = vld [vmem:[#allocation3 + $0x110] sm:$0xff] }
  0x4b   :  { %v2537_v35 = vadd.f32 %v2536_v26, %v2229_v14  ;;  %v3041_v45 = vand.u32 2147483647, %v702_v24  ;;  %v1316_v56 = vmin.f32 %v3033_v25, 1.0  ;;  %v1622_v59 = vmul.f32 0.5, %v1314_v38  ;;  %v399_v55 = vld [vmem:[#allocation6 + $0x110] sm:$0xff] }
  0x4c   :  { %v1928_v60 = vsub.f32 %v3017_v58, %v1620_v39  ;;  %v2234_v61 = vmul.f32 %v1926_v40, %v1310_v2  ;;  %v705_v53 = vsub.f32 %v89_v36, %v397_v37  ;;  %v3045_v54 = vand.u32 2147483647, %v703_v33  ;;  %v92_v58 = vld [vmem:[#allocation3 + $0x118] sm:$0xff] }
  0x4d   :  { %v2538_v43 = vadd.f32 %v2537_v35, %v2230_v23  ;;  %v1317_v3 = vmin.f32 %v3037_v34, 1.0  ;;  %v1623_v4 = vmul.f32 0.5, %v1315_v48  ;;  %v1929_v5 = vsub.f32 %v3021_v63, %v1621_v49  ;;  %v400_v2 = vld [vmem:[#allocation6 + $0x118] sm:$0xff]  ;;  %v93_v63 = vld [vmem:[#allocation3 + $0x120] sm:$0xff] }
  0x4e   :  { %v2235_v6 = vmul.f32 %v1927_v51, %v1311_v11  ;;  %v706_v0 = vsub.f32 %v90_v44, %v398_v46  ;;  %v3049_v1 = vand.u32 2147483647, %v704_v42  ;;  %v1318_v12 = vmin.f32 %v3041_v45, 1.0  ;;  %v401_v11 = vld [vmem:[#allocation6 + $0x120] sm:$0xff] }
  0x4f   :  { %v2539_v47 = vadd.f32 %v2538_v43, %v2231_v32  ;;  %v1624_v13 = vmul.f32 0.5, %v1316_v56  ;;  %v1930_v14 = vsub.f32 %v3025_v10, %v1622_v59  ;;  %v2236_v17 = vmul.f32 %v1928_v60, %v1312_v20  ;;  %v94_v10 = vld [vmem:[#allocation3 + $0x128] sm:$0xff] }
  0x50   :  { %v707_v8 = vsub.f32 %v91_v50, %v399_v55  ;;  %v3053_v9 = vand.u32 2147483647, %v705_v53  ;;  %v1319_v21 = vmin.f32 %v3045_v54, 1.0  ;;  %v1625_v22 = vmul.f32 0.5, %v1317_v3  ;;  %v402_v20 = vld [vmem:[#allocation6 + $0x128] sm:$0xff] }
  0x51   :  { %v2540_v57 = vadd.f32 %v2539_v47, %v2232_v41  ;;  %v1931_v23 = vsub.f32 %v3029_v16, %v1623_v4  ;;  %v2237_v26 = vmul.f32 %v1929_v5, %v1313_v29  ;;  %v708_v18 = vsub.f32 %v92_v58, %v400_v2  ;;  %v95_v16 = vld [vmem:[#allocation3 + $0x130] sm:$0xff] }
  0x52   :  { %v3057_v19 = vand.u32 2147483647, %v706_v0  ;;  %v1320_v30 = vmin.f32 %v3049_v1, 1.0  ;;  %v1626_v31 = vmul.f32 0.5, %v1318_v12  ;;  %v1932_v32 = vsub.f32 %v3033_v25, %v1624_v13  ;;  %v403_v29 = vld [vmem:[#allocation6 + $0x130] sm:$0xff]  ;;  %v96_v25 = vld [vmem:[#allocation3 + $0x138] sm:$0xff] }
  0x53   :  { %v2541_v62 = vadd.f32 %v2540_v57, %v2233_v52  ;;  %v2238_v35 = vmul.f32 %v1930_v14, %v1314_v38  ;;  %v709_v27 = vsub.f32 %v93_v63, %v401_v11  ;;  %v3061_v28 = vand.u32 2147483647, %v707_v8  ;;  %v404_v38 = vld [vmem:[#allocation6 + $0x138] sm:$0xff] }
  0x54   :  { %v1321_v39 = vmin.f32 %v3053_v9, 1.0  ;;  %v1627_v40 = vmul.f32 0.5, %v1319_v21  ;;  %v1933_v41 = vsub.f32 %v3037_v34, %v1625_v22  ;;  %v2239_v43 = vmul.f32 %v1931_v23, %v1315_v48  ;;  %v97_v34 = vld [vmem:[#allocation3 + $0x140] sm:$0xff] }
  0x55   :  { %v2542_v7 = vadd.f32 %v2541_v62, %v2234_v61  ;;  %v710_v36 = vsub.f32 %v94_v10, %v402_v20  ;;  %v3065_v37 = vand.u32 2147483647, %v708_v18  ;;  %v1322_v49 = vmin.f32 %v3057_v19, 1.0  ;;  %v405_v48 = vld [vmem:[#allocation6 + $0x140] sm:$0xff] }
  0x56   :  { %v1628_v51 = vmul.f32 0.5, %v1320_v30  ;;  %v1934_v52 = vsub.f32 %v3041_v45, %v1626_v31  ;;  %v2240_v47 = vmul.f32 %v1932_v32, %v1316_v56  ;;  %v711_v44 = vsub.f32 %v95_v16, %v403_v29  ;;  %v98_v45 = vld [vmem:[#allocation3 + $0x148] sm:$0xff] }
  0x57   :  { %v2543_v15 = vadd.f32 %v2542_v7, %v2235_v6  ;;  %v3069_v46 = vand.u32 2147483647, %v709_v27  ;;  %v1323_v59 = vmin.f32 %v3061_v28, 1.0  ;;  %v1629_v60 = vmul.f32 0.5, %v1321_v39  ;;  %v406_v56 = vld [vmem:[#allocation6 + $0x148] sm:$0xff] }
  0x58   :  { %v1935_v61 = vsub.f32 %v3045_v54, %v1627_v40  ;;  %v2241_v57 = vmul.f32 %v1933_v41, %v1317_v3  ;;  %v712_v50 = vsub.f32 %v96_v25, %v404_v38  ;;  %v3073_v55 = vand.u32 2147483647, %v710_v36  ;;  %v99_v54 = vld [vmem:[#allocation3 + $0x150] sm:$0xff] }
  0x59   :  { %v2544_v24 = vadd.f32 %v2543_v15, %v2236_v17  ;;  %v1324_v4 = vmin.f32 %v3065_v37, 1.0  ;;  %v1630_v5 = vmul.f32 0.5, %v1322_v49  ;;  %v1936_v6 = vsub.f32 %v3049_v1, %v1628_v51  ;;  %v407_v3 = vld [vmem:[#allocation6 + $0x150] sm:$0xff]  ;;  %v100_v1 = vld [vmem:[#allocation3 + $0x158] sm:$0xff] }
  0x5a   :  { %v2242_v62 = vmul.f32 %v1934_v52, %v1318_v12  ;;  %v713_v58 = vsub.f32 %v97_v34, %v405_v48  ;;  %v3077_v2 = vand.u32 2147483647, %v711_v44  ;;  %v1325_v13 = vmin.f32 %v3069_v46, 1.0  ;;  %v408_v12 = vld [vmem:[#allocation6 + $0x158] sm:$0xff] }
  0x5b   :  { %v2545_v33 = vadd.f32 %v2544_v24, %v2237_v26  ;;  %v1631_v14 = vmul.f32 0.5, %v1323_v59  ;;  %v1937_v17 = vsub.f32 %v3053_v9, %v1629_v60  ;;  %v2243_v7 = vmul.f32 %v1935_v61, %v1319_v21  ;;  %v101_v9 = vld [vmem:[#allocation3 + $0x160] sm:$0xff] }
  0x5c   :  { %v714_v63 = vsub.f32 %v98_v45, %v406_v56  ;;  %v3081_v11 = vand.u32 2147483647, %v712_v50  ;;  %v1326_v22 = vmin.f32 %v3073_v55, 1.0  ;;  %v1632_v23 = vmul.f32 0.5, %v1324_v4  ;;  %v409_v21 = vld [vmem:[#allocation6 + $0x160] sm:$0xff] }
  0x5d   :  { %v2546_v42 = vadd.f32 %v2545_v33, %v2238_v35  ;;  %v1938_v26 = vsub.f32 %v3057_v19, %v1630_v5  ;;  %v2244_v15 = vmul.f32 %v1936_v6, %v1320_v30  ;;  %v715_v10 = vsub.f32 %v99_v54, %v407_v3  ;;  %v102_v19 = vld [vmem:[#allocation3 + $0x168] sm:$0xff] }
  0x5e   :  { %v3085_v20 = vand.u32 2147483647, %v713_v58  ;;  %v1327_v31 = vmin.f32 %v3077_v2, 1.0  ;;  %v1633_v32 = vmul.f32 0.5, %v1325_v13  ;;  %v1939_v35 = vsub.f32 %v3061_v28, %v1631_v14  ;;  %v410_v30 = vld [vmem:[#allocation6 + $0x168] sm:$0xff]  ;;  %v103_v28 = vld [vmem:[#allocation3 + $0x170] sm:$0xff] }
  0x5f   :  { %v2547_v53 = vadd.f32 %v2546_v42, %v2239_v43  ;;  %v2245_v24 = vmul.f32 %v1937_v17, %v1321_v39  ;;  %v716_v16 = vsub.f32 %v100_v1, %v408_v12  ;;  %v3089_v29 = vand.u32 2147483647, %v714_v63  ;;  %v411_v39 = vld [vmem:[#allocation6 + $0x170] sm:$0xff] }
  0x60   :  { %v1328_v40 = vmin.f32 %v3081_v11, 1.0  ;;  %v1634_v41 = vmul.f32 0.5, %v1326_v22  ;;  %v1940_v43 = vsub.f32 %v3065_v37, %v1632_v23  ;;  %v2246_v33 = vmul.f32 %v1938_v26, %v1322_v49  ;;  %v104_v37 = vld [vmem:[#allocation3 + $0x178] sm:$0xff] }
  0x61   :  { %v2548_v0 = vadd.f32 %v2547_v53, %v2240_v47  ;;  %v717_v25 = vsub.f32 %v101_v9, %v409_v21  ;;  %v3093_v38 = vand.u32 2147483647, %v715_v10  ;;  %v1329_v51 = vmin.f32 %v3085_v20, 1.0  ;;  %v412_v49 = vld [vmem:[#allocation6 + $0x178] sm:$0xff] }
  0x62   :  { %v1635_v52 = vmul.f32 0.5, %v1327_v31  ;;  %v1941_v47 = vsub.f32 %v3069_v46, %v1633_v32  ;;  %v2247_v42 = vmul.f32 %v1939_v35, %v1323_v59  ;;  %v718_v34 = vsub.f32 %v102_v19, %v410_v30  ;;  %v105_v46 = vld [vmem:[#allocation3 + $0x180] sm:$0xff] }
  0x63   :  { %v2549_v8 = vadd.f32 %v2548_v0, %v2241_v57  ;;  %v3097_v48 = vand.u32 2147483647, %v716_v16  ;;  %v1330_v60 = vmin.f32 %v3089_v29, 1.0  ;;  %v1636_v61 = vmul.f32 0.5, %v1328_v40  ;;  %v413_v59 = vld [vmem:[#allocation6 + $0x180] sm:$0xff] }
  0x64   :  { %v1942_v57 = vsub.f32 %v3073_v55, %v1634_v41  ;;  %v2248_v53 = vmul.f32 %v1940_v43, %v1324_v4  ;;  %v719_v45 = vsub.f32 %v103_v28, %v411_v39  ;;  %v3101_v56 = vand.u32 2147483647, %v717_v25  ;;  %v106_v55 = vld [vmem:[#allocation3 + $0x188] sm:$0xff] }
  0x65   :  { %v2550_v18 = vadd.f32 %v2549_v8, %v2242_v62  ;;  %v1331_v5 = vmin.f32 %v3093_v38, 1.0  ;;  %v1637_v6 = vmul.f32 0.5, %v1329_v51  ;;  %v1943_v62 = vsub.f32 %v3077_v2, %v1635_v52  ;;  %v414_v4 = vld [vmem:[#allocation6 + $0x188] sm:$0xff]  ;;  %v107_v2 = vld [vmem:[#allocation3 + $0x190] sm:$0xff] }
  0x66   :  { %v2249_v0 = vmul.f32 %v1941_v47, %v1325_v13  ;;  %v720_v54 = vsub.f32 %v104_v37, %v412_v49  ;;  %v3105_v3 = vand.u32 2147483647, %v718_v34  ;;  %v1332_v14 = vmin.f32 %v3097_v48, 1.0  ;;  %v415_v13 = vld [vmem:[#allocation6 + $0x190] sm:$0xff] }
  0x67   :  { %v2551_v27 = vadd.f32 %v2550_v18, %v2243_v7  ;;  %v1638_v17 = vmul.f32 0.5, %v1330_v60  ;;  %v1944_v7 = vsub.f32 %v3081_v11, %v1636_v61  ;;  %v2250_v8 = vmul.f32 %v1942_v57, %v1326_v22  ;;  %v108_v11 = vld [vmem:[#allocation3 + $0x198] sm:$0xff] }
  0x68   :  { %v721_v1 = vsub.f32 %v105_v46, %v413_v59  ;;  %v3109_v12 = vand.u32 2147483647, %v719_v45  ;;  %v1333_v23 = vmin.f32 %v3101_v56, 1.0  ;;  %v1639_v26 = vmul.f32 0.5, %v1331_v5  ;;  %v416_v22 = vld [vmem:[#allocation6 + $0x198] sm:$0xff] }
  0x69   :  { %v2552_v36 = vadd.f32 %v2551_v27, %v2244_v15  ;;  %v1945_v15 = vsub.f32 %v3085_v20, %v1637_v6  ;;  %v2251_v18 = vmul.f32 %v1943_v62, %v1327_v31  ;;  %v722_v9 = vsub.f32 %v106_v55, %v414_v4  ;;  %v109_v20 = vld [vmem:[#allocation3 + $0x1a0] sm:$0xff] }
  0x6a   :  { %v3113_v21 = vand.u32 2147483647, %v720_v54  ;;  %v1334_v32 = vmin.f32 %v3105_v3, 1.0  ;;  %v1640_v35 = vmul.f32 0.5, %v1332_v14  ;;  %v2252_v27 = vmul.f32 %v1944_v7, %v1328_v40  ;;  %v417_v31 = vld [vmem:[#allocation6 + $0x1a0] sm:$0xff]  ;;  %v418_v40 = vld [vmem:[#allocation6 + $0x1a8] sm:$0xff] }
  0x6b   :  { %v2553_v44 = vadd.f32 %v2552_v36, %v2245_v24  ;;  %v1946_v24 = vsub.f32 %v3089_v29, %v1638_v17  ;;  %v723_v19 = vsub.f32 %v107_v2, %v415_v13  ;;  %v3117_v30 = vand.u32 2147483647, %v721_v1  ;;  %v110_v29 = vld [vmem:[#allocation3 + $0x1a8] sm:$0xff] }
  0x6c   :  { %v1335_v41 = vmin.f32 %v3109_v12, 1.0  ;;  %v1641_v43 = vmul.f32 0.5, %v1333_v23  ;;  %v2253_v36 = vmul.f32 %v1945_v15, %v1329_v51  ;;  %v724_v28 = vsub.f32 %v108_v11, %v416_v22  ;;  %v419_v51 = vld [vmem:[#allocation6 + $0x1b0] sm:$0xff] }
  0x6d   :  { %v2554_v50 = vadd.f32 %v2553_v44, %v2246_v33  ;;  %v1947_v33 = vsub.f32 %v3093_v38, %v1639_v26  ;;  %v3121_v39 = vand.u32 2147483647, %v722_v9  ;;  %v1336_v52 = vmin.f32 %v3113_v21, 1.0  ;;  %v111_v38 = vld [vmem:[#allocation3 + $0x1b0] sm:$0xff] }
  0x6e   :  { %v1642_v47 = vmul.f32 0.5, %v1334_v32  ;;  %v2254_v44 = vmul.f32 %v1946_v24, %v1330_v60  ;;  %v725_v37 = vsub.f32 %v109_v20, %v417_v31  ;;  %v3125_v49 = vand.u32 2147483647, %v723_v19  ;;  %v420_v60 = vld [vmem:[#allocation6 + $0x1b8] sm:$0xff] }
  0x6f   :  { %v2555_v58 = vadd.f32 %v2554_v50, %v2247_v42  ;;  %v1948_v42 = vsub.f32 %v3097_v48, %v1640_v35  ;;  %v1337_v61 = vmin.f32 %v3117_v30, 1.0  ;;  %v1643_v57 = vmul.f32 0.5, %v1335_v41  ;;  %v112_v48 = vld [vmem:[#allocation3 + $0x1b8] sm:$0xff] }
  0x70   :  { %v2255_v50 = vmul.f32 %v1947_v33, %v1331_v5  ;;  %v726_v46 = vsub.f32 %v110_v29, %v418_v40  ;;  %v3129_v59 = vand.u32 2147483647, %v724_v28  ;;  %v1338_v6 = vmin.f32 %v3121_v39, 1.0  ;;  %v421_v5 = vld [vmem:[#allocation6 + $0x1c0] sm:$0xff] }
  0x71   :  { %v2556_v63 = vadd.f32 %v2555_v58, %v2248_v53  ;;  %v1949_v53 = vsub.f32 %v3101_v56, %v1641_v43  ;;  %v1644_v62 = vmul.f32 0.5, %v1336_v52  ;;  %v2256_v58 = vmul.f32 %v1948_v42, %v1332_v14  ;;  %v113_v56 = vld [vmem:[#allocation3 + $0x1c0] sm:$0xff]  ;;  %v422_v14 = vld [vmem:[#allocation6 + $0x1c8] sm:$0xff] }
  0x72   :  { %v727_v55 = vsub.f32 %v111_v38, %v419_v51  ;;  %v3133_v4 = vand.u32 2147483647, %v725_v37  ;;  %v1339_v17 = vmin.f32 %v3125_v49, 1.0  ;;  %v1645_v7 = vmul.f32 0.5, %v1337_v61 }
  0x73   :  { %v2557_v10 = vadd.f32 %v2556_v63, %v2249_v0  ;;  %v1950_v0 = vsub.f32 %v3105_v3, %v1642_v47  ;;  %v2257_v63 = vmul.f32 %v1949_v53, %v1333_v23  ;;  %v728_v2 = vsub.f32 %v112_v48, %v420_v60  ;;  %v114_v3 = vld [vmem:[#allocation3 + $0x1c8] sm:$0xff]  ;;  %v423_v23 = vld [vmem:[#allocation6 + $0x1d0] sm:$0xff] }
  0x74   :  { %v3137_v13 = vand.u32 2147483647, %v726_v46  ;;  %v1340_v26 = vmin.f32 %v3129_v59, 1.0  ;;  %v1646_v15 = vmul.f32 0.5, %v1338_v6  ;;  %v729_v11 = vsub.f32 %v113_v56, %v421_v5 }
  0x75   :  { %v2558_v16 = vadd.f32 %v2557_v10, %v2250_v8  ;;  %v1951_v8 = vsub.f32 %v3109_v12, %v1643_v57  ;;  %v2258_v10 = vmul.f32 %v1950_v0, %v1334_v32  ;;  %v3141_v22 = vand.u32 2147483647, %v727_v55  ;;  %v115_v12 = vld [vmem:[#allocation3 + $0x1d0] sm:$0xff]  ;;  %v424_v32 = vld [vmem:[#allocation6 + $0x1d8] sm:$0xff] }
  0x76   :  { %v1341_v35 = vmin.f32 %v3133_v4, 1.0  ;;  %v1647_v24 = vmul.f32 0.5, %v1339_v17  ;;  %v730_v20 = vsub.f32 %v114_v3, %v422_v14  ;;  %v3145_v31 = vand.u32 2147483647, %v728_v2 }
  0x77   :  { %v2559_v25 = vadd.f32 %v2558_v16, %v2251_v18  ;;  %v1952_v18 = vsub.f32 %v3113_v21, %v1644_v62  ;;  %v2259_v16 = vmul.f32 %v1951_v8, %v1335_v41  ;;  %v1342_v43 = vmin.f32 %v3137_v13, 1.0  ;;  %v116_v21 = vld [vmem:[#allocation3 + $0x1d8] sm:$0xff]  ;;  %v425_v41 = vld [vmem:[#allocation6 + $0x1e0] sm:$0xff] }
  0x78   :  { %v1648_v33 = vmul.f32 0.5, %v1340_v26  ;;  %v731_v29 = vsub.f32 %v115_v12, %v423_v23  ;;  %v3149_v40 = vand.u32 2147483647, %v729_v11  ;;  %v1343_v47 = vmin.f32 %v3141_v22, 1.0 }
  0x79   :  { %v2560_v34 = vadd.f32 %v2559_v25, %v2252_v27  ;;  %v1953_v27 = vsub.f32 %v3117_v30, %v1645_v7  ;;  %v2260_v25 = vmul.f32 %v1952_v18, %v1336_v52  ;;  %v117_v30 = vld [vmem:[#allocation3 + $0x1e0] sm:$0xff]  ;;  %v1649_v42 = vmul.f32 0.5, %v1341_v35  ;;  %v426_v52 = vld [vmem:[#allocation6 + $0x1e8] sm:$0xff] }
  0x7a   :  { %v732_v38 = vsub.f32 %v116_v21, %v424_v32  ;;  %v3153_v51 = vand.u32 2147483647, %v730_v20  ;;  %v1344_v57 = vmin.f32 %v3145_v31, 1.0  ;;  %v1650_v53 = vmul.f32 0.5, %v1342_v43 }
  0x7b   :  { %v2561_v45 = vadd.f32 %v2560_v34, %v2253_v36  ;;  %v1954_v36 = vsub.f32 %v3121_v39, %v1646_v15  ;;  %v2261_v34 = vmul.f32 %v1953_v27, %v1337_v61  ;;  %v118_v39 = vld [vmem:[#allocation3 + $0x1e8] sm:$0xff]  ;;  %v733_v48 = vsub.f32 %v117_v30, %v425_v41  ;;  %v427_v61 = vld [vmem:[#allocation6 + $0x1f0] sm:$0xff] }
  0x7c   :  { %v3157_v60 = vand.u32 2147483647, %v731_v29  ;;  %v1345_v62 = vmin.f32 %v3149_v40, 1.0  ;;  %v1651_v0 = vmul.f32 0.5, %v1343_v47  ;;  %v734_v56 = vsub.f32 %v118_v39, %v426_v52 }
  0x7d   :  { %v2562_v54 = vadd.f32 %v2561_v45, %v2254_v44  ;;  %v1955_v44 = vsub.f32 %v3125_v49, %v1647_v24  ;;  %v2262_v45 = vmul.f32 %v1954_v36, %v1338_v6  ;;  %v119_v49 = vld [vmem:[#allocation3 + $0x1f0] sm:$0xff]  ;;  %v3161_v5 = vand.u32 2147483647, %v732_v38  ;;  %v428_v6 = vld [vmem:[#allocation6 + $0x1f8] sm:$0xff] }
  0x7e   :  { %v1346_v7 = vmin.f32 %v3153_v51, 1.0  ;;  %v1652_v8 = vmul.f32 0.5, %v1344_v57  ;;  %v735_v3 = vsub.f32 %v119_v49, %v427_v61  ;;  %v3165_v14 = vand.u32 2147483647, %v733_v48 }
  0x7f   :  { %v2563_v1 = vadd.f32 %v2562_v54, %v2255_v50  ;;  %v1956_v50 = vsub.f32 %v3129_v59, %v1648_v33  ;;  %v2263_v54 = vmul.f32 %v1955_v44, %v1339_v17  ;;  %v120_v59 = vld [vmem:[#allocation3 + $0x1f8] sm:$0xff]  ;;  %v1347_v15 = vmin.f32 %v3157_v60, 1.0  ;;  %v429_v17 = vld [vmem:[#allocation6 + $0x200] sm:$0xff] }
  0x80   :  { %v1653_v18 = vmul.f32 0.5, %v1345_v62  ;;  %v736_v12 = vsub.f32 %v120_v59, %v428_v6  ;;  %v3169_v23 = vand.u32 2147483647, %v734_v56  ;;  %v1348_v24 = vmin.f32 %v3161_v5, 1.0 }
  0x81   :  { %v2564_v9 = vadd.f32 %v2563_v1, %v2256_v58  ;;  %v1957_v58 = vsub.f32 %v3133_v4, %v1649_v42  ;;  %v2264_v1 = vmul.f32 %v1956_v50, %v1340_v26  ;;  %v121_v4 = vld [vmem:[#allocation3 + $0x200] sm:$0xff]  ;;  %v430_v26 = vld [vmem:[#allocation6 + $0x208] sm:$0xff]  ;;  %v1654_v27 = vmul.f32 0.5, %v1346_v7 }
  0x82   :  { %v737_v21 = vsub.f32 %v121_v4, %v429_v17  ;;  %v3173_v32 = vand.u32 2147483647, %v735_v3  ;;  %v1349_v33 = vmin.f32 %v3165_v14, 1.0  ;;  %v1655_v36 = vmul.f32 0.5, %v1347_v15 }
  0x83   :  { %v2565_v19 = vadd.f32 %v2564_v9, %v2257_v63  ;;  %v1958_v63 = vsub.f32 %v3137_v13, %v1650_v53  ;;  %v2265_v9 = vmul.f32 %v1957_v58, %v1341_v35  ;;  %v122_v13 = vld [vmem:[#allocation3 + $0x208] sm:$0xff]  ;;  %v431_v35 = vld [vmem:[#allocation6 + $0x210] sm:$0xff]  ;;  %v3177_v41 = vand.u32 2147483647, %v736_v12 }
  0x84   :  { %v738_v30 = vsub.f32 %v122_v13, %v430_v26  ;;  %v1350_v42 = vmin.f32 %v3169_v23, 1.0  ;;  %v1656_v44 = vmul.f32 0.5, %v1348_v24  ;;  %v3181_v52 = vand.u32 2147483647, %v737_v21 }
  0x85   :  { %v2566_v28 = vadd.f32 %v2565_v19, %v2258_v10  ;;  %v1959_v10 = vsub.f32 %v3141_v22, %v1651_v0  ;;  %v2266_v19 = vmul.f32 %v1958_v63, %v1342_v43  ;;  %v123_v22 = vld [vmem:[#allocation3 + $0x210] sm:$0xff]  ;;  %v432_v43 = vld [vmem:[#allocation6 + $0x218] sm:$0xff]  ;;  %v1351_v53 = vmin.f32 %v3173_v32, 1.0 }
  0x86   :  { %v739_v39 = vsub.f32 %v123_v22, %v431_v35  ;;  %v1657_v50 = vmul.f32 0.5, %v1349_v33  ;;  %v3185_v61 = vand.u32 2147483647, %v738_v30  ;;  %v1352_v0 = vmin.f32 %v3177_v41, 1.0 }
  0x87   :  { %v2567_v37 = vadd.f32 %v2566_v28, %v2259_v16  ;;  %v1960_v16 = vsub.f32 %v3145_v31, %v1652_v8  ;;  %v2267_v28 = vmul.f32 %v1959_v10, %v1343_v47  ;;  %v124_v31 = vld [vmem:[#allocation3 + $0x218] sm:$0xff]  ;;  %v433_v47 = vld [vmem:[#allocation6 + $0x220] sm:$0xff]  ;;  %v1658_v58 = vmul.f32 0.5, %v1350_v42 }
  0x88   :  { %v740_v49 = vsub.f32 %v124_v31, %v432_v43  ;;  %v3189_v6 = vand.u32 2147483647, %v739_v39  ;;  %v1353_v8 = vmin.f32 %v3181_v52, 1.0  ;;  %v1659_v63 = vmul.f32 0.5, %v1351_v53 }
  0x89   :  { %v2568_v46 = vadd.f32 %v2567_v37, %v2260_v25  ;;  %v1961_v25 = vsub.f32 %v3149_v40, %v1653_v18  ;;  %v2268_v37 = vmul.f32 %v1960_v16, %v1344_v57  ;;  %v125_v40 = vld [vmem:[#allocation3 + $0x220] sm:$0xff]  ;;  %v434_v57 = vld [vmem:[#allocation6 + $0x228] sm:$0xff]  ;;  %v1354_v18 = vmin.f32 %v3185_v61, 1.0 }
  0x8a   :  { %v741_v59 = vsub.f32 %v125_v40, %v433_v47  ;;  %v3193_v17 = vand.u32 2147483647, %v740_v49  ;;  %v1660_v10 = vmul.f32 0.5, %v1352_v0  ;;  %v1661_v16 = vmul.f32 0.5, %v1353_v8 }
  0x8b   :  { %v2569_v55 = vadd.f32 %v2568_v46, %v2261_v34  ;;  %v1962_v34 = vsub.f32 %v3153_v51, %v1654_v27  ;;  %v2269_v46 = vmul.f32 %v1961_v25, %v1345_v62  ;;  %v126_v51 = vld [vmem:[#allocation3 + $0x228] sm:$0xff]  ;;  %v435_v62 = vld [vmem:[#allocation6 + $0x230] sm:$0xff]  ;;  %v1355_v27 = vmin.f32 %v3189_v6, 1.0 }
  0x8c   :  { %v742_v4 = vsub.f32 %v126_v51, %v434_v57  ;;  %v3197_v26 = vand.u32 2147483647, %v741_v59  ;;  %v1662_v25 = vmul.f32 0.5, %v1354_v18 }
  0x8d   :  { %v2570_v2 = vadd.f32 %v2569_v55, %v2262_v45  ;;  %v1963_v45 = vsub.f32 %v3157_v60, %v1655_v36  ;;  %v2270_v55 = vmul.f32 %v1962_v34, %v1346_v7  ;;  %v127_v60 = vld [vmem:[#allocation3 + $0x230] sm:$0xff]  ;;  %v436_v7 = vld [vmem:[#allocation6 + $0x238] sm:$0xff]  ;;  %v1356_v36 = vmin.f32 %v3193_v17, 1.0 }
  0x8e   :  { %v743_v13 = vsub.f32 %v127_v60, %v435_v62  ;;  %v3201_v35 = vand.u32 2147483647, %v742_v4  ;;  %v1663_v34 = vmul.f32 0.5, %v1355_v27 }
  0x8f   :  { %v2571_v11 = vadd.f32 %v2570_v2, %v2263_v54  ;;  %v1964_v54 = vsub.f32 %v3161_v5, %v1656_v44  ;;  %v2271_v2 = vmul.f32 %v1963_v45, %v1347_v15  ;;  %v128_v5 = vld [vmem:[#allocation3 + $0x238] sm:$0xff]  ;;  %v437_v15 = vld [vmem:[#allocation6 + $0x240] sm:$0xff]  ;;  %v1357_v44 = vmin.f32 %v3197_v26, 1.0 }
  0x90   :  { %v744_v22 = vsub.f32 %v128_v5, %v436_v7  ;;  %v3205_v43 = vand.u32 2147483647, %v743_v13  ;;  %v1664_v45 = vmul.f32 0.5, %v1356_v36 }
  0x91   :  { %v2572_v20 = vadd.f32 %v2571_v11, %v2264_v1  ;;  %v1965_v1 = vsub.f32 %v3165_v14, %v1657_v50  ;;  %v2272_v11 = vmul.f32 %v1964_v54, %v1348_v24  ;;  %v129_v14 = vld [vmem:[#allocation3 + $0x240] sm:$0xff]  ;;  %v438_v24 = vld [vmem:[#allocation6 + $0x248] sm:$0xff]  ;;  %v1358_v50 = vmin.f32 %v3201_v35, 1.0 }
  0x92   :  { %v745_v31 = vsub.f32 %v129_v14, %v437_v15  ;;  %v3209_v47 = vand.u32 2147483647, %v744_v22  ;;  %v1665_v54 = vmul.f32 0.5, %v1357_v44 }
  0x93   :  { %v2573_v29 = vadd.f32 %v2572_v20, %v2265_v9  ;;  %v1966_v9 = vsub.f32 %v3169_v23, %v1658_v58  ;;  %v2273_v20 = vmul.f32 %v1965_v1, %v1349_v33  ;;  %v130_v23 = vld [vmem:[#allocation3 + $0x248] sm:$0xff]  ;;  %v439_v33 = vld [vmem:[#allocation6 + $0x250] sm:$0xff]  ;;  %v1359_v58 = vmin.f32 %v3205_v43, 1.0 }
  0x94   :  { %v746_v40 = vsub.f32 %v130_v23, %v438_v24  ;;  %v3213_v57 = vand.u32 2147483647, %v745_v31  ;;  %v1666_v1 = vmul.f32 0.5, %v1358_v50 }
  0x95   :  { %v2574_v38 = vadd.f32 %v2573_v29, %v2266_v19  ;;  %v1967_v19 = vsub.f32 %v3173_v32, %v1659_v63  ;;  %v2274_v29 = vmul.f32 %v1966_v9, %v1350_v42  ;;  %v131_v32 = vld [vmem:[#allocation3 + $0x250] sm:$0xff]  ;;  %v440_v42 = vld [vmem:[#allocation6 + $0x258] sm:$0xff]  ;;  %v1360_v63 = vmin.f32 %v3209_v47, 1.0 }
  0x96   :  { %v747_v51 = vsub.f32 %v131_v32, %v439_v33  ;;  %v3217_v62 = vand.u32 2147483647, %v746_v40  ;;  %v1667_v9 = vmul.f32 0.5, %v1359_v58 }
  0x97   :  { %v2575_v48 = vadd.f32 %v2574_v38, %v2267_v28  ;;  %v1968_v28 = vsub.f32 %v3177_v41, %v1660_v10  ;;  %v2275_v38 = vmul.f32 %v1967_v19, %v1351_v53  ;;  %v132_v41 = vld [vmem:[#allocation3 + $0x258] sm:$0xff]  ;;  %v441_v53 = vld [vmem:[#allocation6 + $0x260] sm:$0xff]  ;;  %v1361_v10 = vmin.f32 %v3213_v57, 1.0 }
  0x98   :  { %v748_v60 = vsub.f32 %v132_v41, %v440_v42  ;;  %v3221_v7 = vand.u32 2147483647, %v747_v51  ;;  %v1668_v19 = vmul.f32 0.5, %v1360_v63 }
  0x99   :  { %v2576_v56 = vadd.f32 %v2575_v48, %v2268_v37  ;;  %v1969_v37 = vsub.f32 %v3181_v52, %v1661_v16  ;;  %v2276_v48 = vmul.f32 %v1968_v28, %v1352_v0  ;;  %v133_v52 = vld [vmem:[#allocation3 + $0x260] sm:$0xff]  ;;  %v442_v0 = vld [vmem:[#allocation6 + $0x268] sm:$0xff]  ;;  %v1362_v16 = vmin.f32 %v3217_v62, 1.0 }
  0x9a   :  { %v749_v5 = vsub.f32 %v133_v52, %v441_v53  ;;  %v3225_v15 = vand.u32 2147483647, %v748_v60  ;;  %v1669_v28 = vmul.f32 0.5, %v1361_v10 }
  0x9b   :  { %v2577_v3 = vadd.f32 %v2576_v56, %v2269_v46  ;;  %v1970_v46 = vsub.f32 %v3185_v61, %v1662_v25  ;;  %v2277_v56 = vmul.f32 %v1969_v37, %v1353_v8  ;;  %v134_v61 = vld [vmem:[#allocation3 + $0x268] sm:$0xff]  ;;  %v443_v8 = vld [vmem:[#allocation6 + $0x270] sm:$0xff]  ;;  %v1363_v25 = vmin.f32 %v3221_v7, 1.0 }
  0x9c   :  { %v750_v14 = vsub.f32 %v134_v61, %v442_v0  ;;  %v3229_v24 = vand.u32 2147483647, %v749_v5  ;;  %v1670_v37 = vmul.f32 0.5, %v1362_v16 }
  0x9d   :  { %v2578_v12 = vadd.f32 %v2577_v3, %v2270_v55  ;;  %v1971_v55 = vsub.f32 %v3189_v6, %v1663_v34  ;;  %v2278_v3 = vmul.f32 %v1970_v46, %v1354_v18  ;;  %v135_v6 = vld [vmem:[#allocation3 + $0x270] sm:$0xff]  ;;  %v444_v18 = vld [vmem:[#allocation6 + $0x278] sm:$0xff]  ;;  %v1364_v34 = vmin.f32 %v3225_v15, 1.0 }
  0x9e   :  { %v751_v23 = vsub.f32 %v135_v6, %v443_v8  ;;  %v3233_v33 = vand.u32 2147483647, %v750_v14  ;;  %v1671_v46 = vmul.f32 0.5, %v1363_v25 }
  0x9f   :  { %v2579_v21 = vadd.f32 %v2578_v12, %v2271_v2  ;;  %v1972_v2 = vsub.f32 %v3193_v17, %v1664_v45  ;;  %v2279_v12 = vmul.f32 %v1971_v55, %v1355_v27  ;;  %v136_v17 = vld [vmem:[#allocation3 + $0x278] sm:$0xff]  ;;  %v445_v27 = vld [vmem:[#allocation6 + $0x280] sm:$0xff]  ;;  %v1365_v45 = vmin.f32 %v3229_v24, 1.0 }
  0xa0   :  { %v752_v32 = vsub.f32 %v136_v17, %v444_v18  ;;  %v3237_v42 = vand.u32 2147483647, %v751_v23  ;;  %v1672_v55 = vmul.f32 0.5, %v1364_v34 }
  0xa1   :  { %v2580_v30 = vadd.f32 %v2579_v21, %v2272_v11  ;;  %v1973_v11 = vsub.f32 %v3197_v26, %v1665_v54  ;;  %v2280_v21 = vmul.f32 %v1972_v2, %v1356_v36  ;;  %v137_v26 = vld [vmem:[#allocation3 + $0x280] sm:$0xff]  ;;  %v446_v36 = vld [vmem:[#allocation6 + $0x288] sm:$0xff]  ;;  %v1366_v54 = vmin.f32 %v3233_v33, 1.0 }
  0xa2   :  { %v753_v41 = vsub.f32 %v137_v26, %v445_v27  ;;  %v3241_v53 = vand.u32 2147483647, %v752_v32  ;;  %v1673_v2 = vmul.f32 0.5, %v1365_v45 }
  0xa3   :  { %v2581_v39 = vadd.f32 %v2580_v30, %v2273_v20  ;;  %v1974_v20 = vsub.f32 %v3201_v35, %v1666_v1  ;;  %v2281_v30 = vmul.f32 %v1973_v11, %v1357_v44  ;;  %v138_v35 = vld [vmem:[#allocation3 + $0x288] sm:$0xff]  ;;  %v447_v44 = vld [vmem:[#allocation6 + $0x290] sm:$0xff]  ;;  %v1367_v1 = vmin.f32 %v3237_v42, 1.0 }
  0xa4   :  { %v754_v52 = vsub.f32 %v138_v35, %v446_v36  ;;  %v3245_v0 = vand.u32 2147483647, %v753_v41  ;;  %v1674_v11 = vmul.f32 0.5, %v1366_v54 }
  0xa5   :  { %v2582_v49 = vadd.f32 %v2581_v39, %v2274_v29  ;;  %v1975_v29 = vsub.f32 %v3205_v43, %v1667_v9  ;;  %v2282_v39 = vmul.f32 %v1974_v20, %v1358_v50  ;;  %v139_v43 = vld [vmem:[#allocation3 + $0x290] sm:$0xff]  ;;  %v448_v50 = vld [vmem:[#allocation6 + $0x298] sm:$0xff]  ;;  %v1368_v9 = vmin.f32 %v3241_v53, 1.0 }
  0xa6   :  { %v755_v61 = vsub.f32 %v139_v43, %v447_v44  ;;  %v3249_v8 = vand.u32 2147483647, %v754_v52  ;;  %v1675_v20 = vmul.f32 0.5, %v1367_v1 }
  0xa7   :  { %v2583_v59 = vadd.f32 %v2582_v49, %v2275_v38  ;;  %v1976_v38 = vsub.f32 %v3209_v47, %v1668_v19  ;;  %v2283_v49 = vmul.f32 %v1975_v29, %v1359_v58  ;;  %v140_v47 = vld [vmem:[#allocation3 + $0x298] sm:$0xff]  ;;  %v449_v58 = vld [vmem:[#allocation6 + $0x2a0] sm:$0xff]  ;;  %v1369_v19 = vmin.f32 %v3245_v0, 1.0 }
  0xa8   :  { %v756_v6 = vsub.f32 %v140_v47, %v448_v50  ;;  %v3253_v18 = vand.u32 2147483647, %v755_v61  ;;  %v1676_v29 = vmul.f32 0.5, %v1368_v9 }
  0xa9   :  { %v2584_v4 = vadd.f32 %v2583_v59, %v2276_v48  ;;  %v1977_v48 = vsub.f32 %v3213_v57, %v1669_v28  ;;  %v2284_v59 = vmul.f32 %v1976_v38, %v1360_v63  ;;  %v141_v57 = vld [vmem:[#allocation3 + $0x2a0] sm:$0xff]  ;;  %v450_v63 = vld [vmem:[#allocation6 + $0x2a8] sm:$0xff]  ;;  %v1370_v28 = vmin.f32 %v3249_v8, 1.0 }
  0xaa   :  { %v757_v17 = vsub.f32 %v141_v57, %v449_v58  ;;  %v3257_v27 = vand.u32 2147483647, %v756_v6  ;;  %v1677_v38 = vmul.f32 0.5, %v1369_v19 }
  0xab   :  { %v2585_v13 = vadd.f32 %v2584_v4, %v2277_v56  ;;  %v1978_v56 = vsub.f32 %v3217_v62, %v1670_v37  ;;  %v2285_v4 = vmul.f32 %v1977_v48, %v1361_v10  ;;  %v142_v62 = vld [vmem:[#allocation3 + $0x2a8] sm:$0xff]  ;;  %v451_v10 = vld [vmem:[#allocation6 + $0x2b0] sm:$0xff]  ;;  %v1371_v37 = vmin.f32 %v3253_v18, 1.0 }
  0xac   :  { %v758_v26 = vsub.f32 %v142_v62, %v450_v63  ;;  %v3261_v36 = vand.u32 2147483647, %v757_v17  ;;  %v1678_v48 = vmul.f32 0.5, %v1370_v28 }
  0xad   :  { %v2586_v22 = vadd.f32 %v2585_v13, %v2278_v3  ;;  %v1979_v3 = vsub.f32 %v3221_v7, %v1671_v46  ;;  %v2286_v13 = vmul.f32 %v1978_v56, %v1362_v16  ;;  %v143_v7 = vld [vmem:[#allocation3 + $0x2b0] sm:$0xff]  ;;  %v452_v16 = vld [vmem:[#allocation6 + $0x2b8] sm:$0xff]  ;;  %v1372_v46 = vmin.f32 %v3257_v27, 1.0 }
  0xae   :  { %v759_v35 = vsub.f32 %v143_v7, %v451_v10  ;;  %v3265_v44 = vand.u32 2147483647, %v758_v26  ;;  %v1679_v56 = vmul.f32 0.5, %v1371_v37 }
  0xaf   :  { %v2587_v31 = vadd.f32 %v2586_v22, %v2279_v12  ;;  %v1980_v12 = vsub.f32 %v3225_v15, %v1672_v55  ;;  %v2287_v22 = vmul.f32 %v1979_v3, %v1363_v25  ;;  %v144_v15 = vld [vmem:[#allocation3 + $0x2b8] sm:$0xff]  ;;  %v453_v25 = vld [vmem:[#allocation6 + $0x2c0] sm:$0xff]  ;;  %v1373_v55 = vmin.f32 %v3261_v36, 1.0 }
  0xb0   :  { %v760_v43 = vsub.f32 %v144_v15, %v452_v16  ;;  %v3269_v50 = vand.u32 2147483647, %v759_v35  ;;  %v1680_v3 = vmul.f32 0.5, %v1372_v46 }
  0xb1   :  { %v2588_v40 = vadd.f32 %v2587_v31, %v2280_v21  ;;  %v1981_v21 = vsub.f32 %v3229_v24, %v1673_v2  ;;  %v2288_v31 = vmul.f32 %v1980_v12, %v1364_v34  ;;  %v145_v24 = vld [vmem:[#allocation3 + $0x2c0] sm:$0xff]  ;;  %v454_v34 = vld [vmem:[#allocation6 + $0x2c8] sm:$0xff]  ;;  %v1374_v2 = vmin.f32 %v3265_v44, 1.0 }
  0xb2   :  { %v761_v47 = vsub.f32 %v145_v24, %v453_v25  ;;  %v3273_v58 = vand.u32 2147483647, %v760_v43  ;;  %v1681_v12 = vmul.f32 0.5, %v1373_v55 }
  0xb3   :  { %v2589_v51 = vadd.f32 %v2588_v40, %v2281_v30  ;;  %v1982_v30 = vsub.f32 %v3233_v33, %v1674_v11  ;;  %v2289_v40 = vmul.f32 %v1981_v21, %v1365_v45  ;;  %v146_v33 = vld [vmem:[#allocation3 + $0x2c8] sm:$0xff]  ;;  %v455_v45 = vld [vmem:[#allocation6 + $0x2d0] sm:$0xff]  ;;  %v1375_v11 = vmin.f32 %v3269_v50, 1.0 }
  0xb4   :  { %v762_v57 = vsub.f32 %v146_v33, %v454_v34  ;;  %v3277_v63 = vand.u32 2147483647, %v761_v47  ;;  %v1682_v21 = vmul.f32 0.5, %v1374_v2 }
  0xb5   :  { %v2590_v60 = vadd.f32 %v2589_v51, %v2282_v39  ;;  %v1983_v39 = vsub.f32 %v3237_v42, %v1675_v20  ;;  %v2290_v51 = vmul.f32 %v1982_v30, %v1366_v54  ;;  %v147_v42 = vld [vmem:[#allocation3 + $0x2d0] sm:$0xff]  ;;  %v456_v54 = vld [vmem:[#allocation6 + $0x2d8] sm:$0xff]  ;;  %v1376_v20 = vmin.f32 %v3273_v58, 1.0 }
  0xb6   :  { %v763_v62 = vsub.f32 %v147_v42, %v455_v45  ;;  %v3281_v10 = vand.u32 2147483647, %v762_v57  ;;  %v1683_v30 = vmul.f32 0.5, %v1375_v11 }
  0xb7   :  { %v2591_v5 = vadd.f32 %v2590_v60, %v2283_v49  ;;  %v1984_v49 = vsub.f32 %v3241_v53, %v1676_v29  ;;  %v2291_v60 = vmul.f32 %v1983_v39, %v1367_v1  ;;  %v148_v53 = vld [vmem:[#allocation3 + $0x2d8] sm:$0xff]  ;;  %v457_v1 = vld [vmem:[#allocation6 + $0x2e0] sm:$0xff]  ;;  %v1377_v29 = vmin.f32 %v3277_v63, 1.0 }
  0xb8   :  { %v764_v7 = vsub.f32 %v148_v53, %v456_v54  ;;  %v3285_v16 = vand.u32 2147483647, %v763_v62  ;;  %v1684_v39 = vmul.f32 0.5, %v1376_v20 }
  0xb9   :  { %v2592_v14 = vadd.f32 %v2591_v5, %v2284_v59  ;;  %v1985_v59 = vsub.f32 %v3245_v0, %v1677_v38  ;;  %v2292_v5 = vmul.f32 %v1984_v49, %v1368_v9  ;;  %v149_v0 = vld [vmem:[#allocation3 + $0x2e0] sm:$0xff]  ;;  %v458_v9 = vld [vmem:[#allocation6 + $0x2e8] sm:$0xff]  ;;  %v1378_v38 = vmin.f32 %v3281_v10, 1.0 }
  0xba   :  { %v765_v15 = vsub.f32 %v149_v0, %v457_v1  ;;  %v3289_v25 = vand.u32 2147483647, %v764_v7  ;;  %v1685_v49 = vmul.f32 0.5, %v1377_v29 }
  0xbb   :  { %v2593_v23 = vadd.f32 %v2592_v14, %v2285_v4  ;;  %v1986_v4 = vsub.f32 %v3249_v8, %v1678_v48  ;;  %v2293_v14 = vmul.f32 %v1985_v59, %v1369_v19  ;;  %v150_v8 = vld [vmem:[#allocation3 + $0x2e8] sm:$0xff]  ;;  %v459_v19 = vld [vmem:[#allocation6 + $0x2f0] sm:$0xff]  ;;  %v1379_v48 = vmin.f32 %v3285_v16, 1.0 }
  0xbc   :  { %v766_v24 = vsub.f32 %v150_v8, %v458_v9  ;;  %v3293_v34 = vand.u32 2147483647, %v765_v15  ;;  %v1686_v59 = vmul.f32 0.5, %v1378_v38 }
  0xbd   :  { %v2594_v32 = vadd.f32 %v2593_v23, %v2286_v13  ;;  %v1987_v13 = vsub.f32 %v3253_v18, %v1679_v56  ;;  %v2294_v23 = vmul.f32 %v1986_v4, %v1370_v28  ;;  %v151_v18 = vld [vmem:[#allocation3 + $0x2f0] sm:$0xff]  ;;  %v460_v28 = vld [vmem:[#allocation6 + $0x2f8] sm:$0xff]  ;;  %v1380_v56 = vmin.f32 %v3289_v25, 1.0 }
  0xbe   :  { %v767_v33 = vsub.f32 %v151_v18, %v459_v19  ;;  %v3297_v45 = vand.u32 2147483647, %v766_v24  ;;  %v1687_v4 = vmul.f32 0.5, %v1379_v48 }
  0xbf   :  { %v2595_v41 = vadd.f32 %v2594_v32, %v2287_v22  ;;  %v1988_v22 = vsub.f32 %v3257_v27, %v1680_v3  ;;  %v2295_v32 = vmul.f32 %v1987_v13, %v1371_v37  ;;  %v152_v27 = vld [vmem:[#allocation3 + $0x2f8] sm:$0xff]  ;;  %v461_v37 = vld [vmem:[#allocation6 + $0x300] sm:$0xff]  ;;  %v1381_v3 = vmin.f32 %v3293_v34, 1.0 }
  0xc0   :  { %v768_v42 = vsub.f32 %v152_v27, %v460_v28  ;;  %v3301_v54 = vand.u32 2147483647, %v767_v33  ;;  %v1688_v13 = vmul.f32 0.5, %v1380_v56 }
  0xc1   :  { %v2596_v52 = vadd.f32 %v2595_v41, %v2288_v31  ;;  %v1989_v31 = vsub.f32 %v3261_v36, %v1681_v12  ;;  %v2296_v41 = vmul.f32 %v1988_v22, %v1372_v46  ;;  %v153_v36 = vld [vmem:[#allocation3 + $0x300] sm:$0xff]  ;;  %v462_v46 = vld [vmem:[#allocation6 + $0x308] sm:$0xff]  ;;  %v1382_v12 = vmin.f32 %v3297_v45, 1.0 }
  0xc2   :  { %v769_v53 = vsub.f32 %v153_v36, %v461_v37  ;;  %v3305_v1 = vand.u32 2147483647, %v768_v42  ;;  %v1689_v22 = vmul.f32 0.5, %v1381_v3 }
  0xc3   :  { %v2597_v61 = vadd.f32 %v2596_v52, %v2289_v40  ;;  %v1990_v40 = vsub.f32 %v3265_v44, %v1682_v21  ;;  %v2297_v52 = vmul.f32 %v1989_v31, %v1373_v55  ;;  %v154_v44 = vld [vmem:[#allocation3 + $0x308] sm:$0xff]  ;;  %v463_v55 = vld [vmem:[#allocation6 + $0x310] sm:$0xff]  ;;  %v1383_v21 = vmin.f32 %v3301_v54, 1.0 }
  0xc4   :  { %v770_v0 = vsub.f32 %v154_v44, %v462_v46  ;;  %v3309_v9 = vand.u32 2147483647, %v769_v53  ;;  %v1690_v31 = vmul.f32 0.5, %v1382_v12 }
  0xc5   :  { %v2598_v6 = vadd.f32 %v2597_v61, %v2290_v51  ;;  %v1991_v51 = vsub.f32 %v3269_v50, %v1683_v30  ;;  %v2298_v61 = vmul.f32 %v1990_v40, %v1374_v2  ;;  %v155_v50 = vld [vmem:[#allocation3 + $0x310] sm:$0xff]  ;;  %v464_v2 = vld [vmem:[#allocation6 + $0x318] sm:$0xff]  ;;  %v1384_v30 = vmin.f32 %v3305_v1, 1.0 }
  0xc6   :  { %v771_v8 = vsub.f32 %v155_v50, %v463_v55  ;;  %v3313_v19 = vand.u32 2147483647, %v770_v0  ;;  %v1691_v40 = vmul.f32 0.5, %v1383_v21 }
  0xc7   :  { %v2599_v17 = vadd.f32 %v2598_v6, %v2291_v60  ;;  %v1992_v60 = vsub.f32 %v3273_v58, %v1684_v39  ;;  %v2299_v6 = vmul.f32 %v1991_v51, %v1375_v11  ;;  %v156_v58 = vld [vmem:[#allocation3 + $0x318] sm:$0xff]  ;;  %v465_v11 = vld [vmem:[#allocation6 + $0x320] sm:$0xff]  ;;  %v1385_v39 = vmin.f32 %v3309_v9, 1.0 }
  0xc8   :  { %v772_v18 = vsub.f32 %v156_v58, %v464_v2  ;;  %v3317_v28 = vand.u32 2147483647, %v771_v8  ;;  %v1692_v51 = vmul.f32 0.5, %v1384_v30 }
  0xc9   :  { %v2600_v26 = vadd.f32 %v2599_v17, %v2292_v5  ;;  %v1993_v5 = vsub.f32 %v3277_v63, %v1685_v49  ;;  %v2300_v17 = vmul.f32 %v1992_v60, %v1376_v20  ;;  %v157_v63 = vld [vmem:[#allocation3 + $0x320] sm:$0xff]  ;;  %v466_v20 = vld [vmem:[#allocation6 + $0x328] sm:$0xff]  ;;  %v1386_v49 = vmin.f32 %v3313_v19, 1.0 }
  0xca   :  { %v773_v27 = vsub.f32 %v157_v63, %v465_v11  ;;  %v3321_v37 = vand.u32 2147483647, %v772_v18  ;;  %v1693_v60 = vmul.f32 0.5, %v1385_v39 }
  0xcb   :  { %v2601_v35 = vadd.f32 %v2600_v26, %v2293_v14  ;;  %v1994_v14 = vsub.f32 %v3281_v10, %v1686_v59  ;;  %v2301_v26 = vmul.f32 %v1993_v5, %v1377_v29  ;;  %v158_v10 = vld [vmem:[#allocation3 + $0x328] sm:$0xff]  ;;  %v467_v29 = vld [vmem:[#allocation6 + $0x330] sm:$0xff]  ;;  %v1387_v59 = vmin.f32 %v3317_v28, 1.0 }
  0xcc   :  { %v774_v36 = vsub.f32 %v158_v10, %v466_v20  ;;  %v3325_v46 = vand.u32 2147483647, %v773_v27  ;;  %v1694_v5 = vmul.f32 0.5, %v1386_v49 }
  0xcd   :  { %v2602_v43 = vadd.f32 %v2601_v35, %v2294_v23  ;;  %v1995_v23 = vsub.f32 %v3285_v16, %v1687_v4  ;;  %v2302_v35 = vmul.f32 %v1994_v14, %v1378_v38  ;;  %v159_v16 = vld [vmem:[#allocation3 + $0x330] sm:$0xff]  ;;  %v468_v38 = vld [vmem:[#allocation6 + $0x338] sm:$0xff]  ;;  %v1388_v4 = vmin.f32 %v3321_v37, 1.0 }
  0xce   :  { %v775_v44 = vsub.f32 %v159_v16, %v467_v29  ;;  %v3329_v55 = vand.u32 2147483647, %v774_v36  ;;  %v1695_v14 = vmul.f32 0.5, %v1387_v59 }
  0xcf   :  { %v2603_v47 = vadd.f32 %v2602_v43, %v2295_v32  ;;  %v1996_v32 = vsub.f32 %v3289_v25, %v1688_v13  ;;  %v2303_v43 = vmul.f32 %v1995_v23, %v1379_v48  ;;  %v160_v25 = vld [vmem:[#allocation3 + $0x338] sm:$0xff]  ;;  %v469_v48 = vld [vmem:[#allocation6 + $0x340] sm:$0xff]  ;;  %v1389_v13 = vmin.f32 %v3325_v46, 1.0 }
  0xd0   :  { %v776_v50 = vsub.f32 %v160_v25, %v468_v38  ;;  %v3333_v2 = vand.u32 2147483647, %v775_v44  ;;  %v1696_v23 = vmul.f32 0.5, %v1388_v4 }
  0xd1   :  { %v2604_v57 = vadd.f32 %v2603_v47, %v2296_v41  ;;  %v1997_v41 = vsub.f32 %v3293_v34, %v1689_v22  ;;  %v2304_v47 = vmul.f32 %v1996_v32, %v1380_v56  ;;  %v161_v34 = vld [vmem:[#allocation3 + $0x340] sm:$0xff]  ;;  %v470_v56 = vld [vmem:[#allocation6 + $0x348] sm:$0xff]  ;;  %v1390_v22 = vmin.f32 %v3329_v55, 1.0 }
  0xd2   :  { %v777_v58 = vsub.f32 %v161_v34, %v469_v48  ;;  %v3337_v11 = vand.u32 2147483647, %v776_v50  ;;  %v1697_v32 = vmul.f32 0.5, %v1389_v13 }
  0xd3   :  { %v2605_v62 = vadd.f32 %v2604_v57, %v2297_v52  ;;  %v1998_v52 = vsub.f32 %v3297_v45, %v1690_v31  ;;  %v2305_v57 = vmul.f32 %v1997_v41, %v1381_v3  ;;  %v162_v45 = vld [vmem:[#allocation3 + $0x348] sm:$0xff]  ;;  %v471_v3 = vld [vmem:[#allocation6 + $0x350] sm:$0xff]  ;;  %v1391_v31 = vmin.f32 %v3333_v2, 1.0 }
  0xd4   :  { %v778_v63 = vsub.f32 %v162_v45, %v470_v56  ;;  %v3341_v20 = vand.u32 2147483647, %v777_v58  ;;  %v1698_v41 = vmul.f32 0.5, %v1390_v22 }
  0xd5   :  { %v2606_v7 = vadd.f32 %v2605_v62, %v2298_v61  ;;  %v1999_v61 = vsub.f32 %v3301_v54, %v1691_v40  ;;  %v2306_v62 = vmul.f32 %v1998_v52, %v1382_v12  ;;  %v163_v54 = vld [vmem:[#allocation3 + $0x350] sm:$0xff]  ;;  %v472_v12 = vld [vmem:[#allocation6 + $0x358] sm:$0xff]  ;;  %v1392_v40 = vmin.f32 %v3337_v11, 1.0 }
  0xd6   :  { %v779_v10 = vsub.f32 %v163_v54, %v471_v3  ;;  %v3345_v29 = vand.u32 2147483647, %v778_v63  ;;  %v1699_v52 = vmul.f32 0.5, %v1391_v31 }
  0xd7   :  { %v2607_v15 = vadd.f32 %v2606_v7, %v2299_v6  ;;  %v2000_v6 = vsub.f32 %v3305_v1, %v1692_v51  ;;  %v2307_v7 = vmul.f32 %v1999_v61, %v1383_v21  ;;  %v164_v1 = vld [vmem:[#allocation3 + $0x358] sm:$0xff]  ;;  %v473_v21 = vld [vmem:[#allocation6 + $0x360] sm:$0xff]  ;;  %v1393_v51 = vmin.f32 %v3341_v20, 1.0 }
  0xd8   :  { %v780_v16 = vsub.f32 %v164_v1, %v472_v12  ;;  %v3349_v38 = vand.u32 2147483647, %v779_v10  ;;  %v1700_v61 = vmul.f32 0.5, %v1392_v40 }
  0xd9   :  { %v2608_v24 = vadd.f32 %v2607_v15, %v2300_v17  ;;  %v2001_v17 = vsub.f32 %v3309_v9, %v1693_v60  ;;  %v2308_v15 = vmul.f32 %v2000_v6, %v1384_v30  ;;  %v165_v9 = vld [vmem:[#allocation3 + $0x360] sm:$0xff]  ;;  %v474_v30 = vld [vmem:[#allocation6 + $0x368] sm:$0xff]  ;;  %v1394_v60 = vmin.f32 %v3345_v29, 1.0 }
  0xda   :  { %v781_v25 = vsub.f32 %v165_v9, %v473_v21  ;;  %v3353_v48 = vand.u32 2147483647, %v780_v16  ;;  %v1701_v6 = vmul.f32 0.5, %v1393_v51 }
  0xdb   :  { %v2609_v33 = vadd.f32 %v2608_v24, %v2301_v26  ;;  %v2002_v26 = vsub.f32 %v3313_v19, %v1694_v5  ;;  %v2309_v24 = vmul.f32 %v2001_v17, %v1385_v39  ;;  %v166_v19 = vld [vmem:[#allocation3 + $0x368] sm:$0xff]  ;;  %v475_v39 = vld [vmem:[#allocation6 + $0x370] sm:$0xff]  ;;  %v1395_v5 = vmin.f32 %v3349_v38, 1.0 }
  0xdc   :  { %v782_v34 = vsub.f32 %v166_v19, %v474_v30  ;;  %v3357_v56 = vand.u32 2147483647, %v781_v25  ;;  %v1702_v17 = vmul.f32 0.5, %v1394_v60 }
  0xdd   :  { %v2610_v42 = vadd.f32 %v2609_v33, %v2302_v35  ;;  %v2003_v35 = vsub.f32 %v3317_v28, %v1695_v14  ;;  %v2310_v33 = vmul.f32 %v2002_v26, %v1386_v49  ;;  %v167_v28 = vld [vmem:[#allocation3 + $0x370] sm:$0xff]  ;;  %v476_v49 = vld [vmem:[#allocation6 + $0x378] sm:$0xff]  ;;  %v1396_v14 = vmin.f32 %v3353_v48, 1.0 }
  0xde   :  { %v783_v45 = vsub.f32 %v167_v28, %v475_v39  ;;  %v3361_v3 = vand.u32 2147483647, %v782_v34  ;;  %v1703_v26 = vmul.f32 0.5, %v1395_v5 }
  0xdf   :  { %v2611_v53 = vadd.f32 %v2610_v42, %v2303_v43  ;;  %v2004_v43 = vsub.f32 %v3321_v37, %v1696_v23  ;;  %v2311_v42 = vmul.f32 %v2003_v35, %v1387_v59  ;;  %v168_v37 = vld [vmem:[#allocation3 + $0x378] sm:$0xff]  ;;  %v477_v59 = vld [vmem:[#allocation6 + $0x380] sm:$0xff]  ;;  %v1397_v23 = vmin.f32 %v3357_v56, 1.0 }
  0xe0   :  { %v784_v54 = vsub.f32 %v168_v37, %v476_v49  ;;  %v3365_v12 = vand.u32 2147483647, %v783_v45  ;;  %v1704_v35 = vmul.f32 0.5, %v1396_v14 }
  0xe1   :  { %v2612_v0 = vadd.f32 %v2611_v53, %v2304_v47  ;;  %v2005_v47 = vsub.f32 %v3325_v46, %v1697_v32  ;;  %v2312_v53 = vmul.f32 %v2004_v43, %v1388_v4  ;;  %v169_v46 = vld [vmem:[#allocation3 + $0x380] sm:$0xff]  ;;  %v478_v4 = vld [vmem:[#allocation6 + $0x388] sm:$0xff]  ;;  %v1398_v32 = vmin.f32 %v3361_v3, 1.0 }
  0xe2   :  { %v785_v1 = vsub.f32 %v169_v46, %v477_v59  ;;  %v3369_v21 = vand.u32 2147483647, %v784_v54  ;;  %v1705_v43 = vmul.f32 0.5, %v1397_v23 }
  0xe3   :  { %v2613_v8 = vadd.f32 %v2612_v0, %v2305_v57  ;;  %v2006_v57 = vsub.f32 %v3329_v55, %v1698_v41  ;;  %v2313_v0 = vmul.f32 %v2005_v47, %v1389_v13  ;;  %v170_v55 = vld [vmem:[#allocation3 + $0x388] sm:$0xff]  ;;  %v479_v13 = vld [vmem:[#allocation6 + $0x390] sm:$0xff]  ;;  %v1399_v41 = vmin.f32 %v3365_v12, 1.0 }
  0xe4   :  { %v786_v9 = vsub.f32 %v170_v55, %v478_v4  ;;  %v3373_v30 = vand.u32 2147483647, %v785_v1  ;;  %v1706_v47 = vmul.f32 0.5, %v1398_v32 }
  0xe5   :  { %v2614_v18 = vadd.f32 %v2613_v8, %v2306_v62  ;;  %v2007_v62 = vsub.f32 %v3333_v2, %v1699_v52  ;;  %v2314_v8 = vmul.f32 %v2006_v57, %v1390_v22  ;;  %v171_v2 = vld [vmem:[#allocation3 + $0x390] sm:$0xff]  ;;  %v480_v22 = vld [vmem:[#allocation6 + $0x398] sm:$0xff]  ;;  %v1400_v52 = vmin.f32 %v3369_v21, 1.0 }
  0xe6   :  { %v787_v19 = vsub.f32 %v171_v2, %v479_v13  ;;  %v3377_v39 = vand.u32 2147483647, %v786_v9  ;;  %v1707_v57 = vmul.f32 0.5, %v1399_v41 }
  0xe7   :  { %v2615_v27 = vadd.f32 %v2614_v18, %v2307_v7  ;;  %v2008_v7 = vsub.f32 %v3337_v11, %v1700_v61  ;;  %v2315_v18 = vmul.f32 %v2007_v62, %v1391_v31  ;;  %v172_v11 = vld [vmem:[#allocation3 + $0x398] sm:$0xff]  ;;  %v481_v31 = vld [vmem:[#allocation6 + $0x3a0] sm:$0xff]  ;;  %v1401_v61 = vmin.f32 %v3373_v30, 1.0 }
  0xe8   :  { %v788_v28 = vsub.f32 %v172_v11, %v480_v22  ;;  %v3381_v49 = vand.u32 2147483647, %v787_v19  ;;  %v1708_v62 = vmul.f32 0.5, %v1400_v52 }
  0xe9   :  { %v2616_v36 = vadd.f32 %v2615_v27, %v2308_v15  ;;  %v2009_v15 = vsub.f32 %v3341_v20, %v1701_v6  ;;  %v2316_v27 = vmul.f32 %v2008_v7, %v1392_v40  ;;  %v173_v20 = vld [vmem:[#allocation3 + $0x3a0] sm:$0xff]  ;;  %v482_v40 = vld [vmem:[#allocation6 + $0x3a8] sm:$0xff]  ;;  %v1402_v6 = vmin.f32 %v3377_v39, 1.0 }
  0xea   :  { %v789_v37 = vsub.f32 %v173_v20, %v481_v31  ;;  %v3385_v59 = vand.u32 2147483647, %v788_v28  ;;  %v1709_v7 = vmul.f32 0.5, %v1401_v61 }
  0xeb   :  { %v2617_v44 = vadd.f32 %v2616_v36, %v2309_v24  ;;  %v2010_v24 = vsub.f32 %v3345_v29, %v1702_v17  ;;  %v2317_v36 = vmul.f32 %v2009_v15, %v1393_v51  ;;  %v174_v29 = vld [vmem:[#allocation3 + $0x3a8] sm:$0xff]  ;;  %v483_v51 = vld [vmem:[#allocation6 + $0x3b0] sm:$0xff]  ;;  %v1403_v17 = vmin.f32 %v3381_v49, 1.0 }
  0xec   :  { %v790_v46 = vsub.f32 %v174_v29, %v482_v40  ;;  %v3389_v4 = vand.u32 2147483647, %v789_v37  ;;  %v1710_v15 = vmul.f32 0.5, %v1402_v6 }
  0xed   :  { %v2618_v50 = vadd.f32 %v2617_v44, %v2310_v33  ;;  %v2011_v33 = vsub.f32 %v3349_v38, %v1703_v26  ;;  %v2318_v44 = vmul.f32 %v2010_v24, %v1394_v60  ;;  %v175_v38 = vld [vmem:[#allocation3 + $0x3b0] sm:$0xff]  ;;  %v484_v60 = vld [vmem:[#allocation6 + $0x3b8] sm:$0xff]  ;;  %v1404_v26 = vmin.f32 %v3385_v59, 1.0 }
  0xee   :  { %v791_v55 = vsub.f32 %v175_v38, %v483_v51  ;;  %v3393_v13 = vand.u32 2147483647, %v790_v46  ;;  %v1711_v24 = vmul.f32 0.5, %v1403_v17 }
  0xef   :  { %v2619_v58 = vadd.f32 %v2618_v50, %v2311_v42  ;;  %v2012_v42 = vsub.f32 %v3353_v48, %v1704_v35  ;;  %v2319_v50 = vmul.f32 %v2011_v33, %v1395_v5  ;;  %v176_v48 = vld [vmem:[#allocation3 + $0x3b8] sm:$0xff]  ;;  %v485_v5 = vld [vmem:[#allocation6 + $0x3c0] sm:$0xff]  ;;  %v1405_v35 = vmin.f32 %v3389_v4, 1.0 }
  0xf0   :  { %v792_v2 = vsub.f32 %v176_v48, %v484_v60  ;;  %v3397_v22 = vand.u32 2147483647, %v791_v55  ;;  %v1712_v33 = vmul.f32 0.5, %v1404_v26 }
  0xf1   :  { %v2620_v63 = vadd.f32 %v2619_v58, %v2312_v53  ;;  %v2013_v53 = vsub.f32 %v3357_v56, %v1705_v43  ;;  %v2320_v58 = vmul.f32 %v2012_v42, %v1396_v14  ;;  %v177_v56 = vld [vmem:[#allocation3 + $0x3c0] sm:$0xff]  ;;  %v486_v14 = vld [vmem:[#allocation6 + $0x3c8] sm:$0xff]  ;;  %v1406_v43 = vmin.f32 %v3393_v13, 1.0 }
  0xf2   :  { %v793_v11 = vsub.f32 %v177_v56, %v485_v5  ;;  %v3401_v31 = vand.u32 2147483647, %v792_v2  ;;  %v1713_v42 = vmul.f32 0.5, %v1405_v35 }
  0xf3   :  { %v2621_v10 = vadd.f32 %v2620_v63, %v2313_v0  ;;  %v2014_v0 = vsub.f32 %v3361_v3, %v1706_v47  ;;  %v2321_v63 = vmul.f32 %v2013_v53, %v1397_v23  ;;  %v178_v3 = vld [vmem:[#allocation3 + $0x3c8] sm:$0xff]  ;;  %v487_v23 = vld [vmem:[#allocation6 + $0x3d0] sm:$0xff]  ;;  %v1407_v47 = vmin.f32 %v3397_v22, 1.0 }
  0xf4   :  { %v794_v20 = vsub.f32 %v178_v3, %v486_v14  ;;  %v3405_v40 = vand.u32 2147483647, %v793_v11  ;;  %v1714_v53 = vmul.f32 0.5, %v1406_v43 }
  0xf5   :  { %v2622_v16 = vadd.f32 %v2621_v10, %v2314_v8  ;;  %v2015_v8 = vsub.f32 %v3365_v12, %v1707_v57  ;;  %v2322_v10 = vmul.f32 %v2014_v0, %v1398_v32  ;;  %v179_v12 = vld [vmem:[#allocation3 + $0x3d0] sm:$0xff]  ;;  %v488_v32 = vld [vmem:[#allocation6 + $0x3d8] sm:$0xff]  ;;  %v1408_v57 = vmin.f32 %v3401_v31, 1.0 }
  0xf6   :  { %v795_v29 = vsub.f32 %v179_v12, %v487_v23  ;;  %v3409_v51 = vand.u32 2147483647, %v794_v20  ;;  %v1715_v0 = vmul.f32 0.5, %v1407_v47 }
  0xf7   :  { %v2623_v25 = vadd.f32 %v2622_v16, %v2315_v18  ;;  %v2016_v18 = vsub.f32 %v3369_v21, %v1708_v62  ;;  %v2323_v16 = vmul.f32 %v2015_v8, %v1399_v41  ;;  %v180_v21 = vld [vmem:[#allocation3 + $0x3d8] sm:$0xff]  ;;  %v489_v41 = vld [vmem:[#allocation6 + $0x3e0] sm:$0xff]  ;;  %v1409_v62 = vmin.f32 %v3405_v40, 1.0 }
  0xf8   :  { %v796_v38 = vsub.f32 %v180_v21, %v488_v32  ;;  %v3413_v60 = vand.u32 2147483647, %v795_v29  ;;  %v1716_v8 = vmul.f32 0.5, %v1408_v57 }
  0xf9   :  { %v2624_v34 = vadd.f32 %v2623_v25, %v2316_v27  ;;  %v2017_v27 = vsub.f32 %v3373_v30, %v1709_v7  ;;  %v2324_v25 = vmul.f32 %v2016_v18, %v1400_v52  ;;  %v181_v30 = vld [vmem:[#allocation3 + $0x3e0] sm:$0xff]  ;;  %v490_v52 = vld [vmem:[#allocation6 + $0x3e8] sm:$0xff]  ;;  %v1410_v7 = vmin.f32 %v3409_v51, 1.0 }
  0xfa   :  { %v797_v48 = vsub.f32 %v181_v30, %v489_v41  ;;  %v3417_v5 = vand.u32 2147483647, %v796_v38  ;;  %v1717_v18 = vmul.f32 0.5, %v1409_v62 }
  0xfb   :  { %v2625_v45 = vadd.f32 %v2624_v34, %v2317_v36  ;;  %v2018_v36 = vsub.f32 %v3377_v39, %v1710_v15  ;;  %v2325_v34 = vmul.f32 %v2017_v27, %v1401_v61  ;;  %v182_v39 = vld [vmem:[#allocation3 + $0x3e8] sm:$0xff]  ;;  %v491_v61 = vld [vmem:[#allocation6 + $0x3f0] sm:$0xff]  ;;  %v1411_v15 = vmin.f32 %v3413_v60, 1.0 }
  0xfc   :  { %v798_v56 = vsub.f32 %v182_v39, %v490_v52  ;;  %v3421_v14 = vand.u32 2147483647, %v797_v48  ;;  %v1718_v27 = vmul.f32 0.5, %v1410_v7 }
  0xfd   :  { %v2626_v54 = vadd.f32 %v2625_v45, %v2318_v44  ;;  %v2019_v44 = vsub.f32 %v3381_v49, %v1711_v24  ;;  %v2326_v45 = vmul.f32 %v2018_v36, %v1402_v6  ;;  %v183_v49 = vld [vmem:[#allocation3 + $0x3f0] sm:$0xff]  ;;  %v492_v6 = vld [vmem:[#allocation6 + $0x3f8] sm:$0xff]  ;;  %v1412_v24 = vmin.f32 %v3417_v5, 1.0 }
  0xfe   :  { %v799_v3 = vsub.f32 %v183_v49, %v491_v61  ;;  %v3425_v23 = vand.u32 2147483647, %v798_v56  ;;  %v1719_v36 = vmul.f32 0.5, %v1411_v15 }
  0xff   :  { %v2627_v1 = vadd.f32 %v2626_v54, %v2319_v50  ;;  %v2020_v50 = vsub.f32 %v3385_v59, %v1712_v33  ;;  %v2327_v54 = vmul.f32 %v2019_v44, %v1403_v17  ;;  %v184_v59 = vld [vmem:[#allocation3 + $0x3f8] sm:$0xff]  ;;  %v493_v17 = vld [vmem:[#allocation6 + $0x400] sm:$0xff]  ;;  %v1413_v33 = vmin.f32 %v3421_v14, 1.0 }
 0x100   :  { %v800_v12 = vsub.f32 %v184_v59, %v492_v6  ;;  %v3429_v32 = vand.u32 2147483647, %v799_v3  ;;  %v1720_v44 = vmul.f32 0.5, %v1412_v24 }
 0x101   :  { %v2628_v9 = vadd.f32 %v2627_v1, %v2320_v58  ;;  %v2021_v58 = vsub.f32 %v3389_v4, %v1713_v42  ;;  %v2328_v1 = vmul.f32 %v2020_v50, %v1404_v26  ;;  %v185_v4 = vld [vmem:[#allocation3 + $0x400] sm:$0xff]  ;;  %v494_v26 = vld [vmem:[#allocation6 + $0x408] sm:$0xff]  ;;  %v1414_v42 = vmin.f32 %v3425_v23, 1.0 }
 0x102   :  { %v801_v21 = vsub.f32 %v185_v4, %v493_v17  ;;  %v3433_v41 = vand.u32 2147483647, %v800_v12  ;;  %v1721_v50 = vmul.f32 0.5, %v1413_v33 }
 0x103   :  { %v2629_v19 = vadd.f32 %v2628_v9, %v2321_v63  ;;  %v2022_v63 = vsub.f32 %v3393_v13, %v1714_v53  ;;  %v2329_v9 = vmul.f32 %v2021_v58, %v1405_v35  ;;  %v186_v13 = vld [vmem:[#allocation3 + $0x408] sm:$0xff]  ;;  %v495_v35 = vld [vmem:[#allocation6 + $0x410] sm:$0xff]  ;;  %v1415_v53 = vmin.f32 %v3429_v32, 1.0 }
 0x104   :  { %v802_v30 = vsub.f32 %v186_v13, %v494_v26  ;;  %v3437_v52 = vand.u32 2147483647, %v801_v21  ;;  %v1722_v58 = vmul.f32 0.5, %v1414_v42 }
 0x105   :  { %v2630_v28 = vadd.f32 %v2629_v19, %v2322_v10  ;;  %v2023_v10 = vsub.f32 %v3397_v22, %v1715_v0  ;;  %v2330_v19 = vmul.f32 %v2022_v63, %v1406_v43  ;;  %v187_v22 = vld [vmem:[#allocation3 + $0x410] sm:$0xff]  ;;  %v496_v43 = vld [vmem:[#allocation6 + $0x418] sm:$0xff]  ;;  %v1416_v0 = vmin.f32 %v3433_v41, 1.0 }
 0x106   :  { %v803_v39 = vsub.f32 %v187_v22, %v495_v35  ;;  %v3441_v61 = vand.u32 2147483647, %v802_v30  ;;  %v1723_v63 = vmul.f32 0.5, %v1415_v53 }
 0x107   :  { %v2631_v37 = vadd.f32 %v2630_v28, %v2323_v16  ;;  %v2024_v16 = vsub.f32 %v3401_v31, %v1716_v8  ;;  %v2331_v28 = vmul.f32 %v2023_v10, %v1407_v47  ;;  %v188_v31 = vld [vmem:[#allocation3 + $0x418] sm:$0xff]  ;;  %v497_v47 = vld [vmem:[#allocation6 + $0x420] sm:$0xff]  ;;  %v1417_v8 = vmin.f32 %v3437_v52, 1.0 }
 0x108   :  { %v804_v49 = vsub.f32 %v188_v31, %v496_v43  ;;  %v3445_v6 = vand.u32 2147483647, %v803_v39  ;;  %v1724_v10 = vmul.f32 0.5, %v1416_v0 }
 0x109   :  { %v2632_v46 = vadd.f32 %v2631_v37, %v2324_v25  ;;  %v2025_v25 = vsub.f32 %v3405_v40, %v1717_v18  ;;  %v2332_v37 = vmul.f32 %v2024_v16, %v1408_v57  ;;  %v189_v40 = vld [vmem:[#allocation3 + $0x420] sm:$0xff]  ;;  %v498_v57 = vld [vmem:[#allocation6 + $0x428] sm:$0xff]  ;;  %v1418_v18 = vmin.f32 %v3441_v61, 1.0 }
 0x10a   :  { %v805_v59 = vsub.f32 %v189_v40, %v497_v47  ;;  %v3449_v17 = vand.u32 2147483647, %v804_v49  ;;  %v1725_v16 = vmul.f32 0.5, %v1417_v8 }
 0x10b   :  { %v2633_v55 = vadd.f32 %v2632_v46, %v2325_v34  ;;  %v2026_v34 = vsub.f32 %v3409_v51, %v1718_v27  ;;  %v2333_v46 = vmul.f32 %v2025_v25, %v1409_v62  ;;  %v190_v51 = vld [vmem:[#allocation3 + $0x428] sm:$0xff]  ;;  %v499_v62 = vld [vmem:[#allocation6 + $0x430] sm:$0xff]  ;;  %v1419_v27 = vmin.f32 %v3445_v6, 1.0 }
 0x10c   :  { %v806_v4 = vsub.f32 %v190_v51, %v498_v57  ;;  %v3453_v26 = vand.u32 2147483647, %v805_v59  ;;  %v1726_v25 = vmul.f32 0.5, %v1418_v18 }
 0x10d   :  { %v2634_v2 = vadd.f32 %v2633_v55, %v2326_v45  ;;  %v2027_v45 = vsub.f32 %v3413_v60, %v1719_v36  ;;  %v2334_v55 = vmul.f32 %v2026_v34, %v1410_v7  ;;  %v191_v60 = vld [vmem:[#allocation3 + $0x430] sm:$0xff]  ;;  %v500_v7 = vld [vmem:[#allocation6 + $0x438] sm:$0xff]  ;;  %v1420_v36 = vmin.f32 %v3449_v17, 1.0 }
 0x10e   :  { %v807_v13 = vsub.f32 %v191_v60, %v499_v62  ;;  %v3457_v35 = vand.u32 2147483647, %v806_v4  ;;  %v1727_v34 = vmul.f32 0.5, %v1419_v27 }
 0x10f   :  { %v2635_v11 = vadd.f32 %v2634_v2, %v2327_v54  ;;  %v2028_v54 = vsub.f32 %v3417_v5, %v1720_v44  ;;  %v2335_v2 = vmul.f32 %v2027_v45, %v1411_v15  ;;  %v192_v5 = vld [vmem:[#allocation3 + $0x438] sm:$0xff]  ;;  %v501_v15 = vld [vmem:[#allocation6 + $0x440] sm:$0xff]  ;;  %v1421_v44 = vmin.f32 %v3453_v26, 1.0 }
 0x110   :  { %v808_v22 = vsub.f32 %v192_v5, %v500_v7  ;;  %v3461_v43 = vand.u32 2147483647, %v807_v13  ;;  %v1728_v45 = vmul.f32 0.5, %v1420_v36 }
 0x111   :  { %v2636_v20 = vadd.f32 %v2635_v11, %v2328_v1  ;;  %v2029_v1 = vsub.f32 %v3421_v14, %v1721_v50  ;;  %v2336_v11 = vmul.f32 %v2028_v54, %v1412_v24  ;;  %v193_v14 = vld [vmem:[#allocation3 + $0x440] sm:$0xff]  ;;  %v502_v24 = vld [vmem:[#allocation6 + $0x448] sm:$0xff]  ;;  %v1422_v50 = vmin.f32 %v3457_v35, 1.0 }
 0x112   :  { %v809_v31 = vsub.f32 %v193_v14, %v501_v15  ;;  %v3465_v47 = vand.u32 2147483647, %v808_v22  ;;  %v1729_v54 = vmul.f32 0.5, %v1421_v44 }
 0x113   :  { %v2637_v29 = vadd.f32 %v2636_v20, %v2329_v9  ;;  %v2030_v9 = vsub.f32 %v3425_v23, %v1722_v58  ;;  %v2337_v20 = vmul.f32 %v2029_v1, %v1413_v33  ;;  %v194_v23 = vld [vmem:[#allocation3 + $0x448] sm:$0xff]  ;;  %v503_v33 = vld [vmem:[#allocation6 + $0x450] sm:$0xff]  ;;  %v1423_v58 = vmin.f32 %v3461_v43, 1.0 }
 0x114   :  { %v810_v40 = vsub.f32 %v194_v23, %v502_v24  ;;  %v3469_v57 = vand.u32 2147483647, %v809_v31  ;;  %v1730_v1 = vmul.f32 0.5, %v1422_v50 }
 0x115   :  { %v2638_v38 = vadd.f32 %v2637_v29, %v2330_v19  ;;  %v2031_v19 = vsub.f32 %v3429_v32, %v1723_v63  ;;  %v2338_v29 = vmul.f32 %v2030_v9, %v1414_v42  ;;  %v195_v32 = vld [vmem:[#allocation3 + $0x450] sm:$0xff]  ;;  %v504_v42 = vld [vmem:[#allocation6 + $0x458] sm:$0xff]  ;;  %v1424_v63 = vmin.f32 %v3465_v47, 1.0 }
 0x116   :  { %v811_v51 = vsub.f32 %v195_v32, %v503_v33  ;;  %v3473_v62 = vand.u32 2147483647, %v810_v40  ;;  %v1731_v9 = vmul.f32 0.5, %v1423_v58 }
 0x117   :  { %v2639_v48 = vadd.f32 %v2638_v38, %v2331_v28  ;;  %v2032_v28 = vsub.f32 %v3433_v41, %v1724_v10  ;;  %v2339_v38 = vmul.f32 %v2031_v19, %v1415_v53  ;;  %v196_v41 = vld [vmem:[#allocation3 + $0x458] sm:$0xff]  ;;  %v505_v53 = vld [vmem:[#allocation6 + $0x460] sm:$0xff]  ;;  %v1425_v10 = vmin.f32 %v3469_v57, 1.0 }
 0x118   :  { %v812_v60 = vsub.f32 %v196_v41, %v504_v42  ;;  %v3477_v7 = vand.u32 2147483647, %v811_v51  ;;  %v1732_v19 = vmul.f32 0.5, %v1424_v63 }
 0x119   :  { %v2640_v56 = vadd.f32 %v2639_v48, %v2332_v37  ;;  %v2033_v37 = vsub.f32 %v3437_v52, %v1725_v16  ;;  %v2340_v48 = vmul.f32 %v2032_v28, %v1416_v0  ;;  %v197_v52 = vld [vmem:[#allocation3 + $0x460] sm:$0xff]  ;;  %v506_v0 = vld [vmem:[#allocation6 + $0x468] sm:$0xff]  ;;  %v1426_v16 = vmin.f32 %v3473_v62, 1.0 }
 0x11a   :  { %v813_v5 = vsub.f32 %v197_v52, %v505_v53  ;;  %v3481_v15 = vand.u32 2147483647, %v812_v60  ;;  %v1733_v28 = vmul.f32 0.5, %v1425_v10 }
 0x11b   :  { %v2641_v3 = vadd.f32 %v2640_v56, %v2333_v46  ;;  %v2034_v46 = vsub.f32 %v3441_v61, %v1726_v25  ;;  %v2341_v56 = vmul.f32 %v2033_v37, %v1417_v8  ;;  %v198_v61 = vld [vmem:[#allocation3 + $0x468] sm:$0xff]  ;;  %v507_v8 = vld [vmem:[#allocation6 + $0x470] sm:$0xff]  ;;  %v1427_v25 = vmin.f32 %v3477_v7, 1.0 }
 0x11c   :  { %v814_v14 = vsub.f32 %v198_v61, %v506_v0  ;;  %v3485_v24 = vand.u32 2147483647, %v813_v5  ;;  %v1734_v37 = vmul.f32 0.5, %v1426_v16 }
 0x11d   :  { %v2642_v12 = vadd.f32 %v2641_v3, %v2334_v55  ;;  %v2035_v55 = vsub.f32 %v3445_v6, %v1727_v34  ;;  %v2342_v3 = vmul.f32 %v2034_v46, %v1418_v18  ;;  %v199_v6 = vld [vmem:[#allocation3 + $0x470] sm:$0xff]  ;;  %v508_v18 = vld [vmem:[#allocation6 + $0x478] sm:$0xff]  ;;  %v1428_v34 = vmin.f32 %v3481_v15, 1.0 }
 0x11e   :  { %v815_v23 = vsub.f32 %v199_v6, %v507_v8  ;;  %v3489_v33 = vand.u32 2147483647, %v814_v14  ;;  %v1735_v46 = vmul.f32 0.5, %v1427_v25 }
 0x11f   :  { %v2643_v21 = vadd.f32 %v2642_v12, %v2335_v2  ;;  %v2036_v2 = vsub.f32 %v3449_v17, %v1728_v45  ;;  %v2343_v12 = vmul.f32 %v2035_v55, %v1419_v27  ;;  %v200_v17 = vld [vmem:[#allocation3 + $0x478] sm:$0xff]  ;;  %v509_v27 = vld [vmem:[#allocation6 + $0x480] sm:$0xff]  ;;  %v1429_v45 = vmin.f32 %v3485_v24, 1.0 }
 0x120   :  { %v816_v32 = vsub.f32 %v200_v17, %v508_v18  ;;  %v3493_v42 = vand.u32 2147483647, %v815_v23  ;;  %v1736_v55 = vmul.f32 0.5, %v1428_v34 }
 0x121   :  { %v2644_v30 = vadd.f32 %v2643_v21, %v2336_v11  ;;  %v2037_v11 = vsub.f32 %v3453_v26, %v1729_v54  ;;  %v2344_v21 = vmul.f32 %v2036_v2, %v1420_v36  ;;  %v201_v26 = vld [vmem:[#allocation3 + $0x480] sm:$0xff]  ;;  %v510_v36 = vld [vmem:[#allocation6 + $0x488] sm:$0xff]  ;;  %v1430_v54 = vmin.f32 %v3489_v33, 1.0 }
 0x122   :  { %v817_v41 = vsub.f32 %v201_v26, %v509_v27  ;;  %v3497_v53 = vand.u32 2147483647, %v816_v32  ;;  %v1737_v2 = vmul.f32 0.5, %v1429_v45 }
 0x123   :  { %v2645_v39 = vadd.f32 %v2644_v30, %v2337_v20  ;;  %v2038_v20 = vsub.f32 %v3457_v35, %v1730_v1  ;;  %v2345_v30 = vmul.f32 %v2037_v11, %v1421_v44  ;;  %v202_v35 = vld [vmem:[#allocation3 + $0x488] sm:$0xff]  ;;  %v511_v44 = vld [vmem:[#allocation6 + $0x490] sm:$0xff]  ;;  %v1431_v1 = vmin.f32 %v3493_v42, 1.0 }
 0x124   :  { %v818_v52 = vsub.f32 %v202_v35, %v510_v36  ;;  %v3501_v0 = vand.u32 2147483647, %v817_v41  ;;  %v1738_v11 = vmul.f32 0.5, %v1430_v54 }
 0x125   :  { %v2646_v49 = vadd.f32 %v2645_v39, %v2338_v29  ;;  %v2039_v29 = vsub.f32 %v3461_v43, %v1731_v9  ;;  %v2346_v39 = vmul.f32 %v2038_v20, %v1422_v50  ;;  %v203_v43 = vld [vmem:[#allocation3 + $0x490] sm:$0xff]  ;;  %v512_v50 = vld [vmem:[#allocation6 + $0x498] sm:$0xff]  ;;  %v1432_v9 = vmin.f32 %v3497_v53, 1.0 }
 0x126   :  { %v819_v61 = vsub.f32 %v203_v43, %v511_v44  ;;  %v3505_v8 = vand.u32 2147483647, %v818_v52  ;;  %v1739_v20 = vmul.f32 0.5, %v1431_v1 }
 0x127   :  { %v2647_v59 = vadd.f32 %v2646_v49, %v2339_v38  ;;  %v2040_v38 = vsub.f32 %v3465_v47, %v1732_v19  ;;  %v2347_v49 = vmul.f32 %v2039_v29, %v1423_v58  ;;  %v204_v47 = vld [vmem:[#allocation3 + $0x498] sm:$0xff]  ;;  %v513_v58 = vld [vmem:[#allocation6 + $0x4a0] sm:$0xff]  ;;  %v1433_v19 = vmin.f32 %v3501_v0, 1.0 }
 0x128   :  { %v820_v6 = vsub.f32 %v204_v47, %v512_v50  ;;  %v3509_v18 = vand.u32 2147483647, %v819_v61  ;;  %v1740_v29 = vmul.f32 0.5, %v1432_v9 }
 0x129   :  { %v2648_v4 = vadd.f32 %v2647_v59, %v2340_v48  ;;  %v2041_v48 = vsub.f32 %v3469_v57, %v1733_v28  ;;  %v2348_v59 = vmul.f32 %v2040_v38, %v1424_v63  ;;  %v205_v57 = vld [vmem:[#allocation3 + $0x4a0] sm:$0xff]  ;;  %v514_v63 = vld [vmem:[#allocation6 + $0x4a8] sm:$0xff]  ;;  %v1434_v28 = vmin.f32 %v3505_v8, 1.0 }
 0x12a   :  { %v821_v17 = vsub.f32 %v205_v57, %v513_v58  ;;  %v3513_v27 = vand.u32 2147483647, %v820_v6  ;;  %v1741_v38 = vmul.f32 0.5, %v1433_v19 }
 0x12b   :  { %v2649_v13 = vadd.f32 %v2648_v4, %v2341_v56  ;;  %v2042_v56 = vsub.f32 %v3473_v62, %v1734_v37  ;;  %v2349_v4 = vmul.f32 %v2041_v48, %v1425_v10  ;;  %v206_v62 = vld [vmem:[#allocation3 + $0x4a8] sm:$0xff]  ;;  %v515_v10 = vld [vmem:[#allocation6 + $0x4b0] sm:$0xff]  ;;  %v1435_v37 = vmin.f32 %v3509_v18, 1.0 }
 0x12c   :  { %v822_v26 = vsub.f32 %v206_v62, %v514_v63  ;;  %v3517_v36 = vand.u32 2147483647, %v821_v17  ;;  %v1742_v48 = vmul.f32 0.5, %v1434_v28 }
 0x12d   :  { %v2650_v22 = vadd.f32 %v2649_v13, %v2342_v3  ;;  %v2043_v3 = vsub.f32 %v3477_v7, %v1735_v46  ;;  %v2350_v13 = vmul.f32 %v2042_v56, %v1426_v16  ;;  %v207_v7 = vld [vmem:[#allocation3 + $0x4b0] sm:$0xff]  ;;  %v516_v16 = vld [vmem:[#allocation6 + $0x4b8] sm:$0xff]  ;;  %v1436_v46 = vmin.f32 %v3513_v27, 1.0 }
 0x12e   :  { %v823_v35 = vsub.f32 %v207_v7, %v515_v10  ;;  %v3521_v44 = vand.u32 2147483647, %v822_v26  ;;  %v1743_v56 = vmul.f32 0.5, %v1435_v37 }
 0x12f   :  { %v2651_v31 = vadd.f32 %v2650_v22, %v2343_v12  ;;  %v2044_v12 = vsub.f32 %v3481_v15, %v1736_v55  ;;  %v2351_v22 = vmul.f32 %v2043_v3, %v1427_v25  ;;  %v208_v15 = vld [vmem:[#allocation3 + $0x4b8] sm:$0xff]  ;;  %v517_v25 = vld [vmem:[#allocation6 + $0x4c0] sm:$0xff]  ;;  %v1437_v55 = vmin.f32 %v3517_v36, 1.0 }
 0x130   :  { %v824_v43 = vsub.f32 %v208_v15, %v516_v16  ;;  %v3525_v50 = vand.u32 2147483647, %v823_v35  ;;  %v1744_v3 = vmul.f32 0.5, %v1436_v46 }
 0x131   :  { %v2652_v40 = vadd.f32 %v2651_v31, %v2344_v21  ;;  %v2045_v21 = vsub.f32 %v3485_v24, %v1737_v2  ;;  %v2352_v31 = vmul.f32 %v2044_v12, %v1428_v34  ;;  %v209_v24 = vld [vmem:[#allocation3 + $0x4c0] sm:$0xff]  ;;  %v518_v34 = vld [vmem:[#allocation6 + $0x4c8] sm:$0xff]  ;;  %v1438_v2 = vmin.f32 %v3521_v44, 1.0 }
 0x132   :  { %v825_v47 = vsub.f32 %v209_v24, %v517_v25  ;;  %v3529_v58 = vand.u32 2147483647, %v824_v43  ;;  %v1745_v12 = vmul.f32 0.5, %v1437_v55 }
 0x133   :  { %v2653_v51 = vadd.f32 %v2652_v40, %v2345_v30  ;;  %v2046_v30 = vsub.f32 %v3489_v33, %v1738_v11  ;;  %v2353_v40 = vmul.f32 %v2045_v21, %v1429_v45  ;;  %v210_v33 = vld [vmem:[#allocation3 + $0x4c8] sm:$0xff]  ;;  %v519_v45 = vld [vmem:[#allocation6 + $0x4d0] sm:$0xff]  ;;  %v1439_v11 = vmin.f32 %v3525_v50, 1.0 }
 0x134   :  { %v826_v57 = vsub.f32 %v210_v33, %v518_v34  ;;  %v3533_v63 = vand.u32 2147483647, %v825_v47  ;;  %v1746_v21 = vmul.f32 0.5, %v1438_v2 }
 0x135   :  { %v2654_v60 = vadd.f32 %v2653_v51, %v2346_v39  ;;  %v2047_v39 = vsub.f32 %v3493_v42, %v1739_v20  ;;  %v2354_v51 = vmul.f32 %v2046_v30, %v1430_v54  ;;  %v211_v42 = vld [vmem:[#allocation3 + $0x4d0] sm:$0xff]  ;;  %v520_v54 = vld [vmem:[#allocation6 + $0x4d8] sm:$0xff]  ;;  %v1440_v20 = vmin.f32 %v3529_v58, 1.0 }
 0x136   :  { %v827_v62 = vsub.f32 %v211_v42, %v519_v45  ;;  %v3537_v10 = vand.u32 2147483647, %v826_v57  ;;  %v1747_v30 = vmul.f32 0.5, %v1439_v11 }
 0x137   :  { %v2655_v5 = vadd.f32 %v2654_v60, %v2347_v49  ;;  %v2048_v49 = vsub.f32 %v3497_v53, %v1740_v29  ;;  %v2355_v60 = vmul.f32 %v2047_v39, %v1431_v1  ;;  %v212_v53 = vld [vmem:[#allocation3 + $0x4d8] sm:$0xff]  ;;  %v521_v1 = vld [vmem:[#allocation6 + $0x4e0] sm:$0xff]  ;;  %v1441_v29 = vmin.f32 %v3533_v63, 1.0 }
 0x138   :  { %v828_v7 = vsub.f32 %v212_v53, %v520_v54  ;;  %v3541_v16 = vand.u32 2147483647, %v827_v62  ;;  %v1748_v39 = vmul.f32 0.5, %v1440_v20 }
 0x139   :  { %v2656_v14 = vadd.f32 %v2655_v5, %v2348_v59  ;;  %v2049_v59 = vsub.f32 %v3501_v0, %v1741_v38  ;;  %v2356_v5 = vmul.f32 %v2048_v49, %v1432_v9  ;;  %v213_v0 = vld [vmem:[#allocation3 + $0x4e0] sm:$0xff]  ;;  %v522_v9 = vld [vmem:[#allocation6 + $0x4e8] sm:$0xff]  ;;  %v1442_v38 = vmin.f32 %v3537_v10, 1.0 }
 0x13a   :  { %v829_v15 = vsub.f32 %v213_v0, %v521_v1  ;;  %v3545_v25 = vand.u32 2147483647, %v828_v7  ;;  %v1749_v49 = vmul.f32 0.5, %v1441_v29 }
 0x13b   :  { %v2657_v23 = vadd.f32 %v2656_v14, %v2349_v4  ;;  %v2050_v4 = vsub.f32 %v3505_v8, %v1742_v48  ;;  %v2357_v14 = vmul.f32 %v2049_v59, %v1433_v19  ;;  %v214_v8 = vld [vmem:[#allocation3 + $0x4e8] sm:$0xff]  ;;  %v523_v19 = vld [vmem:[#allocation6 + $0x4f0] sm:$0xff]  ;;  %v1443_v48 = vmin.f32 %v3541_v16, 1.0 }
 0x13c   :  { %v830_v24 = vsub.f32 %v214_v8, %v522_v9  ;;  %v3549_v34 = vand.u32 2147483647, %v829_v15  ;;  %v1750_v59 = vmul.f32 0.5, %v1442_v38 }
 0x13d   :  { %v2658_v32 = vadd.f32 %v2657_v23, %v2350_v13  ;;  %v2051_v13 = vsub.f32 %v3509_v18, %v1743_v56  ;;  %v2358_v23 = vmul.f32 %v2050_v4, %v1434_v28  ;;  %v215_v18 = vld [vmem:[#allocation3 + $0x4f0] sm:$0xff]  ;;  %v524_v28 = vld [vmem:[#allocation6 + $0x4f8] sm:$0xff]  ;;  %v1444_v56 = vmin.f32 %v3545_v25, 1.0 }
 0x13e   :  { %v831_v33 = vsub.f32 %v215_v18, %v523_v19  ;;  %v3553_v45 = vand.u32 2147483647, %v830_v24  ;;  %v1751_v4 = vmul.f32 0.5, %v1443_v48 }
 0x13f   :  { %v2659_v41 = vadd.f32 %v2658_v32, %v2351_v22  ;;  %v2052_v22 = vsub.f32 %v3513_v27, %v1744_v3  ;;  %v2359_v32 = vmul.f32 %v2051_v13, %v1435_v37  ;;  %v216_v27 = vld [vmem:[#allocation3 + $0x4f8] sm:$0xff]  ;;  %v525_v37 = vld [vmem:[#allocation6 + $0x500] sm:$0xff]  ;;  %v1445_v3 = vmin.f32 %v3549_v34, 1.0 }
 0x140   :  { %v832_v42 = vsub.f32 %v216_v27, %v524_v28  ;;  %v3557_v54 = vand.u32 2147483647, %v831_v33  ;;  %v1752_v13 = vmul.f32 0.5, %v1444_v56 }
 0x141   :  { %v2660_v52 = vadd.f32 %v2659_v41, %v2352_v31  ;;  %v2053_v31 = vsub.f32 %v3517_v36, %v1745_v12  ;;  %v2360_v41 = vmul.f32 %v2052_v22, %v1436_v46  ;;  %v217_v36 = vld [vmem:[#allocation3 + $0x500] sm:$0xff]  ;;  %v526_v46 = vld [vmem:[#allocation6 + $0x508] sm:$0xff]  ;;  %v1446_v12 = vmin.f32 %v3553_v45, 1.0 }
 0x142   :  { %v833_v53 = vsub.f32 %v217_v36, %v525_v37  ;;  %v3561_v1 = vand.u32 2147483647, %v832_v42  ;;  %v1753_v22 = vmul.f32 0.5, %v1445_v3 }
 0x143   :  { %v2661_v61 = vadd.f32 %v2660_v52, %v2353_v40  ;;  %v2054_v40 = vsub.f32 %v3521_v44, %v1746_v21  ;;  %v2361_v52 = vmul.f32 %v2053_v31, %v1437_v55  ;;  %v218_v44 = vld [vmem:[#allocation3 + $0x508] sm:$0xff]  ;;  %v527_v55 = vld [vmem:[#allocation6 + $0x510] sm:$0xff]  ;;  %v1447_v21 = vmin.f32 %v3557_v54, 1.0 }
 0x144   :  { %v834_v0 = vsub.f32 %v218_v44, %v526_v46  ;;  %v3565_v9 = vand.u32 2147483647, %v833_v53  ;;  %v1754_v31 = vmul.f32 0.5, %v1446_v12 }
 0x145   :  { %v2662_v6 = vadd.f32 %v2661_v61, %v2354_v51  ;;  %v2055_v51 = vsub.f32 %v3525_v50, %v1747_v30  ;;  %v2362_v61 = vmul.f32 %v2054_v40, %v1438_v2  ;;  %v219_v50 = vld [vmem:[#allocation3 + $0x510] sm:$0xff]  ;;  %v528_v2 = vld [vmem:[#allocation6 + $0x518] sm:$0xff]  ;;  %v1448_v30 = vmin.f32 %v3561_v1, 1.0 }
 0x146   :  { %v835_v8 = vsub.f32 %v219_v50, %v527_v55  ;;  %v3569_v19 = vand.u32 2147483647, %v834_v0  ;;  %v1755_v40 = vmul.f32 0.5, %v1447_v21 }
 0x147   :  { %v2663_v17 = vadd.f32 %v2662_v6, %v2355_v60  ;;  %v2056_v60 = vsub.f32 %v3529_v58, %v1748_v39  ;;  %v2363_v6 = vmul.f32 %v2055_v51, %v1439_v11  ;;  %v220_v58 = vld [vmem:[#allocation3 + $0x518] sm:$0xff]  ;;  %v529_v11 = vld [vmem:[#allocation6 + $0x520] sm:$0xff]  ;;  %v1449_v39 = vmin.f32 %v3565_v9, 1.0 }
 0x148   :  { %v836_v18 = vsub.f32 %v220_v58, %v528_v2  ;;  %v3573_v28 = vand.u32 2147483647, %v835_v8  ;;  %v1756_v51 = vmul.f32 0.5, %v1448_v30 }
 0x149   :  { %v2664_v26 = vadd.f32 %v2663_v17, %v2356_v5  ;;  %v2057_v5 = vsub.f32 %v3533_v63, %v1749_v49  ;;  %v2364_v17 = vmul.f32 %v2056_v60, %v1440_v20  ;;  %v221_v63 = vld [vmem:[#allocation3 + $0x520] sm:$0xff]  ;;  %v530_v20 = vld [vmem:[#allocation6 + $0x528] sm:$0xff]  ;;  %v1450_v49 = vmin.f32 %v3569_v19, 1.0 }
 0x14a   :  { %v837_v27 = vsub.f32 %v221_v63, %v529_v11  ;;  %v3577_v37 = vand.u32 2147483647, %v836_v18  ;;  %v1757_v60 = vmul.f32 0.5, %v1449_v39 }
 0x14b   :  { %v2665_v35 = vadd.f32 %v2664_v26, %v2357_v14  ;;  %v2058_v14 = vsub.f32 %v3537_v10, %v1750_v59  ;;  %v2365_v26 = vmul.f32 %v2057_v5, %v1441_v29  ;;  %v222_v10 = vld [vmem:[#allocation3 + $0x528] sm:$0xff]  ;;  %v531_v29 = vld [vmem:[#allocation6 + $0x530] sm:$0xff]  ;;  %v1451_v59 = vmin.f32 %v3573_v28, 1.0 }
 0x14c   :  { %v838_v36 = vsub.f32 %v222_v10, %v530_v20  ;;  %v3581_v46 = vand.u32 2147483647, %v837_v27  ;;  %v1758_v5 = vmul.f32 0.5, %v1450_v49 }
 0x14d   :  { %v2666_v43 = vadd.f32 %v2665_v35, %v2358_v23  ;;  %v2059_v23 = vsub.f32 %v3541_v16, %v1751_v4  ;;  %v2366_v35 = vmul.f32 %v2058_v14, %v1442_v38  ;;  %v223_v16 = vld [vmem:[#allocation3 + $0x530] sm:$0xff]  ;;  %v532_v38 = vld [vmem:[#allocation6 + $0x538] sm:$0xff]  ;;  %v1452_v4 = vmin.f32 %v3577_v37, 1.0 }
 0x14e   :  { %v839_v44 = vsub.f32 %v223_v16, %v531_v29  ;;  %v3585_v55 = vand.u32 2147483647, %v838_v36  ;;  %v1759_v14 = vmul.f32 0.5, %v1451_v59 }
 0x14f   :  { %v2667_v47 = vadd.f32 %v2666_v43, %v2359_v32  ;;  %v2060_v32 = vsub.f32 %v3545_v25, %v1752_v13  ;;  %v2367_v43 = vmul.f32 %v2059_v23, %v1443_v48  ;;  %v224_v25 = vld [vmem:[#allocation3 + $0x538] sm:$0xff]  ;;  %v533_v48 = vld [vmem:[#allocation6 + $0x540] sm:$0xff]  ;;  %v1453_v13 = vmin.f32 %v3581_v46, 1.0 }
 0x150   :  { %v840_v50 = vsub.f32 %v224_v25, %v532_v38  ;;  %v3589_v2 = vand.u32 2147483647, %v839_v44  ;;  %v1760_v23 = vmul.f32 0.5, %v1452_v4 }
 0x151   :  { %v2668_v57 = vadd.f32 %v2667_v47, %v2360_v41  ;;  %v2061_v41 = vsub.f32 %v3549_v34, %v1753_v22  ;;  %v2368_v47 = vmul.f32 %v2060_v32, %v1444_v56  ;;  %v225_v34 = vld [vmem:[#allocation3 + $0x540] sm:$0xff]  ;;  %v534_v56 = vld [vmem:[#allocation6 + $0x548] sm:$0xff]  ;;  %v1454_v22 = vmin.f32 %v3585_v55, 1.0 }
 0x152   :  { %v841_v58 = vsub.f32 %v225_v34, %v533_v48  ;;  %v3593_v11 = vand.u32 2147483647, %v840_v50  ;;  %v1761_v32 = vmul.f32 0.5, %v1453_v13 }
 0x153   :  { %v2669_v62 = vadd.f32 %v2668_v57, %v2361_v52  ;;  %v2062_v52 = vsub.f32 %v3553_v45, %v1754_v31  ;;  %v2369_v57 = vmul.f32 %v2061_v41, %v1445_v3  ;;  %v226_v45 = vld [vmem:[#allocation3 + $0x548] sm:$0xff]  ;;  %v535_v3 = vld [vmem:[#allocation6 + $0x550] sm:$0xff]  ;;  %v1455_v31 = vmin.f32 %v3589_v2, 1.0 }
 0x154   :  { %v842_v63 = vsub.f32 %v226_v45, %v534_v56  ;;  %v3597_v20 = vand.u32 2147483647, %v841_v58  ;;  %v1762_v41 = vmul.f32 0.5, %v1454_v22 }
 0x155   :  { %v2670_v7 = vadd.f32 %v2669_v62, %v2362_v61  ;;  %v2063_v61 = vsub.f32 %v3557_v54, %v1755_v40  ;;  %v2370_v62 = vmul.f32 %v2062_v52, %v1446_v12  ;;  %v227_v54 = vld [vmem:[#allocation3 + $0x550] sm:$0xff]  ;;  %v536_v12 = vld [vmem:[#allocation6 + $0x558] sm:$0xff]  ;;  %v1456_v40 = vmin.f32 %v3593_v11, 1.0 }
 0x156   :  { %v843_v10 = vsub.f32 %v227_v54, %v535_v3  ;;  %v3601_v29 = vand.u32 2147483647, %v842_v63  ;;  %v1763_v52 = vmul.f32 0.5, %v1455_v31 }
 0x157   :  { %v2671_v15 = vadd.f32 %v2670_v7, %v2363_v6  ;;  %v2064_v6 = vsub.f32 %v3561_v1, %v1756_v51  ;;  %v2371_v7 = vmul.f32 %v2063_v61, %v1447_v21  ;;  %v228_v1 = vld [vmem:[#allocation3 + $0x558] sm:$0xff]  ;;  %v537_v21 = vld [vmem:[#allocation6 + $0x560] sm:$0xff]  ;;  %v1457_v51 = vmin.f32 %v3597_v20, 1.0 }
 0x158   :  { %v844_v16 = vsub.f32 %v228_v1, %v536_v12  ;;  %v3605_v38 = vand.u32 2147483647, %v843_v10  ;;  %v1764_v61 = vmul.f32 0.5, %v1456_v40 }
 0x159   :  { %v2672_v24 = vadd.f32 %v2671_v15, %v2364_v17  ;;  %v2065_v17 = vsub.f32 %v3565_v9, %v1757_v60  ;;  %v2372_v15 = vmul.f32 %v2064_v6, %v1448_v30  ;;  %v229_v9 = vld [vmem:[#allocation3 + $0x560] sm:$0xff]  ;;  %v538_v30 = vld [vmem:[#allocation6 + $0x568] sm:$0xff]  ;;  %v1458_v60 = vmin.f32 %v3601_v29, 1.0 }
 0x15a   :  { %v845_v25 = vsub.f32 %v229_v9, %v537_v21  ;;  %v3609_v48 = vand.u32 2147483647, %v844_v16  ;;  %v1765_v6 = vmul.f32 0.5, %v1457_v51 }
 0x15b   :  { %v2673_v33 = vadd.f32 %v2672_v24, %v2365_v26  ;;  %v2066_v26 = vsub.f32 %v3569_v19, %v1758_v5  ;;  %v2373_v24 = vmul.f32 %v2065_v17, %v1449_v39  ;;  %v230_v19 = vld [vmem:[#allocation3 + $0x568] sm:$0xff]  ;;  %v539_v39 = vld [vmem:[#allocation6 + $0x570] sm:$0xff]  ;;  %v1459_v5 = vmin.f32 %v3605_v38, 1.0 }
 0x15c   :  { %v846_v34 = vsub.f32 %v230_v19, %v538_v30  ;;  %v3613_v56 = vand.u32 2147483647, %v845_v25  ;;  %v1766_v17 = vmul.f32 0.5, %v1458_v60 }
 0x15d   :  { %v2674_v42 = vadd.f32 %v2673_v33, %v2366_v35  ;;  %v2067_v35 = vsub.f32 %v3573_v28, %v1759_v14  ;;  %v2374_v33 = vmul.f32 %v2066_v26, %v1450_v49  ;;  %v231_v28 = vld [vmem:[#allocation3 + $0x570] sm:$0xff]  ;;  %v540_v49 = vld [vmem:[#allocation6 + $0x578] sm:$0xff]  ;;  %v1460_v14 = vmin.f32 %v3609_v48, 1.0 }
 0x15e   :  { %v847_v45 = vsub.f32 %v231_v28, %v539_v39  ;;  %v3617_v3 = vand.u32 2147483647, %v846_v34  ;;  %v1767_v26 = vmul.f32 0.5, %v1459_v5 }
 0x15f   :  { %v2675_v53 = vadd.f32 %v2674_v42, %v2367_v43  ;;  %v2068_v43 = vsub.f32 %v3577_v37, %v1760_v23  ;;  %v2375_v42 = vmul.f32 %v2067_v35, %v1451_v59  ;;  %v232_v37 = vld [vmem:[#allocation3 + $0x578] sm:$0xff]  ;;  %v541_v59 = vld [vmem:[#allocation6 + $0x580] sm:$0xff]  ;;  %v1461_v23 = vmin.f32 %v3613_v56, 1.0 }
 0x160   :  { %v848_v54 = vsub.f32 %v232_v37, %v540_v49  ;;  %v3621_v12 = vand.u32 2147483647, %v847_v45  ;;  %v1768_v35 = vmul.f32 0.5, %v1460_v14 }
 0x161   :  { %v2676_v0 = vadd.f32 %v2675_v53, %v2368_v47  ;;  %v2069_v47 = vsub.f32 %v3581_v46, %v1761_v32  ;;  %v2376_v53 = vmul.f32 %v2068_v43, %v1452_v4  ;;  %v233_v46 = vld [vmem:[#allocation3 + $0x580] sm:$0xff]  ;;  %v542_v4 = vld [vmem:[#allocation6 + $0x588] sm:$0xff]  ;;  %v1462_v32 = vmin.f32 %v3617_v3, 1.0 }
 0x162   :  { %v849_v1 = vsub.f32 %v233_v46, %v541_v59  ;;  %v3625_v21 = vand.u32 2147483647, %v848_v54  ;;  %v1769_v43 = vmul.f32 0.5, %v1461_v23 }
 0x163   :  { %v2677_v8 = vadd.f32 %v2676_v0, %v2369_v57  ;;  %v2070_v57 = vsub.f32 %v3585_v55, %v1762_v41  ;;  %v2377_v0 = vmul.f32 %v2069_v47, %v1453_v13  ;;  %v234_v55 = vld [vmem:[#allocation3 + $0x588] sm:$0xff]  ;;  %v543_v13 = vld [vmem:[#allocation6 + $0x590] sm:$0xff]  ;;  %v1463_v41 = vmin.f32 %v3621_v12, 1.0 }
 0x164   :  { %v850_v9 = vsub.f32 %v234_v55, %v542_v4  ;;  %v3629_v30 = vand.u32 2147483647, %v849_v1  ;;  %v1770_v47 = vmul.f32 0.5, %v1462_v32 }
 0x165   :  { %v2678_v18 = vadd.f32 %v2677_v8, %v2370_v62  ;;  %v2071_v62 = vsub.f32 %v3589_v2, %v1763_v52  ;;  %v2378_v8 = vmul.f32 %v2070_v57, %v1454_v22  ;;  %v235_v2 = vld [vmem:[#allocation3 + $0x590] sm:$0xff]  ;;  %v544_v22 = vld [vmem:[#allocation6 + $0x598] sm:$0xff]  ;;  %v1464_v52 = vmin.f32 %v3625_v21, 1.0 }
 0x166   :  { %v851_v19 = vsub.f32 %v235_v2, %v543_v13  ;;  %v3633_v39 = vand.u32 2147483647, %v850_v9  ;;  %v1771_v57 = vmul.f32 0.5, %v1463_v41 }
 0x167   :  { %v2679_v27 = vadd.f32 %v2678_v18, %v2371_v7  ;;  %v2072_v7 = vsub.f32 %v3593_v11, %v1764_v61  ;;  %v2379_v18 = vmul.f32 %v2071_v62, %v1455_v31  ;;  %v236_v11 = vld [vmem:[#allocation3 + $0x598] sm:$0xff]  ;;  %v545_v31 = vld [vmem:[#allocation6 + $0x5a0] sm:$0xff]  ;;  %v1465_v61 = vmin.f32 %v3629_v30, 1.0 }
 0x168   :  { %v852_v28 = vsub.f32 %v236_v11, %v544_v22  ;;  %v3637_v49 = vand.u32 2147483647, %v851_v19  ;;  %v1772_v62 = vmul.f32 0.5, %v1464_v52 }
 0x169   :  { %v2680_v36 = vadd.f32 %v2679_v27, %v2372_v15  ;;  %v2073_v15 = vsub.f32 %v3597_v20, %v1765_v6  ;;  %v2380_v27 = vmul.f32 %v2072_v7, %v1456_v40  ;;  %v237_v20 = vld [vmem:[#allocation3 + $0x5a0] sm:$0xff]  ;;  %v546_v40 = vld [vmem:[#allocation6 + $0x5a8] sm:$0xff]  ;;  %v1466_v6 = vmin.f32 %v3633_v39, 1.0 }
 0x16a   :  { %v853_v37 = vsub.f32 %v237_v20, %v545_v31  ;;  %v3641_v59 = vand.u32 2147483647, %v852_v28  ;;  %v1773_v7 = vmul.f32 0.5, %v1465_v61 }
 0x16b   :  { %v2681_v44 = vadd.f32 %v2680_v36, %v2373_v24  ;;  %v2074_v24 = vsub.f32 %v3601_v29, %v1766_v17  ;;  %v2381_v36 = vmul.f32 %v2073_v15, %v1457_v51  ;;  %v238_v29 = vld [vmem:[#allocation3 + $0x5a8] sm:$0xff]  ;;  %v547_v51 = vld [vmem:[#allocation6 + $0x5b0] sm:$0xff]  ;;  %v1467_v17 = vmin.f32 %v3637_v49, 1.0 }
 0x16c   :  { %v854_v46 = vsub.f32 %v238_v29, %v546_v40  ;;  %v3645_v4 = vand.u32 2147483647, %v853_v37  ;;  %v1774_v15 = vmul.f32 0.5, %v1466_v6 }
 0x16d   :  { %v2682_v50 = vadd.f32 %v2681_v44, %v2374_v33  ;;  %v2075_v33 = vsub.f32 %v3605_v38, %v1767_v26  ;;  %v2382_v44 = vmul.f32 %v2074_v24, %v1458_v60  ;;  %v239_v38 = vld [vmem:[#allocation3 + $0x5b0] sm:$0xff]  ;;  %v548_v60 = vld [vmem:[#allocation6 + $0x5b8] sm:$0xff]  ;;  %v1468_v26 = vmin.f32 %v3641_v59, 1.0 }
 0x16e   :  { %v855_v55 = vsub.f32 %v239_v38, %v547_v51  ;;  %v3649_v13 = vand.u32 2147483647, %v854_v46  ;;  %v1775_v24 = vmul.f32 0.5, %v1467_v17 }
 0x16f   :  { %v2683_v58 = vadd.f32 %v2682_v50, %v2375_v42  ;;  %v2076_v42 = vsub.f32 %v3609_v48, %v1768_v35  ;;  %v2383_v50 = vmul.f32 %v2075_v33, %v1459_v5  ;;  %v240_v48 = vld [vmem:[#allocation3 + $0x5b8] sm:$0xff]  ;;  %v549_v5 = vld [vmem:[#allocation6 + $0x5c0] sm:$0xff]  ;;  %v1469_v35 = vmin.f32 %v3645_v4, 1.0 }
 0x170   :  { %v856_v2 = vsub.f32 %v240_v48, %v548_v60  ;;  %v3653_v22 = vand.u32 2147483647, %v855_v55  ;;  %v1776_v33 = vmul.f32 0.5, %v1468_v26 }
 0x171   :  { %v2684_v63 = vadd.f32 %v2683_v58, %v2376_v53  ;;  %v2077_v53 = vsub.f32 %v3613_v56, %v1769_v43  ;;  %v2384_v58 = vmul.f32 %v2076_v42, %v1460_v14  ;;  %v241_v56 = vld [vmem:[#allocation3 + $0x5c0] sm:$0xff]  ;;  %v550_v14 = vld [vmem:[#allocation6 + $0x5c8] sm:$0xff]  ;;  %v1470_v43 = vmin.f32 %v3649_v13, 1.0 }
 0x172   :  { %v857_v11 = vsub.f32 %v241_v56, %v549_v5  ;;  %v3657_v31 = vand.u32 2147483647, %v856_v2  ;;  %v1777_v42 = vmul.f32 0.5, %v1469_v35 }
 0x173   :  { %v2685_v10 = vadd.f32 %v2684_v63, %v2377_v0  ;;  %v2078_v0 = vsub.f32 %v3617_v3, %v1770_v47  ;;  %v2385_v63 = vmul.f32 %v2077_v53, %v1461_v23  ;;  %v242_v3 = vld [vmem:[#allocation3 + $0x5c8] sm:$0xff]  ;;  %v551_v23 = vld [vmem:[#allocation6 + $0x5d0] sm:$0xff]  ;;  %v1471_v47 = vmin.f32 %v3653_v22, 1.0 }
 0x174   :  { %v858_v20 = vsub.f32 %v242_v3, %v550_v14  ;;  %v3661_v40 = vand.u32 2147483647, %v857_v11  ;;  %v1778_v53 = vmul.f32 0.5, %v1470_v43 }
 0x175   :  { %v2686_v16 = vadd.f32 %v2685_v10, %v2378_v8  ;;  %v2079_v8 = vsub.f32 %v3621_v12, %v1771_v57  ;;  %v2386_v10 = vmul.f32 %v2078_v0, %v1462_v32  ;;  %v243_v12 = vld [vmem:[#allocation3 + $0x5d0] sm:$0xff]  ;;  %v552_v32 = vld [vmem:[#allocation6 + $0x5d8] sm:$0xff]  ;;  %v1472_v57 = vmin.f32 %v3657_v31, 1.0 }
 0x176   :  { %v859_v29 = vsub.f32 %v243_v12, %v551_v23  ;;  %v3665_v51 = vand.u32 2147483647, %v858_v20  ;;  %v1779_v0 = vmul.f32 0.5, %v1471_v47 }
 0x177   :  { %v2687_v25 = vadd.f32 %v2686_v16, %v2379_v18  ;;  %v2080_v18 = vsub.f32 %v3625_v21, %v1772_v62  ;;  %v2387_v16 = vmul.f32 %v2079_v8, %v1463_v41  ;;  %v244_v21 = vld [vmem:[#allocation3 + $0x5d8] sm:$0xff]  ;;  %v553_v41 = vld [vmem:[#allocation6 + $0x5e0] sm:$0xff]  ;;  %v1473_v62 = vmin.f32 %v3661_v40, 1.0 }
 0x178   :  { %v860_v38 = vsub.f32 %v244_v21, %v552_v32  ;;  %v3669_v60 = vand.u32 2147483647, %v859_v29  ;;  %v1780_v8 = vmul.f32 0.5, %v1472_v57 }
 0x179   :  { %v2688_v34 = vadd.f32 %v2687_v25, %v2380_v27  ;;  %v2081_v27 = vsub.f32 %v3629_v30, %v1773_v7  ;;  %v2388_v25 = vmul.f32 %v2080_v18, %v1464_v52  ;;  %v245_v30 = vld [vmem:[#allocation3 + $0x5e0] sm:$0xff]  ;;  %v554_v52 = vld [vmem:[#allocation6 + $0x5e8] sm:$0xff]  ;;  %v1474_v7 = vmin.f32 %v3665_v51, 1.0 }
 0x17a   :  { %v861_v48 = vsub.f32 %v245_v30, %v553_v41  ;;  %v3673_v5 = vand.u32 2147483647, %v860_v38  ;;  %v1781_v18 = vmul.f32 0.5, %v1473_v62 }
 0x17b   :  { %v2689_v45 = vadd.f32 %v2688_v34, %v2381_v36  ;;  %v2082_v36 = vsub.f32 %v3633_v39, %v1774_v15  ;;  %v2389_v34 = vmul.f32 %v2081_v27, %v1465_v61  ;;  %v246_v39 = vld [vmem:[#allocation3 + $0x5e8] sm:$0xff]  ;;  %v555_v61 = vld [vmem:[#allocation6 + $0x5f0] sm:$0xff]  ;;  %v1475_v15 = vmin.f32 %v3669_v60, 1.0 }
 0x17c   :  { %v862_v56 = vsub.f32 %v246_v39, %v554_v52  ;;  %v3677_v14 = vand.u32 2147483647, %v861_v48  ;;  %v1782_v27 = vmul.f32 0.5, %v1474_v7 }
 0x17d   :  { %v2690_v54 = vadd.f32 %v2689_v45, %v2382_v44  ;;  %v2083_v44 = vsub.f32 %v3637_v49, %v1775_v24  ;;  %v2390_v45 = vmul.f32 %v2082_v36, %v1466_v6  ;;  %v247_v49 = vld [vmem:[#allocation3 + $0x5f0] sm:$0xff]  ;;  %v556_v6 = vld [vmem:[#allocation6 + $0x5f8] sm:$0xff]  ;;  %v1476_v24 = vmin.f32 %v3673_v5, 1.0 }
 0x17e   :  { %v863_v3 = vsub.f32 %v247_v49, %v555_v61  ;;  %v3681_v23 = vand.u32 2147483647, %v862_v56  ;;  %v1783_v36 = vmul.f32 0.5, %v1475_v15 }
 0x17f   :  { %v2691_v1 = vadd.f32 %v2690_v54, %v2383_v50  ;;  %v2084_v50 = vsub.f32 %v3641_v59, %v1776_v33  ;;  %v2391_v54 = vmul.f32 %v2083_v44, %v1467_v17  ;;  %v248_v59 = vld [vmem:[#allocation3 + $0x5f8] sm:$0xff]  ;;  %v557_v17 = vld [vmem:[#allocation6 + $0x600] sm:$0xff]  ;;  %v1477_v33 = vmin.f32 %v3677_v14, 1.0 }
 0x180   :  { %v864_v12 = vsub.f32 %v248_v59, %v556_v6  ;;  %v3685_v32 = vand.u32 2147483647, %v863_v3  ;;  %v1784_v44 = vmul.f32 0.5, %v1476_v24 }
 0x181   :  { %v2692_v9 = vadd.f32 %v2691_v1, %v2384_v58  ;;  %v2085_v58 = vsub.f32 %v3645_v4, %v1777_v42  ;;  %v2392_v1 = vmul.f32 %v2084_v50, %v1468_v26  ;;  %v249_v4 = vld [vmem:[#allocation3 + $0x600] sm:$0xff]  ;;  %v558_v26 = vld [vmem:[#allocation6 + $0x608] sm:$0xff]  ;;  %v1478_v42 = vmin.f32 %v3681_v23, 1.0 }
 0x182   :  { %v865_v21 = vsub.f32 %v249_v4, %v557_v17  ;;  %v3689_v41 = vand.u32 2147483647, %v864_v12  ;;  %v1785_v50 = vmul.f32 0.5, %v1477_v33 }
 0x183   :  { %v2693_v19 = vadd.f32 %v2692_v9, %v2385_v63  ;;  %v2086_v63 = vsub.f32 %v3649_v13, %v1778_v53  ;;  %v2393_v9 = vmul.f32 %v2085_v58, %v1469_v35  ;;  %v250_v13 = vld [vmem:[#allocation3 + $0x608] sm:$0xff]  ;;  %v559_v35 = vld [vmem:[#allocation6 + $0x610] sm:$0xff]  ;;  %v1479_v53 = vmin.f32 %v3685_v32, 1.0 }
 0x184   :  { %v866_v30 = vsub.f32 %v250_v13, %v558_v26  ;;  %v3693_v52 = vand.u32 2147483647, %v865_v21  ;;  %v1786_v58 = vmul.f32 0.5, %v1478_v42 }
 0x185   :  { %v2694_v28 = vadd.f32 %v2693_v19, %v2386_v10  ;;  %v2087_v10 = vsub.f32 %v3653_v22, %v1779_v0  ;;  %v2394_v19 = vmul.f32 %v2086_v63, %v1470_v43  ;;  %v251_v22 = vld [vmem:[#allocation3 + $0x610] sm:$0xff]  ;;  %v560_v43 = vld [vmem:[#allocation6 + $0x618] sm:$0xff]  ;;  %v1480_v0 = vmin.f32 %v3689_v41, 1.0 }
 0x186   :  { %v867_v39 = vsub.f32 %v251_v22, %v559_v35  ;;  %v3697_v61 = vand.u32 2147483647, %v866_v30  ;;  %v1787_v63 = vmul.f32 0.5, %v1479_v53 }
 0x187   :  { %v2695_v37 = vadd.f32 %v2694_v28, %v2387_v16  ;;  %v2088_v16 = vsub.f32 %v3657_v31, %v1780_v8  ;;  %v2395_v28 = vmul.f32 %v2087_v10, %v1471_v47  ;;  %v252_v31 = vld [vmem:[#allocation3 + $0x618] sm:$0xff]  ;;  %v561_v47 = vld [vmem:[#allocation6 + $0x620] sm:$0xff]  ;;  %v1481_v8 = vmin.f32 %v3693_v52, 1.0 }
 0x188   :  { %v868_v49 = vsub.f32 %v252_v31, %v560_v43  ;;  %v3701_v6 = vand.u32 2147483647, %v867_v39  ;;  %v1788_v10 = vmul.f32 0.5, %v1480_v0 }
 0x189   :  { %v2696_v46 = vadd.f32 %v2695_v37, %v2388_v25  ;;  %v2089_v25 = vsub.f32 %v3661_v40, %v1781_v18  ;;  %v2396_v37 = vmul.f32 %v2088_v16, %v1472_v57  ;;  %v253_v40 = vld [vmem:[#allocation3 + $0x620] sm:$0xff]  ;;  %v562_v57 = vld [vmem:[#allocation6 + $0x628] sm:$0xff]  ;;  %v1482_v18 = vmin.f32 %v3697_v61, 1.0 }
 0x18a   :  { %v869_v59 = vsub.f32 %v253_v40, %v561_v47  ;;  %v3705_v17 = vand.u32 2147483647, %v868_v49  ;;  %v1789_v16 = vmul.f32 0.5, %v1481_v8 }
 0x18b   :  { %v2697_v55 = vadd.f32 %v2696_v46, %v2389_v34  ;;  %v2090_v34 = vsub.f32 %v3665_v51, %v1782_v27  ;;  %v2397_v46 = vmul.f32 %v2089_v25, %v1473_v62  ;;  %v254_v51 = vld [vmem:[#allocation3 + $0x628] sm:$0xff]  ;;  %v563_v62 = vld [vmem:[#allocation6 + $0x630] sm:$0xff]  ;;  %v1483_v27 = vmin.f32 %v3701_v6, 1.0 }
 0x18c   :  { %v870_v4 = vsub.f32 %v254_v51, %v562_v57  ;;  %v3709_v26 = vand.u32 2147483647, %v869_v59  ;;  %v1790_v25 = vmul.f32 0.5, %v1482_v18 }
 0x18d   :  { %v2698_v2 = vadd.f32 %v2697_v55, %v2390_v45  ;;  %v2091_v45 = vsub.f32 %v3669_v60, %v1783_v36  ;;  %v2398_v55 = vmul.f32 %v2090_v34, %v1474_v7  ;;  %v255_v60 = vld [vmem:[#allocation3 + $0x630] sm:$0xff]  ;;  %v564_v7 = vld [vmem:[#allocation6 + $0x638] sm:$0xff]  ;;  %v1484_v36 = vmin.f32 %v3705_v17, 1.0 }
 0x18e   :  { %v871_v13 = vsub.f32 %v255_v60, %v563_v62  ;;  %v3713_v35 = vand.u32 2147483647, %v870_v4  ;;  %v1791_v34 = vmul.f32 0.5, %v1483_v27 }
 0x18f   :  { %v2699_v11 = vadd.f32 %v2698_v2, %v2391_v54  ;;  %v2092_v54 = vsub.f32 %v3673_v5, %v1784_v44  ;;  %v2399_v2 = vmul.f32 %v2091_v45, %v1475_v15  ;;  %v256_v5 = vld [vmem:[#allocation3 + $0x638] sm:$0xff]  ;;  %v565_v15 = vld [vmem:[#allocation6 + $0x640] sm:$0xff]  ;;  %v1485_v44 = vmin.f32 %v3709_v26, 1.0 }
 0x190   :  { %v872_v22 = vsub.f32 %v256_v5, %v564_v7  ;;  %v3717_v43 = vand.u32 2147483647, %v871_v13  ;;  %v1792_v45 = vmul.f32 0.5, %v1484_v36 }
 0x191   :  { %v2700_v20 = vadd.f32 %v2699_v11, %v2392_v1  ;;  %v2093_v1 = vsub.f32 %v3677_v14, %v1785_v50  ;;  %v2400_v11 = vmul.f32 %v2092_v54, %v1476_v24  ;;  %v257_v14 = vld [vmem:[#allocation3 + $0x640] sm:$0xff]  ;;  %v566_v24 = vld [vmem:[#allocation6 + $0x648] sm:$0xff]  ;;  %v1486_v50 = vmin.f32 %v3713_v35, 1.0 }
 0x192   :  { %v873_v31 = vsub.f32 %v257_v14, %v565_v15  ;;  %v3721_v47 = vand.u32 2147483647, %v872_v22  ;;  %v1793_v54 = vmul.f32 0.5, %v1485_v44 }
 0x193   :  { %v2701_v29 = vadd.f32 %v2700_v20, %v2393_v9  ;;  %v2094_v9 = vsub.f32 %v3681_v23, %v1786_v58  ;;  %v2401_v20 = vmul.f32 %v2093_v1, %v1477_v33  ;;  %v258_v23 = vld [vmem:[#allocation3 + $0x648] sm:$0xff]  ;;  %v567_v33 = vld [vmem:[#allocation6 + $0x650] sm:$0xff]  ;;  %v1487_v58 = vmin.f32 %v3717_v43, 1.0 }
 0x194   :  { %v874_v40 = vsub.f32 %v258_v23, %v566_v24  ;;  %v3725_v57 = vand.u32 2147483647, %v873_v31  ;;  %v1794_v1 = vmul.f32 0.5, %v1486_v50 }
 0x195   :  { %v2702_v38 = vadd.f32 %v2701_v29, %v2394_v19  ;;  %v2095_v19 = vsub.f32 %v3685_v32, %v1787_v63  ;;  %v2402_v29 = vmul.f32 %v2094_v9, %v1478_v42  ;;  %v259_v32 = vld [vmem:[#allocation3 + $0x650] sm:$0xff]  ;;  %v568_v42 = vld [vmem:[#allocation6 + $0x658] sm:$0xff]  ;;  %v1488_v63 = vmin.f32 %v3721_v47, 1.0 }
 0x196   :  { %v875_v51 = vsub.f32 %v259_v32, %v567_v33  ;;  %v3729_v62 = vand.u32 2147483647, %v874_v40  ;;  %v1795_v9 = vmul.f32 0.5, %v1487_v58 }
 0x197   :  { %v2703_v48 = vadd.f32 %v2702_v38, %v2395_v28  ;;  %v2096_v28 = vsub.f32 %v3689_v41, %v1788_v10  ;;  %v2403_v38 = vmul.f32 %v2095_v19, %v1479_v53  ;;  %v260_v41 = vld [vmem:[#allocation3 + $0x658] sm:$0xff]  ;;  %v569_v53 = vld [vmem:[#allocation6 + $0x660] sm:$0xff]  ;;  %v1489_v10 = vmin.f32 %v3725_v57, 1.0 }
 0x198   :  { %v876_v60 = vsub.f32 %v260_v41, %v568_v42  ;;  %v3733_v7 = vand.u32 2147483647, %v875_v51  ;;  %v1796_v19 = vmul.f32 0.5, %v1488_v63 }
 0x199   :  { %v2704_v56 = vadd.f32 %v2703_v48, %v2396_v37  ;;  %v2097_v37 = vsub.f32 %v3693_v52, %v1789_v16  ;;  %v2404_v48 = vmul.f32 %v2096_v28, %v1480_v0  ;;  %v261_v52 = vld [vmem:[#allocation3 + $0x660] sm:$0xff]  ;;  %v570_v0 = vld [vmem:[#allocation6 + $0x668] sm:$0xff]  ;;  %v1490_v16 = vmin.f32 %v3729_v62, 1.0 }
 0x19a   :  { %v877_v5 = vsub.f32 %v261_v52, %v569_v53  ;;  %v3737_v15 = vand.u32 2147483647, %v876_v60  ;;  %v1797_v28 = vmul.f32 0.5, %v1489_v10 }
 0x19b   :  { %v2705_v3 = vadd.f32 %v2704_v56, %v2397_v46  ;;  %v2098_v46 = vsub.f32 %v3697_v61, %v1790_v25  ;;  %v2405_v56 = vmul.f32 %v2097_v37, %v1481_v8  ;;  %v262_v61 = vld [vmem:[#allocation3 + $0x668] sm:$0xff]  ;;  %v571_v8 = vld [vmem:[#allocation6 + $0x670] sm:$0xff]  ;;  %v1491_v25 = vmin.f32 %v3733_v7, 1.0 }
 0x19c   :  { %v878_v14 = vsub.f32 %v262_v61, %v570_v0  ;;  %v3741_v24 = vand.u32 2147483647, %v877_v5  ;;  %v1798_v37 = vmul.f32 0.5, %v1490_v16 }
 0x19d   :  { %v2706_v12 = vadd.f32 %v2705_v3, %v2398_v55  ;;  %v2099_v55 = vsub.f32 %v3701_v6, %v1791_v34  ;;  %v2406_v3 = vmul.f32 %v2098_v46, %v1482_v18  ;;  %v263_v6 = vld [vmem:[#allocation3 + $0x670] sm:$0xff]  ;;  %v572_v18 = vld [vmem:[#allocation6 + $0x678] sm:$0xff]  ;;  %v1492_v34 = vmin.f32 %v3737_v15, 1.0 }
 0x19e   :  { %v879_v23 = vsub.f32 %v263_v6, %v571_v8  ;;  %v3745_v33 = vand.u32 2147483647, %v878_v14  ;;  %v1799_v46 = vmul.f32 0.5, %v1491_v25 }
 0x19f   :  { %v2707_v21 = vadd.f32 %v2706_v12, %v2399_v2  ;;  %v2100_v2 = vsub.f32 %v3705_v17, %v1792_v45  ;;  %v2407_v12 = vmul.f32 %v2099_v55, %v1483_v27  ;;  %v264_v17 = vld [vmem:[#allocation3 + $0x678] sm:$0xff]  ;;  %v573_v27 = vld [vmem:[#allocation6 + $0x680] sm:$0xff]  ;;  %v1493_v45 = vmin.f32 %v3741_v24, 1.0 }
 0x1a0   :  { %v880_v32 = vsub.f32 %v264_v17, %v572_v18  ;;  %v3749_v42 = vand.u32 2147483647, %v879_v23  ;;  %v1800_v55 = vmul.f32 0.5, %v1492_v34 }
 0x1a1   :  { %v2708_v30 = vadd.f32 %v2707_v21, %v2400_v11  ;;  %v2101_v11 = vsub.f32 %v3709_v26, %v1793_v54  ;;  %v2408_v21 = vmul.f32 %v2100_v2, %v1484_v36  ;;  %v265_v26 = vld [vmem:[#allocation3 + $0x680] sm:$0xff]  ;;  %v574_v36 = vld [vmem:[#allocation6 + $0x688] sm:$0xff]  ;;  %v1494_v54 = vmin.f32 %v3745_v33, 1.0 }
 0x1a2   :  { %v881_v41 = vsub.f32 %v265_v26, %v573_v27  ;;  %v3753_v53 = vand.u32 2147483647, %v880_v32  ;;  %v1801_v2 = vmul.f32 0.5, %v1493_v45 }
 0x1a3   :  { %v2709_v39 = vadd.f32 %v2708_v30, %v2401_v20  ;;  %v2102_v20 = vsub.f32 %v3713_v35, %v1794_v1  ;;  %v2409_v30 = vmul.f32 %v2101_v11, %v1485_v44  ;;  %v266_v35 = vld [vmem:[#allocation3 + $0x688] sm:$0xff]  ;;  %v575_v44 = vld [vmem:[#allocation6 + $0x690] sm:$0xff]  ;;  %v1495_v1 = vmin.f32 %v3749_v42, 1.0 }
 0x1a4   :  { %v882_v52 = vsub.f32 %v266_v35, %v574_v36  ;;  %v3757_v0 = vand.u32 2147483647, %v881_v41  ;;  %v1802_v11 = vmul.f32 0.5, %v1494_v54 }
 0x1a5   :  { %v2710_v49 = vadd.f32 %v2709_v39, %v2402_v29  ;;  %v2103_v29 = vsub.f32 %v3717_v43, %v1795_v9  ;;  %v2410_v39 = vmul.f32 %v2102_v20, %v1486_v50  ;;  %v267_v43 = vld [vmem:[#allocation3 + $0x690] sm:$0xff]  ;;  %v576_v50 = vld [vmem:[#allocation6 + $0x698] sm:$0xff]  ;;  %v1496_v9 = vmin.f32 %v3753_v53, 1.0 }
 0x1a6   :  { %v883_v61 = vsub.f32 %v267_v43, %v575_v44  ;;  %v3761_v8 = vand.u32 2147483647, %v882_v52  ;;  %v1803_v20 = vmul.f32 0.5, %v1495_v1 }
 0x1a7   :  { %v2711_v59 = vadd.f32 %v2710_v49, %v2403_v38  ;;  %v2104_v38 = vsub.f32 %v3721_v47, %v1796_v19  ;;  %v2411_v49 = vmul.f32 %v2103_v29, %v1487_v58  ;;  %v268_v47 = vld [vmem:[#allocation3 + $0x698] sm:$0xff]  ;;  %v577_v58 = vld [vmem:[#allocation6 + $0x6a0] sm:$0xff]  ;;  %v1497_v19 = vmin.f32 %v3757_v0, 1.0 }
 0x1a8   :  { %v884_v6 = vsub.f32 %v268_v47, %v576_v50  ;;  %v3765_v18 = vand.u32 2147483647, %v883_v61  ;;  %v1804_v29 = vmul.f32 0.5, %v1496_v9 }
 0x1a9   :  { %v2712_v4 = vadd.f32 %v2711_v59, %v2404_v48  ;;  %v2105_v48 = vsub.f32 %v3725_v57, %v1797_v28  ;;  %v2412_v59 = vmul.f32 %v2104_v38, %v1488_v63  ;;  %v269_v57 = vld [vmem:[#allocation3 + $0x6a0] sm:$0xff]  ;;  %v578_v63 = vld [vmem:[#allocation6 + $0x6a8] sm:$0xff]  ;;  %v1498_v28 = vmin.f32 %v3761_v8, 1.0 }
 0x1aa   :  { %v885_v17 = vsub.f32 %v269_v57, %v577_v58  ;;  %v3769_v27 = vand.u32 2147483647, %v884_v6  ;;  %v1805_v38 = vmul.f32 0.5, %v1497_v19 }
 0x1ab   :  { %v2713_v13 = vadd.f32 %v2712_v4, %v2405_v56  ;;  %v2106_v56 = vsub.f32 %v3729_v62, %v1798_v37  ;;  %v2413_v4 = vmul.f32 %v2105_v48, %v1489_v10  ;;  %v270_v62 = vld [vmem:[#allocation3 + $0x6a8] sm:$0xff]  ;;  %v579_v10 = vld [vmem:[#allocation6 + $0x6b0] sm:$0xff]  ;;  %v1499_v37 = vmin.f32 %v3765_v18, 1.0 }
 0x1ac   :  { %v886_v26 = vsub.f32 %v270_v62, %v578_v63  ;;  %v3773_v36 = vand.u32 2147483647, %v885_v17  ;;  %v1806_v48 = vmul.f32 0.5, %v1498_v28 }
 0x1ad   :  { %v2714_v22 = vadd.f32 %v2713_v13, %v2406_v3  ;;  %v2107_v3 = vsub.f32 %v3733_v7, %v1799_v46  ;;  %v2414_v13 = vmul.f32 %v2106_v56, %v1490_v16  ;;  %v271_v7 = vld [vmem:[#allocation3 + $0x6b0] sm:$0xff]  ;;  %v580_v16 = vld [vmem:[#allocation6 + $0x6b8] sm:$0xff]  ;;  %v1500_v46 = vmin.f32 %v3769_v27, 1.0 }
 0x1ae   :  { %v887_v35 = vsub.f32 %v271_v7, %v579_v10  ;;  %v3777_v44 = vand.u32 2147483647, %v886_v26  ;;  %v1807_v56 = vmul.f32 0.5, %v1499_v37 }
 0x1af   :  { %v2715_v31 = vadd.f32 %v2714_v22, %v2407_v12  ;;  %v2108_v12 = vsub.f32 %v3737_v15, %v1800_v55  ;;  %v2415_v22 = vmul.f32 %v2107_v3, %v1491_v25  ;;  %v272_v15 = vld [vmem:[#allocation3 + $0x6b8] sm:$0xff]  ;;  %v581_v25 = vld [vmem:[#allocation6 + $0x6c0] sm:$0xff]  ;;  %v1501_v55 = vmin.f32 %v3773_v36, 1.0 }
 0x1b0   :  { %v888_v43 = vsub.f32 %v272_v15, %v580_v16  ;;  %v3781_v50 = vand.u32 2147483647, %v887_v35  ;;  %v1808_v3 = vmul.f32 0.5, %v1500_v46 }
 0x1b1   :  { %v2716_v40 = vadd.f32 %v2715_v31, %v2408_v21  ;;  %v2109_v21 = vsub.f32 %v3741_v24, %v1801_v2  ;;  %v2416_v31 = vmul.f32 %v2108_v12, %v1492_v34  ;;  %v273_v24 = vld [vmem:[#allocation3 + $0x6c0] sm:$0xff]  ;;  %v582_v34 = vld [vmem:[#allocation6 + $0x6c8] sm:$0xff]  ;;  %v1502_v2 = vmin.f32 %v3777_v44, 1.0 }
 0x1b2   :  { %v889_v47 = vsub.f32 %v273_v24, %v581_v25  ;;  %v3785_v58 = vand.u32 2147483647, %v888_v43  ;;  %v1809_v12 = vmul.f32 0.5, %v1501_v55 }
 0x1b3   :  { %v2717_v51 = vadd.f32 %v2716_v40, %v2409_v30  ;;  %v2110_v30 = vsub.f32 %v3745_v33, %v1802_v11  ;;  %v2417_v40 = vmul.f32 %v2109_v21, %v1493_v45  ;;  %v274_v33 = vld [vmem:[#allocation3 + $0x6c8] sm:$0xff]  ;;  %v583_v45 = vld [vmem:[#allocation6 + $0x6d0] sm:$0xff]  ;;  %v1503_v11 = vmin.f32 %v3781_v50, 1.0 }
 0x1b4   :  { %v890_v57 = vsub.f32 %v274_v33, %v582_v34  ;;  %v3789_v63 = vand.u32 2147483647, %v889_v47  ;;  %v1810_v21 = vmul.f32 0.5, %v1502_v2 }
 0x1b5   :  { %v2718_v60 = vadd.f32 %v2717_v51, %v2410_v39  ;;  %v2111_v39 = vsub.f32 %v3749_v42, %v1803_v20  ;;  %v2418_v51 = vmul.f32 %v2110_v30, %v1494_v54  ;;  %v275_v42 = vld [vmem:[#allocation3 + $0x6d0] sm:$0xff]  ;;  %v584_v54 = vld [vmem:[#allocation6 + $0x6d8] sm:$0xff]  ;;  %v1504_v20 = vmin.f32 %v3785_v58, 1.0 }
 0x1b6   :  { %v891_v62 = vsub.f32 %v275_v42, %v583_v45  ;;  %v3793_v10 = vand.u32 2147483647, %v890_v57  ;;  %v1811_v30 = vmul.f32 0.5, %v1503_v11 }
 0x1b7   :  { %v2719_v5 = vadd.f32 %v2718_v60, %v2411_v49  ;;  %v2112_v49 = vsub.f32 %v3753_v53, %v1804_v29  ;;  %v2419_v60 = vmul.f32 %v2111_v39, %v1495_v1  ;;  %v276_v53 = vld [vmem:[#allocation3 + $0x6d8] sm:$0xff]  ;;  %v585_v1 = vld [vmem:[#allocation6 + $0x6e0] sm:$0xff]  ;;  %v1505_v29 = vmin.f32 %v3789_v63, 1.0 }
 0x1b8   :  { %v892_v7 = vsub.f32 %v276_v53, %v584_v54  ;;  %v3797_v16 = vand.u32 2147483647, %v891_v62  ;;  %v1812_v39 = vmul.f32 0.5, %v1504_v20 }
 0x1b9   :  { %v2720_v14 = vadd.f32 %v2719_v5, %v2412_v59  ;;  %v2113_v59 = vsub.f32 %v3757_v0, %v1805_v38  ;;  %v2420_v5 = vmul.f32 %v2112_v49, %v1496_v9  ;;  %v277_v0 = vld [vmem:[#allocation3 + $0x6e0] sm:$0xff]  ;;  %v586_v9 = vld [vmem:[#allocation6 + $0x6e8] sm:$0xff]  ;;  %v1506_v38 = vmin.f32 %v3793_v10, 1.0 }
 0x1ba   :  { %v893_v15 = vsub.f32 %v277_v0, %v585_v1  ;;  %v3801_v25 = vand.u32 2147483647, %v892_v7  ;;  %v1813_v49 = vmul.f32 0.5, %v1505_v29 }
 0x1bb   :  { %v2721_v23 = vadd.f32 %v2720_v14, %v2413_v4  ;;  %v2114_v4 = vsub.f32 %v3761_v8, %v1806_v48  ;;  %v2421_v14 = vmul.f32 %v2113_v59, %v1497_v19  ;;  %v278_v8 = vld [vmem:[#allocation3 + $0x6e8] sm:$0xff]  ;;  %v587_v19 = vld [vmem:[#allocation6 + $0x6f0] sm:$0xff]  ;;  %v1507_v48 = vmin.f32 %v3797_v16, 1.0 }
 0x1bc   :  { %v894_v24 = vsub.f32 %v278_v8, %v586_v9  ;;  %v3805_v34 = vand.u32 2147483647, %v893_v15  ;;  %v1814_v59 = vmul.f32 0.5, %v1506_v38 }
 0x1bd   :  { %v2722_v32 = vadd.f32 %v2721_v23, %v2414_v13  ;;  %v2115_v13 = vsub.f32 %v3765_v18, %v1807_v56  ;;  %v2422_v23 = vmul.f32 %v2114_v4, %v1498_v28  ;;  %v279_v18 = vld [vmem:[#allocation3 + $0x6f0] sm:$0xff]  ;;  %v588_v28 = vld [vmem:[#allocation6 + $0x6f8] sm:$0xff]  ;;  %v1508_v56 = vmin.f32 %v3801_v25, 1.0 }
 0x1be   :  { %v895_v33 = vsub.f32 %v279_v18, %v587_v19  ;;  %v3809_v45 = vand.u32 2147483647, %v894_v24  ;;  %v1815_v4 = vmul.f32 0.5, %v1507_v48 }
 0x1bf   :  { %v2723_v41 = vadd.f32 %v2722_v32, %v2415_v22  ;;  %v2116_v22 = vsub.f32 %v3769_v27, %v1808_v3  ;;  %v2423_v32 = vmul.f32 %v2115_v13, %v1499_v37  ;;  %v280_v27 = vld [vmem:[#allocation3 + $0x6f8] sm:$0xff]  ;;  %v589_v37 = vld [vmem:[#allocation6 + $0x700] sm:$0xff]  ;;  %v1509_v3 = vmin.f32 %v3805_v34, 1.0 }
 0x1c0   :  { %v896_v42 = vsub.f32 %v280_v27, %v588_v28  ;;  %v3813_v54 = vand.u32 2147483647, %v895_v33  ;;  %v1816_v13 = vmul.f32 0.5, %v1508_v56 }
 0x1c1   :  { %v2724_v52 = vadd.f32 %v2723_v41, %v2416_v31  ;;  %v2117_v31 = vsub.f32 %v3773_v36, %v1809_v12  ;;  %v2424_v41 = vmul.f32 %v2116_v22, %v1500_v46  ;;  %v281_v36 = vld [vmem:[#allocation3 + $0x700] sm:$0xff]  ;;  %v590_v46 = vld [vmem:[#allocation6 + $0x708] sm:$0xff]  ;;  %v1510_v12 = vmin.f32 %v3809_v45, 1.0 }
 0x1c2   :  { %v897_v53 = vsub.f32 %v281_v36, %v589_v37  ;;  %v3817_v1 = vand.u32 2147483647, %v896_v42  ;;  %v1817_v22 = vmul.f32 0.5, %v1509_v3 }
 0x1c3   :  { %v2725_v61 = vadd.f32 %v2724_v52, %v2417_v40  ;;  %v2118_v40 = vsub.f32 %v3777_v44, %v1810_v21  ;;  %v2425_v52 = vmul.f32 %v2117_v31, %v1501_v55  ;;  %v282_v44 = vld [vmem:[#allocation3 + $0x708] sm:$0xff]  ;;  %v591_v55 = vld [vmem:[#allocation6 + $0x710] sm:$0xff]  ;;  %v1511_v21 = vmin.f32 %v3813_v54, 1.0 }
 0x1c4   :  { %v898_v0 = vsub.f32 %v282_v44, %v590_v46  ;;  %v3821_v9 = vand.u32 2147483647, %v897_v53  ;;  %v1818_v31 = vmul.f32 0.5, %v1510_v12 }
 0x1c5   :  { %v2726_v6 = vadd.f32 %v2725_v61, %v2418_v51  ;;  %v2119_v51 = vsub.f32 %v3781_v50, %v1811_v30  ;;  %v2426_v61 = vmul.f32 %v2118_v40, %v1502_v2  ;;  %v283_v50 = vld [vmem:[#allocation3 + $0x710] sm:$0xff]  ;;  %v592_v2 = vld [vmem:[#allocation6 + $0x718] sm:$0xff]  ;;  %v1512_v30 = vmin.f32 %v3817_v1, 1.0 }
 0x1c6   :  { %v899_v8 = vsub.f32 %v283_v50, %v591_v55  ;;  %v3825_v19 = vand.u32 2147483647, %v898_v0  ;;  %v1819_v40 = vmul.f32 0.5, %v1511_v21 }
 0x1c7   :  { %v2727_v17 = vadd.f32 %v2726_v6, %v2419_v60  ;;  %v2120_v60 = vsub.f32 %v3785_v58, %v1812_v39  ;;  %v2427_v6 = vmul.f32 %v2119_v51, %v1503_v11  ;;  %v284_v58 = vld [vmem:[#allocation3 + $0x718] sm:$0xff]  ;;  %v593_v11 = vld [vmem:[#allocation6 + $0x720] sm:$0xff]  ;;  %v1513_v39 = vmin.f32 %v3821_v9, 1.0 }
 0x1c8   :  { %v900_v18 = vsub.f32 %v284_v58, %v592_v2  ;;  %v3829_v28 = vand.u32 2147483647, %v899_v8  ;;  %v1820_v51 = vmul.f32 0.5, %v1512_v30 }
 0x1c9   :  { %v2728_v26 = vadd.f32 %v2727_v17, %v2420_v5  ;;  %v2121_v5 = vsub.f32 %v3789_v63, %v1813_v49  ;;  %v2428_v17 = vmul.f32 %v2120_v60, %v1504_v20  ;;  %v285_v63 = vld [vmem:[#allocation3 + $0x720] sm:$0xff]  ;;  %v594_v20 = vld [vmem:[#allocation6 + $0x728] sm:$0xff]  ;;  %v1514_v49 = vmin.f32 %v3825_v19, 1.0 }
 0x1ca   :  { %v901_v27 = vsub.f32 %v285_v63, %v593_v11  ;;  %v3833_v37 = vand.u32 2147483647, %v900_v18  ;;  %v1821_v60 = vmul.f32 0.5, %v1513_v39 }
 0x1cb   :  { %v2729_v35 = vadd.f32 %v2728_v26, %v2421_v14  ;;  %v2122_v14 = vsub.f32 %v3793_v10, %v1814_v59  ;;  %v2429_v26 = vmul.f32 %v2121_v5, %v1505_v29  ;;  %v286_v10 = vld [vmem:[#allocation3 + $0x728] sm:$0xff]  ;;  %v595_v29 = vld [vmem:[#allocation6 + $0x730] sm:$0xff]  ;;  %v1515_v59 = vmin.f32 %v3829_v28, 1.0 }
 0x1cc   :  { %v902_v36 = vsub.f32 %v286_v10, %v594_v20  ;;  %v3837_v46 = vand.u32 2147483647, %v901_v27  ;;  %v1822_v5 = vmul.f32 0.5, %v1514_v49 }
 0x1cd   :  { %v2730_v43 = vadd.f32 %v2729_v35, %v2422_v23  ;;  %v2123_v23 = vsub.f32 %v3797_v16, %v1815_v4  ;;  %v2430_v35 = vmul.f32 %v2122_v14, %v1506_v38  ;;  %v287_v16 = vld [vmem:[#allocation3 + $0x730] sm:$0xff]  ;;  %v596_v38 = vld [vmem:[#allocation6 + $0x738] sm:$0xff]  ;;  %v1516_v4 = vmin.f32 %v3833_v37, 1.0 }
 0x1ce   :  { %v903_v44 = vsub.f32 %v287_v16, %v595_v29  ;;  %v3841_v55 = vand.u32 2147483647, %v902_v36  ;;  %v1823_v14 = vmul.f32 0.5, %v1515_v59 }
 0x1cf   :  { %v2731_v47 = vadd.f32 %v2730_v43, %v2423_v32  ;;  %v2124_v32 = vsub.f32 %v3801_v25, %v1816_v13  ;;  %v2431_v43 = vmul.f32 %v2123_v23, %v1507_v48  ;;  %v288_v25 = vld [vmem:[#allocation3 + $0x738] sm:$0xff]  ;;  %v597_v48 = vld [vmem:[#allocation6 + $0x740] sm:$0xff]  ;;  %v1517_v13 = vmin.f32 %v3837_v46, 1.0 }
 0x1d0   :  { %v904_v50 = vsub.f32 %v288_v25, %v596_v38  ;;  %v3845_v2 = vand.u32 2147483647, %v903_v44  ;;  %v1824_v23 = vmul.f32 0.5, %v1516_v4 }
 0x1d1   :  { %v2732_v57 = vadd.f32 %v2731_v47, %v2424_v41  ;;  %v2125_v41 = vsub.f32 %v3805_v34, %v1817_v22  ;;  %v2432_v47 = vmul.f32 %v2124_v32, %v1508_v56  ;;  %v289_v34 = vld [vmem:[#allocation3 + $0x740] sm:$0xff]  ;;  %v598_v56 = vld [vmem:[#allocation6 + $0x748] sm:$0xff]  ;;  %v1518_v22 = vmin.f32 %v3841_v55, 1.0 }
 0x1d2   :  { %v905_v58 = vsub.f32 %v289_v34, %v597_v48  ;;  %v3849_v11 = vand.u32 2147483647, %v904_v50  ;;  %v1825_v32 = vmul.f32 0.5, %v1517_v13 }
 0x1d3   :  { %v2733_v62 = vadd.f32 %v2732_v57, %v2425_v52  ;;  %v2126_v52 = vsub.f32 %v3809_v45, %v1818_v31  ;;  %v2433_v57 = vmul.f32 %v2125_v41, %v1509_v3  ;;  %v290_v45 = vld [vmem:[#allocation3 + $0x748] sm:$0xff]  ;;  %v599_v3 = vld [vmem:[#allocation6 + $0x750] sm:$0xff]  ;;  %v1519_v31 = vmin.f32 %v3845_v2, 1.0 }
 0x1d4   :  { %v906_v63 = vsub.f32 %v290_v45, %v598_v56  ;;  %v3853_v20 = vand.u32 2147483647, %v905_v58  ;;  %v1826_v41 = vmul.f32 0.5, %v1518_v22 }
 0x1d5   :  { %v2734_v7 = vadd.f32 %v2733_v62, %v2426_v61  ;;  %v2127_v61 = vsub.f32 %v3813_v54, %v1819_v40  ;;  %v2434_v62 = vmul.f32 %v2126_v52, %v1510_v12  ;;  %v291_v54 = vld [vmem:[#allocation3 + $0x750] sm:$0xff]  ;;  %v600_v12 = vld [vmem:[#allocation6 + $0x758] sm:$0xff]  ;;  %v1520_v40 = vmin.f32 %v3849_v11, 1.0 }
 0x1d6   :  { %v907_v10 = vsub.f32 %v291_v54, %v599_v3  ;;  %v3857_v29 = vand.u32 2147483647, %v906_v63  ;;  %v1827_v52 = vmul.f32 0.5, %v1519_v31 }
 0x1d7   :  { %v2735_v15 = vadd.f32 %v2734_v7, %v2427_v6  ;;  %v2128_v6 = vsub.f32 %v3817_v1, %v1820_v51  ;;  %v2435_v7 = vmul.f32 %v2127_v61, %v1511_v21  ;;  %v292_v1 = vld [vmem:[#allocation3 + $0x758] sm:$0xff]  ;;  %v601_v21 = vld [vmem:[#allocation6 + $0x760] sm:$0xff]  ;;  %v1521_v51 = vmin.f32 %v3853_v20, 1.0 }
 0x1d8   :  { %v908_v16 = vsub.f32 %v292_v1, %v600_v12  ;;  %v3861_v38 = vand.u32 2147483647, %v907_v10  ;;  %v1828_v61 = vmul.f32 0.5, %v1520_v40 }
 0x1d9   :  { %v2736_v24 = vadd.f32 %v2735_v15, %v2428_v17  ;;  %v2129_v17 = vsub.f32 %v3821_v9, %v1821_v60  ;;  %v2436_v15 = vmul.f32 %v2128_v6, %v1512_v30  ;;  %v293_v9 = vld [vmem:[#allocation3 + $0x760] sm:$0xff]  ;;  %v602_v30 = vld [vmem:[#allocation6 + $0x768] sm:$0xff]  ;;  %v1522_v60 = vmin.f32 %v3857_v29, 1.0 }
 0x1da   :  { %v909_v25 = vsub.f32 %v293_v9, %v601_v21  ;;  %v3865_v48 = vand.u32 2147483647, %v908_v16  ;;  %v1829_v6 = vmul.f32 0.5, %v1521_v51 }
 0x1db   :  { %v2737_v33 = vadd.f32 %v2736_v24, %v2429_v26  ;;  %v2130_v26 = vsub.f32 %v3825_v19, %v1822_v5  ;;  %v2437_v24 = vmul.f32 %v2129_v17, %v1513_v39  ;;  %v294_v19 = vld [vmem:[#allocation3 + $0x768] sm:$0xff]  ;;  %v603_v39 = vld [vmem:[#allocation6 + $0x770] sm:$0xff]  ;;  %v1523_v5 = vmin.f32 %v3861_v38, 1.0 }
 0x1dc   :  { %v910_v34 = vsub.f32 %v294_v19, %v602_v30  ;;  %v3869_v56 = vand.u32 2147483647, %v909_v25  ;;  %v1830_v17 = vmul.f32 0.5, %v1522_v60 }
 0x1dd   :  { %v2738_v42 = vadd.f32 %v2737_v33, %v2430_v35  ;;  %v2131_v35 = vsub.f32 %v3829_v28, %v1823_v14  ;;  %v2438_v33 = vmul.f32 %v2130_v26, %v1514_v49  ;;  %v295_v28 = vld [vmem:[#allocation3 + $0x770] sm:$0xff]  ;;  %v604_v49 = vld [vmem:[#allocation6 + $0x778] sm:$0xff]  ;;  %v1524_v14 = vmin.f32 %v3865_v48, 1.0 }
 0x1de   :  { %v911_v45 = vsub.f32 %v295_v28, %v603_v39  ;;  %v3873_v3 = vand.u32 2147483647, %v910_v34  ;;  %v1831_v26 = vmul.f32 0.5, %v1523_v5 }
 0x1df   :  { %v2739_v53 = vadd.f32 %v2738_v42, %v2431_v43  ;;  %v2132_v43 = vsub.f32 %v3833_v37, %v1824_v23  ;;  %v2439_v42 = vmul.f32 %v2131_v35, %v1515_v59  ;;  %v296_v37 = vld [vmem:[#allocation3 + $0x778] sm:$0xff]  ;;  %v605_v59 = vld [vmem:[#allocation6 + $0x780] sm:$0xff]  ;;  %v1525_v23 = vmin.f32 %v3869_v56, 1.0 }
 0x1e0   :  { %v912_v54 = vsub.f32 %v296_v37, %v604_v49  ;;  %v3877_v12 = vand.u32 2147483647, %v911_v45  ;;  %v1832_v35 = vmul.f32 0.5, %v1524_v14 }
 0x1e1   :  { %v2740_v0 = vadd.f32 %v2739_v53, %v2432_v47  ;;  %v2133_v47 = vsub.f32 %v3837_v46, %v1825_v32  ;;  %v2440_v53 = vmul.f32 %v2132_v43, %v1516_v4  ;;  %v297_v46 = vld [vmem:[#allocation3 + $0x780] sm:$0xff]  ;;  %v606_v4 = vld [vmem:[#allocation6 + $0x788] sm:$0xff]  ;;  %v1526_v32 = vmin.f32 %v3873_v3, 1.0 }
 0x1e2   :  { %v913_v1 = vsub.f32 %v297_v46, %v605_v59  ;;  %v3881_v21 = vand.u32 2147483647, %v912_v54  ;;  %v1833_v43 = vmul.f32 0.5, %v1525_v23 }
 0x1e3   :  { %v2741_v8 = vadd.f32 %v2740_v0, %v2433_v57  ;;  %v2134_v57 = vsub.f32 %v3841_v55, %v1826_v41  ;;  %v2441_v0 = vmul.f32 %v2133_v47, %v1517_v13  ;;  %v298_v55 = vld [vmem:[#allocation3 + $0x788] sm:$0xff]  ;;  %v607_v13 = vld [vmem:[#allocation6 + $0x790] sm:$0xff]  ;;  %v1527_v41 = vmin.f32 %v3877_v12, 1.0 }
 0x1e4   :  { %v914_v9 = vsub.f32 %v298_v55, %v606_v4  ;;  %v3885_v30 = vand.u32 2147483647, %v913_v1  ;;  %v1834_v47 = vmul.f32 0.5, %v1526_v32 }
 0x1e5   :  { %v2742_v18 = vadd.f32 %v2741_v8, %v2434_v62  ;;  %v2135_v62 = vsub.f32 %v3845_v2, %v1827_v52  ;;  %v2442_v8 = vmul.f32 %v2134_v57, %v1518_v22  ;;  %v299_v2 = vld [vmem:[#allocation3 + $0x790] sm:$0xff]  ;;  %v608_v22 = vld [vmem:[#allocation6 + $0x798] sm:$0xff]  ;;  %v1528_v52 = vmin.f32 %v3881_v21, 1.0 }
 0x1e6   :  { %v915_v19 = vsub.f32 %v299_v2, %v607_v13  ;;  %v3889_v39 = vand.u32 2147483647, %v914_v9  ;;  %v1835_v57 = vmul.f32 0.5, %v1527_v41 }
 0x1e7   :  { %v2743_v27 = vadd.f32 %v2742_v18, %v2435_v7  ;;  %v2136_v7 = vsub.f32 %v3849_v11, %v1828_v61  ;;  %v2443_v18 = vmul.f32 %v2135_v62, %v1519_v31  ;;  %v300_v11 = vld [vmem:[#allocation3 + $0x798] sm:$0xff]  ;;  %v609_v31 = vld [vmem:[#allocation6 + $0x7a0] sm:$0xff]  ;;  %v1529_v61 = vmin.f32 %v3885_v30, 1.0 }
 0x1e8   :  { %v916_v28 = vsub.f32 %v300_v11, %v608_v22  ;;  %v3893_v49 = vand.u32 2147483647, %v915_v19  ;;  %v1836_v62 = vmul.f32 0.5, %v1528_v52 }
 0x1e9   :  { %v2744_v36 = vadd.f32 %v2743_v27, %v2436_v15  ;;  %v2137_v15 = vsub.f32 %v3853_v20, %v1829_v6  ;;  %v2444_v27 = vmul.f32 %v2136_v7, %v1520_v40  ;;  %v301_v20 = vld [vmem:[#allocation3 + $0x7a0] sm:$0xff]  ;;  %v610_v40 = vld [vmem:[#allocation6 + $0x7a8] sm:$0xff]  ;;  %v1530_v6 = vmin.f32 %v3889_v39, 1.0 }
 0x1ea   :  { %v917_v37 = vsub.f32 %v301_v20, %v609_v31  ;;  %v3897_v59 = vand.u32 2147483647, %v916_v28  ;;  %v1837_v7 = vmul.f32 0.5, %v1529_v61 }
 0x1eb   :  { %v2745_v44 = vadd.f32 %v2744_v36, %v2437_v24  ;;  %v2138_v24 = vsub.f32 %v3857_v29, %v1830_v17  ;;  %v2445_v36 = vmul.f32 %v2137_v15, %v1521_v51  ;;  %v302_v29 = vld [vmem:[#allocation3 + $0x7a8] sm:$0xff]  ;;  %v611_v51 = vld [vmem:[#allocation6 + $0x7b0] sm:$0xff]  ;;  %v1531_v17 = vmin.f32 %v3893_v49, 1.0 }
 0x1ec   :  { %v918_v46 = vsub.f32 %v302_v29, %v610_v40  ;;  %v3901_v4 = vand.u32 2147483647, %v917_v37  ;;  %v1838_v15 = vmul.f32 0.5, %v1530_v6 }
 0x1ed   :  { %v2746_v50 = vadd.f32 %v2745_v44, %v2438_v33  ;;  %v2139_v33 = vsub.f32 %v3861_v38, %v1831_v26  ;;  %v2446_v44 = vmul.f32 %v2138_v24, %v1522_v60  ;;  %v303_v38 = vld [vmem:[#allocation3 + $0x7b0] sm:$0xff]  ;;  %v612_v60 = vld [vmem:[#allocation6 + $0x7b8] sm:$0xff]  ;;  %v1532_v26 = vmin.f32 %v3897_v59, 1.0 }
 0x1ee   :  { %v919_v55 = vsub.f32 %v303_v38, %v611_v51  ;;  %v3905_v13 = vand.u32 2147483647, %v918_v46  ;;  %v1839_v24 = vmul.f32 0.5, %v1531_v17 }
 0x1ef   :  { %v2747_v58 = vadd.f32 %v2746_v50, %v2439_v42  ;;  %v2140_v42 = vsub.f32 %v3865_v48, %v1832_v35  ;;  %v2447_v50 = vmul.f32 %v2139_v33, %v1523_v5  ;;  %v304_v48 = vld [vmem:[#allocation3 + $0x7b8] sm:$0xff]  ;;  %v613_v5 = vld [vmem:[#allocation6 + $0x7c0] sm:$0xff]  ;;  %v1533_v35 = vmin.f32 %v3901_v4, 1.0 }
 0x1f0   :  { %v920_v2 = vsub.f32 %v304_v48, %v612_v60  ;;  %v3909_v22 = vand.u32 2147483647, %v919_v55  ;;  %v1840_v33 = vmul.f32 0.5, %v1532_v26 }
 0x1f1   :  { %v2748_v63 = vadd.f32 %v2747_v58, %v2440_v53  ;;  %v2141_v53 = vsub.f32 %v3869_v56, %v1833_v43  ;;  %v2448_v58 = vmul.f32 %v2140_v42, %v1524_v14  ;;  %v305_v56 = vld [vmem:[#allocation3 + $0x7c0] sm:$0xff]  ;;  %v614_v14 = vld [vmem:[#allocation6 + $0x7c8] sm:$0xff]  ;;  %v1534_v43 = vmin.f32 %v3905_v13, 1.0 }
 0x1f2   :  { %v921_v11 = vsub.f32 %v305_v56, %v613_v5  ;;  %v3913_v31 = vand.u32 2147483647, %v920_v2  ;;  %v1841_v42 = vmul.f32 0.5, %v1533_v35 }
 0x1f3   :  { %v2749_v10 = vadd.f32 %v2748_v63, %v2441_v0  ;;  %v2142_v0 = vsub.f32 %v3873_v3, %v1834_v47  ;;  %v2449_v63 = vmul.f32 %v2141_v53, %v1525_v23  ;;  %v306_v3 = vld [vmem:[#allocation3 + $0x7c8] sm:$0xff]  ;;  %v615_v23 = vld [vmem:[#allocation6 + $0x7d0] sm:$0xff]  ;;  %v1535_v47 = vmin.f32 %v3909_v22, 1.0 }
 0x1f4   :  { %v922_v20 = vsub.f32 %v306_v3, %v614_v14  ;;  %v3917_v40 = vand.u32 2147483647, %v921_v11  ;;  %v1842_v53 = vmul.f32 0.5, %v1534_v43 }
 0x1f5   :  { %v2750_v16 = vadd.f32 %v2749_v10, %v2442_v8  ;;  %v2143_v8 = vsub.f32 %v3877_v12, %v1835_v57  ;;  %v2450_v10 = vmul.f32 %v2142_v0, %v1526_v32  ;;  %v307_v12 = vld [vmem:[#allocation3 + $0x7d0] sm:$0xff]  ;;  %v616_v32 = vld [vmem:[#allocation6 + $0x7d8] sm:$0xff]  ;;  %v1536_v57 = vmin.f32 %v3913_v31, 1.0 }
 0x1f6   :  { %v923_v29 = vsub.f32 %v307_v12, %v615_v23  ;;  %v3921_v51 = vand.u32 2147483647, %v922_v20  ;;  %v1843_v0 = vmul.f32 0.5, %v1535_v47 }
 0x1f7   :  { %v2751_v25 = vadd.f32 %v2750_v16, %v2443_v18  ;;  %v2144_v18 = vsub.f32 %v3881_v21, %v1836_v62  ;;  %v2451_v16 = vmul.f32 %v2143_v8, %v1527_v41  ;;  %v308_v21 = vld [vmem:[#allocation3 + $0x7d8] sm:$0xff]  ;;  %v617_v41 = vld [vmem:[#allocation6 + $0x7e0] sm:$0xff]  ;;  %v1537_v62 = vmin.f32 %v3917_v40, 1.0 }
 0x1f8   :  { %v924_v38 = vsub.f32 %v308_v21, %v616_v32  ;;  %v3925_v60 = vand.u32 2147483647, %v923_v29  ;;  %v1844_v8 = vmul.f32 0.5, %v1536_v57 }
 0x1f9   :  { %v2752_v34 = vadd.f32 %v2751_v25, %v2444_v27  ;;  %v2145_v27 = vsub.f32 %v3885_v30, %v1837_v7  ;;  %v2452_v25 = vmul.f32 %v2144_v18, %v1528_v52  ;;  %v309_v30 = vld [vmem:[#allocation3 + $0x7e0] sm:$0xff]  ;;  %v618_v52 = vld [vmem:[#allocation6 + $0x7e8] sm:$0xff]  ;;  %v1538_v7 = vmin.f32 %v3921_v51, 1.0 }
 0x1fa   :  { %v925_v48 = vsub.f32 %v309_v30, %v617_v41  ;;  %v3929_v5 = vand.u32 2147483647, %v924_v38  ;;  %v1845_v18 = vmul.f32 0.5, %v1537_v62 }
 0x1fb   :  { %v2753_v45 = vadd.f32 %v2752_v34, %v2445_v36  ;;  %v2146_v36 = vsub.f32 %v3889_v39, %v1838_v15  ;;  %v2453_v34 = vmul.f32 %v2145_v27, %v1529_v61  ;;  %v310_v39 = vld [vmem:[#allocation3 + $0x7e8] sm:$0xff]  ;;  %v619_v61 = vld [vmem:[#allocation6 + $0x7f0] sm:$0xff]  ;;  %v1539_v15 = vmin.f32 %v3925_v60, 1.0 }
 0x1fc   :  { %v926_v56 = vsub.f32 %v310_v39, %v618_v52  ;;  %v3933_v14 = vand.u32 2147483647, %v925_v48  ;;  %v1846_v27 = vmul.f32 0.5, %v1538_v7 }
 0x1fd   :  { %v2754_v54 = vadd.f32 %v2753_v45, %v2446_v44  ;;  %v2147_v44 = vsub.f32 %v3893_v49, %v1839_v24  ;;  %v2454_v45 = vmul.f32 %v2146_v36, %v1530_v6  ;;  %v311_v49 = vld [vmem:[#allocation3 + $0x7f0] sm:$0xff]  ;;  %v620_v6 = vld [vmem:[#allocation6 + $0x7f8] sm:$0xff]  ;;  %v1540_v24 = vmin.f32 %v3929_v5, 1.0 }
 0x1fe   :  { %v927_v3 = vsub.f32 %v311_v49, %v619_v61  ;;  %v3937_v23 = vand.u32 2147483647, %v926_v56  ;;  %v1847_v36 = vmul.f32 0.5, %v1539_v15 }
 0x1ff   :  { %v2755_v1 = vadd.f32 %v2754_v54, %v2447_v50  ;;  %v2148_v50 = vsub.f32 %v3897_v59, %v1840_v33  ;;  %v2455_v54 = vmul.f32 %v2147_v44, %v1531_v17  ;;  %v312_v59 = vld [vmem:[#allocation3 + $0x7f8] sm:$0xff]  ;;  %v621_v17 = vld [vmem:[#allocation6 + $0x800] sm:$0xff]  ;;  %v1541_v33 = vmin.f32 %v3933_v14, 1.0 }
 0x200   :  { %v928_v12 = vsub.f32 %v312_v59, %v620_v6  ;;  %v3941_v32 = vand.u32 2147483647, %v927_v3  ;;  %v1848_v44 = vmul.f32 0.5, %v1540_v24 }
 0x201   :  { %v2756_v9 = vadd.f32 %v2755_v1, %v2448_v58  ;;  %v2149_v58 = vsub.f32 %v3901_v4, %v1841_v42  ;;  %v2456_v1 = vmul.f32 %v2148_v50, %v1532_v26  ;;  %v313_v4 = vld [vmem:[#allocation3 + $0x800] sm:$0xff]  ;;  %v622_v26 = vld [vmem:[#allocation6 + $0x808] sm:$0xff]  ;;  %v1542_v42 = vmin.f32 %v3937_v23, 1.0 }
 0x202   :  { %v929_v21 = vsub.f32 %v313_v4, %v621_v17  ;;  %v3945_v41 = vand.u32 2147483647, %v928_v12  ;;  %v1849_v50 = vmul.f32 0.5, %v1541_v33 }
 0x203   :  { %v2757_v19 = vadd.f32 %v2756_v9, %v2449_v63  ;;  %v2150_v63 = vsub.f32 %v3905_v13, %v1842_v53  ;;  %v2457_v9 = vmul.f32 %v2149_v58, %v1533_v35  ;;  %v314_v13 = vld [vmem:[#allocation3 + $0x808] sm:$0xff]  ;;  %v623_v35 = vld [vmem:[#allocation6 + $0x810] sm:$0xff]  ;;  %v1543_v53 = vmin.f32 %v3941_v32, 1.0 }
 0x204   :  { %v930_v30 = vsub.f32 %v314_v13, %v622_v26  ;;  %v3949_v52 = vand.u32 2147483647, %v929_v21  ;;  %v1850_v58 = vmul.f32 0.5, %v1542_v42 }
 0x205   :  { %v2758_v28 = vadd.f32 %v2757_v19, %v2450_v10  ;;  %v2151_v10 = vsub.f32 %v3909_v22, %v1843_v0  ;;  %v2458_v19 = vmul.f32 %v2150_v63, %v1534_v43  ;;  %v315_v22 = vld [vmem:[#allocation3 + $0x810] sm:$0xff]  ;;  %v624_v43 = vld [vmem:[#allocation6 + $0x818] sm:$0xff]  ;;  %v1544_v0 = vmin.f32 %v3945_v41, 1.0 }
 0x206   :  { %v931_v39 = vsub.f32 %v315_v22, %v623_v35  ;;  %v3953_v61 = vand.u32 2147483647, %v930_v30  ;;  %v1851_v63 = vmul.f32 0.5, %v1543_v53 }
 0x207   :  { %v2759_v37 = vadd.f32 %v2758_v28, %v2451_v16  ;;  %v2152_v16 = vsub.f32 %v3913_v31, %v1844_v8  ;;  %v2459_v28 = vmul.f32 %v2151_v10, %v1535_v47  ;;  %v316_v31 = vld [vmem:[#allocation3 + $0x818] sm:$0xff]  ;;  %v625_v47 = vld [vmem:[#allocation6 + $0x820] sm:$0xff]  ;;  %v1545_v8 = vmin.f32 %v3949_v52, 1.0 }
 0x208   :  { %v932_v49 = vsub.f32 %v316_v31, %v624_v43  ;;  %v3957_v6 = vand.u32 2147483647, %v931_v39  ;;  %v1852_v10 = vmul.f32 0.5, %v1544_v0 }
 0x209   :  { %v2760_v46 = vadd.f32 %v2759_v37, %v2452_v25  ;;  %v2153_v25 = vsub.f32 %v3917_v40, %v1845_v18  ;;  %v2460_v37 = vmul.f32 %v2152_v16, %v1536_v57  ;;  %v317_v40 = vld [vmem:[#allocation3 + $0x820] sm:$0xff]  ;;  %v626_v57 = vld [vmem:[#allocation6 + $0x828] sm:$0xff]  ;;  %v1546_v18 = vmin.f32 %v3953_v61, 1.0 }
 0x20a   :  { %v933_v59 = vsub.f32 %v317_v40, %v625_v47  ;;  %v3961_v17 = vand.u32 2147483647, %v932_v49  ;;  %v1853_v16 = vmul.f32 0.5, %v1545_v8 }
 0x20b   :  { %v2761_v55 = vadd.f32 %v2760_v46, %v2453_v34  ;;  %v2154_v34 = vsub.f32 %v3921_v51, %v1846_v27  ;;  %v2461_v46 = vmul.f32 %v2153_v25, %v1537_v62  ;;  %v318_v51 = vld [vmem:[#allocation3 + $0x828] sm:$0xff]  ;;  %v627_v62 = vld [vmem:[#allocation6 + $0x830] sm:$0xff]  ;;  %v1547_v27 = vmin.f32 %v3957_v6, 1.0 }
 0x20c   :  { %v934_v4 = vsub.f32 %v318_v51, %v626_v57  ;;  %v3965_v26 = vand.u32 2147483647, %v933_v59  ;;  %v1854_v25 = vmul.f32 0.5, %v1546_v18 }
 0x20d   :  { %v2762_v2 = vadd.f32 %v2761_v55, %v2454_v45  ;;  %v2155_v45 = vsub.f32 %v3925_v60, %v1847_v36  ;;  %v2462_v55 = vmul.f32 %v2154_v34, %v1538_v7  ;;  %v319_v60 = vld [vmem:[#allocation3 + $0x830] sm:$0xff]  ;;  %v628_v7 = vld [vmem:[#allocation6 + $0x838] sm:$0xff]  ;;  %v1548_v36 = vmin.f32 %v3961_v17, 1.0 }
 0x20e   :  { %v935_v13 = vsub.f32 %v319_v60, %v627_v62  ;;  %v3969_v35 = vand.u32 2147483647, %v934_v4  ;;  %v1855_v34 = vmul.f32 0.5, %v1547_v27 }
 0x20f   :  { %v2763_v11 = vadd.f32 %v2762_v2, %v2455_v54  ;;  %v2156_v54 = vsub.f32 %v3929_v5, %v1848_v44  ;;  %v2463_v2 = vmul.f32 %v2155_v45, %v1539_v15  ;;  %v320_v5 = vld [vmem:[#allocation3 + $0x838] sm:$0xff]  ;;  %v629_v15 = vld [vmem:[#allocation6 + $0x840] sm:$0xff]  ;;  %v1549_v44 = vmin.f32 %v3965_v26, 1.0 }
 0x210   :  { %v936_v22 = vsub.f32 %v320_v5, %v628_v7  ;;  %v3973_v43 = vand.u32 2147483647, %v935_v13  ;;  %v1856_v45 = vmul.f32 0.5, %v1548_v36 }
 0x211   :  { %v2764_v20 = vadd.f32 %v2763_v11, %v2456_v1  ;;  %v2157_v1 = vsub.f32 %v3933_v14, %v1849_v50  ;;  %v2464_v11 = vmul.f32 %v2156_v54, %v1540_v24  ;;  %v321_v14 = vld [vmem:[#allocation3 + $0x840] sm:$0xff]  ;;  %v630_v24 = vld [vmem:[#allocation6 + $0x848] sm:$0xff]  ;;  %v1550_v50 = vmin.f32 %v3969_v35, 1.0 }
 0x212   :  { %v937_v31 = vsub.f32 %v321_v14, %v629_v15  ;;  %v3977_v47 = vand.u32 2147483647, %v936_v22  ;;  %v1857_v54 = vmul.f32 0.5, %v1549_v44 }
 0x213   :  { %v2765_v29 = vadd.f32 %v2764_v20, %v2457_v9  ;;  %v2158_v9 = vsub.f32 %v3937_v23, %v1850_v58  ;;  %v2465_v20 = vmul.f32 %v2157_v1, %v1541_v33  ;;  %v322_v23 = vld [vmem:[#allocation3 + $0x848] sm:$0xff]  ;;  %v631_v33 = vld [vmem:[#allocation6 + $0x850] sm:$0xff]  ;;  %v1551_v58 = vmin.f32 %v3973_v43, 1.0 }
 0x214   :  { %v938_v40 = vsub.f32 %v322_v23, %v630_v24  ;;  %v3981_v57 = vand.u32 2147483647, %v937_v31  ;;  %v1858_v1 = vmul.f32 0.5, %v1550_v50 }
 0x215   :  { %v2766_v38 = vadd.f32 %v2765_v29, %v2458_v19  ;;  %v2159_v19 = vsub.f32 %v3941_v32, %v1851_v63  ;;  %v2466_v29 = vmul.f32 %v2158_v9, %v1542_v42  ;;  %v323_v32 = vld [vmem:[#allocation3 + $0x850] sm:$0xff]  ;;  %v632_v42 = vld [vmem:[#allocation6 + $0x858] sm:$0xff]  ;;  %v1552_v63 = vmin.f32 %v3977_v47, 1.0 }
 0x216   :  { %v939_v51 = vsub.f32 %v323_v32, %v631_v33  ;;  %v3985_v62 = vand.u32 2147483647, %v938_v40  ;;  %v1859_v9 = vmul.f32 0.5, %v1551_v58 }
 0x217   :  { %v2767_v48 = vadd.f32 %v2766_v38, %v2459_v28  ;;  %v2160_v28 = vsub.f32 %v3945_v41, %v1852_v10  ;;  %v2467_v38 = vmul.f32 %v2159_v19, %v1543_v53  ;;  %v324_v41 = vld [vmem:[#allocation3 + $0x858] sm:$0xff]  ;;  %v633_v53 = vld [vmem:[#allocation6 + $0x860] sm:$0xff]  ;;  %v1553_v10 = vmin.f32 %v3981_v57, 1.0 }
 0x218   :  { %v940_v60 = vsub.f32 %v324_v41, %v632_v42  ;;  %v3989_v7 = vand.u32 2147483647, %v939_v51  ;;  %v1860_v19 = vmul.f32 0.5, %v1552_v63 }
 0x219   :  { %v2768_v56 = vadd.f32 %v2767_v48, %v2460_v37  ;;  %v2161_v37 = vsub.f32 %v3949_v52, %v1853_v16  ;;  %v2468_v48 = vmul.f32 %v2160_v28, %v1544_v0  ;;  %v325_v52 = vld [vmem:[#allocation3 + $0x860] sm:$0xff]  ;;  %v634_v0 = vld [vmem:[#allocation6 + $0x868] sm:$0xff]  ;;  %v1554_v16 = vmin.f32 %v3985_v62, 1.0 }
 0x21a   :  { %v941_v5 = vsub.f32 %v325_v52, %v633_v53  ;;  %v3993_v15 = vand.u32 2147483647, %v940_v60  ;;  %v1861_v28 = vmul.f32 0.5, %v1553_v10 }
 0x21b   :  { %v2769_v3 = vadd.f32 %v2768_v56, %v2461_v46  ;;  %v2162_v46 = vsub.f32 %v3953_v61, %v1854_v25  ;;  %v2469_v56 = vmul.f32 %v2161_v37, %v1545_v8  ;;  %v326_v61 = vld [vmem:[#allocation3 + $0x868] sm:$0xff]  ;;  %v635_v8 = vld [vmem:[#allocation6 + $0x870] sm:$0xff]  ;;  %v1555_v25 = vmin.f32 %v3989_v7, 1.0 }
 0x21c   :  { %v942_v14 = vsub.f32 %v326_v61, %v634_v0  ;;  %v3997_v24 = vand.u32 2147483647, %v941_v5  ;;  %v1862_v37 = vmul.f32 0.5, %v1554_v16 }
 0x21d   :  { %v2770_v12 = vadd.f32 %v2769_v3, %v2462_v55  ;;  %v2163_v55 = vsub.f32 %v3957_v6, %v1855_v34  ;;  %v2470_v3 = vmul.f32 %v2162_v46, %v1546_v18  ;;  %v327_v6 = vld [vmem:[#allocation3 + $0x870] sm:$0xff]  ;;  %v636_v18 = vld [vmem:[#allocation6 + $0x878] sm:$0xff]  ;;  %v1556_v34 = vmin.f32 %v3993_v15, 1.0 }
 0x21e   :  { %v943_v23 = vsub.f32 %v327_v6, %v635_v8  ;;  %v4001_v33 = vand.u32 2147483647, %v942_v14  ;;  %v1863_v46 = vmul.f32 0.5, %v1555_v25 }
 0x21f   :  { %v2771_v21 = vadd.f32 %v2770_v12, %v2463_v2  ;;  %v2164_v2 = vsub.f32 %v3961_v17, %v1856_v45  ;;  %v2471_v12 = vmul.f32 %v2163_v55, %v1547_v27  ;;  %v328_v17 = vld [vmem:[#allocation3 + $0x878] sm:$0xff]  ;;  %v637_v27 = vld [vmem:[#allocation6 + $0x880] sm:$0xff]  ;;  %v1557_v45 = vmin.f32 %v3997_v24, 1.0 }
 0x220   :  { %v944_v32 = vsub.f32 %v328_v17, %v636_v18  ;;  %v4005_v42 = vand.u32 2147483647, %v943_v23  ;;  %v1864_v55 = vmul.f32 0.5, %v1556_v34 }
 0x221   :  { %v2772_v30 = vadd.f32 %v2771_v21, %v2464_v11  ;;  %v2165_v11 = vsub.f32 %v3965_v26, %v1857_v54  ;;  %v2472_v21 = vmul.f32 %v2164_v2, %v1548_v36  ;;  %v329_v26 = vld [vmem:[#allocation3 + $0x880] sm:$0xff]  ;;  %v638_v36 = vld [vmem:[#allocation6 + $0x888] sm:$0xff]  ;;  %v1558_v54 = vmin.f32 %v4001_v33, 1.0 }
 0x222   :  { %v945_v41 = vsub.f32 %v329_v26, %v637_v27  ;;  %v4009_v53 = vand.u32 2147483647, %v944_v32  ;;  %v1865_v2 = vmul.f32 0.5, %v1557_v45 }
 0x223   :  { %v2773_v39 = vadd.f32 %v2772_v30, %v2465_v20  ;;  %v2166_v20 = vsub.f32 %v3969_v35, %v1858_v1  ;;  %v2473_v30 = vmul.f32 %v2165_v11, %v1549_v44  ;;  %v330_v35 = vld [vmem:[#allocation3 + $0x888] sm:$0xff]  ;;  %v639_v44 = vld [vmem:[#allocation6 + $0x890] sm:$0xff]  ;;  %v1559_v1 = vmin.f32 %v4005_v42, 1.0 }
 0x224   :  { %v946_v52 = vsub.f32 %v330_v35, %v638_v36  ;;  %v4013_v0 = vand.u32 2147483647, %v945_v41  ;;  %v1866_v11 = vmul.f32 0.5, %v1558_v54 }
 0x225   :  { %v2774_v49 = vadd.f32 %v2773_v39, %v2466_v29  ;;  %v2167_v29 = vsub.f32 %v3973_v43, %v1859_v9  ;;  %v2474_v39 = vmul.f32 %v2166_v20, %v1550_v50  ;;  %v331_v43 = vld [vmem:[#allocation3 + $0x890] sm:$0xff]  ;;  %v640_v50 = vld [vmem:[#allocation6 + $0x898] sm:$0xff]  ;;  %v1560_v9 = vmin.f32 %v4009_v53, 1.0 }
 0x226   :  { %v947_v61 = vsub.f32 %v331_v43, %v639_v44  ;;  %v4017_v8 = vand.u32 2147483647, %v946_v52  ;;  %v1867_v20 = vmul.f32 0.5, %v1559_v1 }
 0x227   :  { %v2775_v59 = vadd.f32 %v2774_v49, %v2467_v38  ;;  %v2168_v38 = vsub.f32 %v3977_v47, %v1860_v19  ;;  %v2475_v49 = vmul.f32 %v2167_v29, %v1551_v58  ;;  %v332_v47 = vld [vmem:[#allocation3 + $0x898] sm:$0xff]  ;;  %v641_v58 = vld [vmem:[#allocation6 + $0x8a0] sm:$0xff]  ;;  %v1561_v19 = vmin.f32 %v4013_v0, 1.0 }
 0x228   :  { %v948_v6 = vsub.f32 %v332_v47, %v640_v50  ;;  %v4021_v18 = vand.u32 2147483647, %v947_v61  ;;  %v1868_v29 = vmul.f32 0.5, %v1560_v9 }
 0x229   :  { %v2776_v4 = vadd.f32 %v2775_v59, %v2468_v48  ;;  %v2169_v48 = vsub.f32 %v3981_v57, %v1861_v28  ;;  %v2476_v59 = vmul.f32 %v2168_v38, %v1552_v63  ;;  %v333_v57 = vld [vmem:[#allocation3 + $0x8a0] sm:$0xff]  ;;  %v642_v63 = vld [vmem:[#allocation6 + $0x8a8] sm:$0xff]  ;;  %v1562_v28 = vmin.f32 %v4017_v8, 1.0 }
 0x22a   :  { %v949_v17 = vsub.f32 %v333_v57, %v641_v58  ;;  %v4025_v27 = vand.u32 2147483647, %v948_v6  ;;  %v1869_v38 = vmul.f32 0.5, %v1561_v19 }
 0x22b   :  { %v2777_v13 = vadd.f32 %v2776_v4, %v2469_v56  ;;  %v2170_v56 = vsub.f32 %v3985_v62, %v1862_v37  ;;  %v2477_v4 = vmul.f32 %v2169_v48, %v1553_v10  ;;  %v334_v62 = vld [vmem:[#allocation3 + $0x8a8] sm:$0xff]  ;;  %v643_v10 = vld [vmem:[#allocation6 + $0x8b0] sm:$0xff]  ;;  %v1563_v37 = vmin.f32 %v4021_v18, 1.0 }
 0x22c   :  { %v950_v26 = vsub.f32 %v334_v62, %v642_v63  ;;  %v4029_v36 = vand.u32 2147483647, %v949_v17  ;;  %v1870_v48 = vmul.f32 0.5, %v1562_v28 }
 0x22d   :  { %v2778_v22 = vadd.f32 %v2777_v13, %v2470_v3  ;;  %v2171_v3 = vsub.f32 %v3989_v7, %v1863_v46  ;;  %v2478_v13 = vmul.f32 %v2170_v56, %v1554_v16  ;;  %v335_v7 = vld [vmem:[#allocation3 + $0x8b0] sm:$0xff]  ;;  %v644_v16 = vld [vmem:[#allocation6 + $0x8b8] sm:$0xff]  ;;  %v1564_v46 = vmin.f32 %v4025_v27, 1.0 }
 0x22e   :  { %v951_v35 = vsub.f32 %v335_v7, %v643_v10  ;;  %v4033_v44 = vand.u32 2147483647, %v950_v26  ;;  %v1871_v56 = vmul.f32 0.5, %v1563_v37 }
 0x22f   :  { %v2779_v31 = vadd.f32 %v2778_v22, %v2471_v12  ;;  %v2172_v12 = vsub.f32 %v3993_v15, %v1864_v55  ;;  %v2479_v22 = vmul.f32 %v2171_v3, %v1555_v25  ;;  %v336_v15 = vld [vmem:[#allocation3 + $0x8b8] sm:$0xff]  ;;  %v645_v25 = vld [vmem:[#allocation6 + $0x8c0] sm:$0xff]  ;;  %v1565_v55 = vmin.f32 %v4029_v36, 1.0 }
 0x230   :  { %v952_v43 = vsub.f32 %v336_v15, %v644_v16  ;;  %v4037_v50 = vand.u32 2147483647, %v951_v35  ;;  %v1872_v3 = vmul.f32 0.5, %v1564_v46 }
 0x231   :  { %v2780_v40 = vadd.f32 %v2779_v31, %v2472_v21  ;;  %v2173_v21 = vsub.f32 %v3997_v24, %v1865_v2  ;;  %v2480_v31 = vmul.f32 %v2172_v12, %v1556_v34  ;;  %v337_v24 = vld [vmem:[#allocation3 + $0x8c0] sm:$0xff]  ;;  %v646_v34 = vld [vmem:[#allocation6 + $0x8c8] sm:$0xff]  ;;  %v1566_v2 = vmin.f32 %v4033_v44, 1.0 }
 0x232   :  { %v953_v47 = vsub.f32 %v337_v24, %v645_v25  ;;  %v4041_v58 = vand.u32 2147483647, %v952_v43  ;;  %v1873_v12 = vmul.f32 0.5, %v1565_v55 }
 0x233   :  { %v2781_v51 = vadd.f32 %v2780_v40, %v2473_v30  ;;  %v2174_v30 = vsub.f32 %v4001_v33, %v1866_v11  ;;  %v2481_v40 = vmul.f32 %v2173_v21, %v1557_v45  ;;  %v338_v33 = vld [vmem:[#allocation3 + $0x8c8] sm:$0xff]  ;;  %v647_v45 = vld [vmem:[#allocation6 + $0x8d0] sm:$0xff]  ;;  %v1567_v11 = vmin.f32 %v4037_v50, 1.0 }
 0x234   :  { %v954_v57 = vsub.f32 %v338_v33, %v646_v34  ;;  %v4045_v63 = vand.u32 2147483647, %v953_v47  ;;  %v1874_v21 = vmul.f32 0.5, %v1566_v2 }
 0x235   :  { %v2782_v60 = vadd.f32 %v2781_v51, %v2474_v39  ;;  %v2175_v39 = vsub.f32 %v4005_v42, %v1867_v20  ;;  %v2482_v51 = vmul.f32 %v2174_v30, %v1558_v54  ;;  %v339_v42 = vld [vmem:[#allocation3 + $0x8d0] sm:$0xff]  ;;  %v648_v54 = vld [vmem:[#allocation6 + $0x8d8] sm:$0xff]  ;;  %v1568_v20 = vmin.f32 %v4041_v58, 1.0 }
 0x236   :  { %v955_v62 = vsub.f32 %v339_v42, %v647_v45  ;;  %v4049_v10 = vand.u32 2147483647, %v954_v57  ;;  %v1875_v30 = vmul.f32 0.5, %v1567_v11 }
 0x237   :  { %v2783_v5 = vadd.f32 %v2782_v60, %v2475_v49  ;;  %v2176_v49 = vsub.f32 %v4009_v53, %v1868_v29  ;;  %v2483_v60 = vmul.f32 %v2175_v39, %v1559_v1  ;;  %v340_v53 = vld [vmem:[#allocation3 + $0x8d8] sm:$0xff]  ;;  %v649_v1 = vld [vmem:[#allocation6 + $0x8e0] sm:$0xff]  ;;  %v1569_v29 = vmin.f32 %v4045_v63, 1.0 }
 0x238   :  { %v956_v7 = vsub.f32 %v340_v53, %v648_v54  ;;  %v4053_v16 = vand.u32 2147483647, %v955_v62  ;;  %v1876_v39 = vmul.f32 0.5, %v1568_v20 }
 0x239   :  { %v2784_v14 = vadd.f32 %v2783_v5, %v2476_v59  ;;  %v2177_v59 = vsub.f32 %v4013_v0, %v1869_v38  ;;  %v2484_v5 = vmul.f32 %v2176_v49, %v1560_v9  ;;  %v341_v0 = vld [vmem:[#allocation3 + $0x8e0] sm:$0xff]  ;;  %v650_v9 = vld [vmem:[#allocation6 + $0x8e8] sm:$0xff]  ;;  %v1570_v38 = vmin.f32 %v4049_v10, 1.0 }
 0x23a   :  { %v957_v15 = vsub.f32 %v341_v0, %v649_v1  ;;  %v4057_v25 = vand.u32 2147483647, %v956_v7  ;;  %v1877_v49 = vmul.f32 0.5, %v1569_v29 }
 0x23b   :  { %v2785_v23 = vadd.f32 %v2784_v14, %v2477_v4  ;;  %v2178_v4 = vsub.f32 %v4017_v8, %v1870_v48  ;;  %v2485_v14 = vmul.f32 %v2177_v59, %v1561_v19  ;;  %v342_v8 = vld [vmem:[#allocation3 + $0x8e8] sm:$0xff]  ;;  %v651_v19 = vld [vmem:[#allocation6 + $0x8f0] sm:$0xff]  ;;  %v1571_v48 = vmin.f32 %v4053_v16, 1.0 }
 0x23c   :  { %v958_v24 = vsub.f32 %v342_v8, %v650_v9  ;;  %v4061_v34 = vand.u32 2147483647, %v957_v15  ;;  %v1878_v59 = vmul.f32 0.5, %v1570_v38 }
 0x23d   :  { %v2786_v32 = vadd.f32 %v2785_v23, %v2478_v13  ;;  %v2179_v13 = vsub.f32 %v4021_v18, %v1871_v56  ;;  %v2486_v23 = vmul.f32 %v2178_v4, %v1562_v28  ;;  %v343_v18 = vld [vmem:[#allocation3 + $0x8f0] sm:$0xff]  ;;  %v652_v28 = vld [vmem:[#allocation6 + $0x8f8] sm:$0xff]  ;;  %v1572_v56 = vmin.f32 %v4057_v25, 1.0 }
 0x23e   :  { %v959_v33 = vsub.f32 %v343_v18, %v651_v19  ;;  %v4065_v45 = vand.u32 2147483647, %v958_v24  ;;  %v1879_v4 = vmul.f32 0.5, %v1571_v48 }
 0x23f   :  { %v2787_v41 = vadd.f32 %v2786_v32, %v2479_v22  ;;  %v2180_v22 = vsub.f32 %v4025_v27, %v1872_v3  ;;  %v2487_v32 = vmul.f32 %v2179_v13, %v1563_v37  ;;  %v344_v27 = vld [vmem:[#allocation3 + $0x8f8] sm:$0xff]  ;;  %v653_v37 = vld [vmem:[#allocation6 + $0x900] sm:$0xff]  ;;  %v1573_v3 = vmin.f32 %v4061_v34, 1.0 }
 0x240   :  { %v960_v42 = vsub.f32 %v344_v27, %v652_v28  ;;  %v4069_v54 = vand.u32 2147483647, %v959_v33  ;;  %v1880_v13 = vmul.f32 0.5, %v1572_v56 }
 0x241   :  { %v2788_v52 = vadd.f32 %v2787_v41, %v2480_v31  ;;  %v2181_v31 = vsub.f32 %v4029_v36, %v1873_v12  ;;  %v2488_v41 = vmul.f32 %v2180_v22, %v1564_v46  ;;  %v345_v36 = vld [vmem:[#allocation3 + $0x900] sm:$0xff]  ;;  %v654_v46 = vld [vmem:[#allocation6 + $0x908] sm:$0xff]  ;;  %v1574_v12 = vmin.f32 %v4065_v45, 1.0 }
 0x242   :  { %v961_v53 = vsub.f32 %v345_v36, %v653_v37  ;;  %v4073_v1 = vand.u32 2147483647, %v960_v42  ;;  %v1881_v22 = vmul.f32 0.5, %v1573_v3 }
 0x243   :  { %v2789_v61 = vadd.f32 %v2788_v52, %v2481_v40  ;;  %v2182_v40 = vsub.f32 %v4033_v44, %v1874_v21  ;;  %v2489_v52 = vmul.f32 %v2181_v31, %v1565_v55  ;;  %v346_v44 = vld [vmem:[#allocation3 + $0x908] sm:$0xff]  ;;  %v655_v55 = vld [vmem:[#allocation6 + $0x910] sm:$0xff]  ;;  %v1575_v21 = vmin.f32 %v4069_v54, 1.0 }
 0x244   :  { %v962_v0 = vsub.f32 %v346_v44, %v654_v46  ;;  %v4077_v9 = vand.u32 2147483647, %v961_v53  ;;  %v1882_v31 = vmul.f32 0.5, %v1574_v12 }
 0x245   :  { %v2790_v6 = vadd.f32 %v2789_v61, %v2482_v51  ;;  %v2183_v51 = vsub.f32 %v4037_v50, %v1875_v30  ;;  %v2490_v61 = vmul.f32 %v2182_v40, %v1566_v2  ;;  %v347_v50 = vld [vmem:[#allocation3 + $0x910] sm:$0xff]  ;;  %v656_v2 = vld [vmem:[#allocation6 + $0x918] sm:$0xff]  ;;  %v1576_v30 = vmin.f32 %v4073_v1, 1.0 }
 0x246   :  { %v963_v8 = vsub.f32 %v347_v50, %v655_v55  ;;  %v4081_v19 = vand.u32 2147483647, %v962_v0  ;;  %v1883_v40 = vmul.f32 0.5, %v1575_v21 }
 0x247   :  { %v2791_v17 = vadd.f32 %v2790_v6, %v2483_v60  ;;  %v2184_v60 = vsub.f32 %v4041_v58, %v1876_v39  ;;  %v2491_v6 = vmul.f32 %v2183_v51, %v1567_v11  ;;  %v348_v58 = vld [vmem:[#allocation3 + $0x918] sm:$0xff]  ;;  %v657_v11 = vld [vmem:[#allocation6 + $0x920] sm:$0xff]  ;;  %v1577_v39 = vmin.f32 %v4077_v9, 1.0 }
 0x248   :  { %v964_v18 = vsub.f32 %v348_v58, %v656_v2  ;;  %v4085_v28 = vand.u32 2147483647, %v963_v8  ;;  %v1884_v51 = vmul.f32 0.5, %v1576_v30 }
 0x249   :  { %v2792_v26 = vadd.f32 %v2791_v17, %v2484_v5  ;;  %v2185_v5 = vsub.f32 %v4045_v63, %v1877_v49  ;;  %v2492_v17 = vmul.f32 %v2184_v60, %v1568_v20  ;;  %v349_v63 = vld [vmem:[#allocation3 + $0x920] sm:$0xff]  ;;  %v658_v20 = vld [vmem:[#allocation6 + $0x928] sm:$0xff]  ;;  %v1578_v49 = vmin.f32 %v4081_v19, 1.0 }
 0x24a   :  { %v965_v27 = vsub.f32 %v349_v63, %v657_v11  ;;  %v4089_v37 = vand.u32 2147483647, %v964_v18  ;;  %v1885_v60 = vmul.f32 0.5, %v1577_v39 }
 0x24b   :  { %v2793_v35 = vadd.f32 %v2792_v26, %v2485_v14  ;;  %v2186_v14 = vsub.f32 %v4049_v10, %v1878_v59  ;;  %v2493_v26 = vmul.f32 %v2185_v5, %v1569_v29  ;;  %v350_v10 = vld [vmem:[#allocation3 + $0x928] sm:$0xff]  ;;  %v659_v29 = vld [vmem:[#allocation6 + $0x930] sm:$0xff]  ;;  %v1579_v59 = vmin.f32 %v4085_v28, 1.0 }
 0x24c   :  { %v966_v36 = vsub.f32 %v350_v10, %v658_v20  ;;  %v4093_v46 = vand.u32 2147483647, %v965_v27  ;;  %v1886_v5 = vmul.f32 0.5, %v1578_v49 }
 0x24d   :  { %v2794_v43 = vadd.f32 %v2793_v35, %v2486_v23  ;;  %v2187_v23 = vsub.f32 %v4053_v16, %v1879_v4  ;;  %v2494_v35 = vmul.f32 %v2186_v14, %v1570_v38  ;;  %v351_v16 = vld [vmem:[#allocation3 + $0x930] sm:$0xff]  ;;  %v660_v38 = vld [vmem:[#allocation6 + $0x938] sm:$0xff]  ;;  %v1580_v4 = vmin.f32 %v4089_v37, 1.0 }
 0x24e   :  { %v967_v44 = vsub.f32 %v351_v16, %v659_v29  ;;  %v4097_v55 = vand.u32 2147483647, %v966_v36  ;;  %v1887_v14 = vmul.f32 0.5, %v1579_v59 }
 0x24f   :  { %v2795_v47 = vadd.f32 %v2794_v43, %v2487_v32  ;;  %v2188_v32 = vsub.f32 %v4057_v25, %v1880_v13  ;;  %v2495_v43 = vmul.f32 %v2187_v23, %v1571_v48  ;;  %v352_v25 = vld [vmem:[#allocation3 + $0x938] sm:$0xff]  ;;  %v661_v48 = vld [vmem:[#allocation6 + $0x940] sm:$0xff]  ;;  %v1581_v13 = vmin.f32 %v4093_v46, 1.0 }
 0x250   :  { %v968_v50 = vsub.f32 %v352_v25, %v660_v38  ;;  %v4101_v2 = vand.u32 2147483647, %v967_v44  ;;  %v1888_v23 = vmul.f32 0.5, %v1580_v4 }
 0x251   :  { %v2796_v57 = vadd.f32 %v2795_v47, %v2488_v41  ;;  %v2189_v41 = vsub.f32 %v4061_v34, %v1881_v22  ;;  %v2496_v47 = vmul.f32 %v2188_v32, %v1572_v56  ;;  %v353_v34 = vld [vmem:[#allocation3 + $0x940] sm:$0xff]  ;;  %v662_v56 = vld [vmem:[#allocation6 + $0x948] sm:$0xff]  ;;  %v1582_v22 = vmin.f32 %v4097_v55, 1.0 }
 0x252   :  { %v969_v58 = vsub.f32 %v353_v34, %v661_v48  ;;  %v4105_v11 = vand.u32 2147483647, %v968_v50  ;;  %v1889_v32 = vmul.f32 0.5, %v1581_v13 }
 0x253   :  { %v2797_v62 = vadd.f32 %v2796_v57, %v2489_v52  ;;  %v2190_v52 = vsub.f32 %v4065_v45, %v1882_v31  ;;  %v2497_v57 = vmul.f32 %v2189_v41, %v1573_v3  ;;  %v354_v45 = vld [vmem:[#allocation3 + $0x948] sm:$0xff]  ;;  %v663_v3 = vld [vmem:[#allocation6 + $0x950] sm:$0xff]  ;;  %v1583_v31 = vmin.f32 %v4101_v2, 1.0 }
 0x254   :  { %v970_v63 = vsub.f32 %v354_v45, %v662_v56  ;;  %v4109_v20 = vand.u32 2147483647, %v969_v58  ;;  %v1890_v41 = vmul.f32 0.5, %v1582_v22 }
 0x255   :  { %v2798_v7 = vadd.f32 %v2797_v62, %v2490_v61  ;;  %v2191_v61 = vsub.f32 %v4069_v54, %v1883_v40  ;;  %v2498_v62 = vmul.f32 %v2190_v52, %v1574_v12  ;;  %v355_v54 = vld [vmem:[#allocation3 + $0x950] sm:$0xff]  ;;  %v664_v12 = vld [vmem:[#allocation6 + $0x958] sm:$0xff]  ;;  %v1584_v40 = vmin.f32 %v4105_v11, 1.0 }
 0x256   :  { %v971_v10 = vsub.f32 %v355_v54, %v663_v3  ;;  %v4113_v29 = vand.u32 2147483647, %v970_v63  ;;  %v1891_v52 = vmul.f32 0.5, %v1583_v31 }
 0x257   :  { %v2799_v15 = vadd.f32 %v2798_v7, %v2491_v6  ;;  %v2192_v6 = vsub.f32 %v4073_v1, %v1884_v51  ;;  %v2499_v7 = vmul.f32 %v2191_v61, %v1575_v21  ;;  %v356_v1 = vld [vmem:[#allocation3 + $0x958] sm:$0xff]  ;;  %v665_v21 = vld [vmem:[#allocation6 + $0x960] sm:$0xff]  ;;  %v1585_v51 = vmin.f32 %v4109_v20, 1.0 }
 0x258   :  { %v972_v16 = vsub.f32 %v356_v1, %v664_v12  ;;  %v4117_v38 = vand.u32 2147483647, %v971_v10  ;;  %v1892_v61 = vmul.f32 0.5, %v1584_v40 }
 0x259   :  { %v2800_v24 = vadd.f32 %v2799_v15, %v2492_v17  ;;  %v2193_v17 = vsub.f32 %v4077_v9, %v1885_v60  ;;  %v2500_v15 = vmul.f32 %v2192_v6, %v1576_v30  ;;  %v357_v9 = vld [vmem:[#allocation3 + $0x960] sm:$0xff]  ;;  %v666_v30 = vld [vmem:[#allocation6 + $0x968] sm:$0xff]  ;;  %v1586_v60 = vmin.f32 %v4113_v29, 1.0 }
 0x25a   :  { %v973_v25 = vsub.f32 %v357_v9, %v665_v21  ;;  %v4121_v48 = vand.u32 2147483647, %v972_v16  ;;  %v1893_v6 = vmul.f32 0.5, %v1585_v51 }
 0x25b   :  { %v2801_v33 = vadd.f32 %v2800_v24, %v2493_v26  ;;  %v2194_v26 = vsub.f32 %v4081_v19, %v1886_v5  ;;  %v2501_v24 = vmul.f32 %v2193_v17, %v1577_v39  ;;  %v358_v19 = vld [vmem:[#allocation3 + $0x968] sm:$0xff]  ;;  %v667_v39 = vld [vmem:[#allocation6 + $0x970] sm:$0xff]  ;;  %v1587_v5 = vmin.f32 %v4117_v38, 1.0 }
 0x25c   :  { %v974_v34 = vsub.f32 %v358_v19, %v666_v30  ;;  %v4125_v56 = vand.u32 2147483647, %v973_v25  ;;  %v362_v17 = vld [vmem:[#allocation3 + $0x988] sm:$0xff] }
 0x25d   :  { %v2802_v42 = vadd.f32 %v2801_v33, %v2494_v35  ;;  %v2195_v35 = vsub.f32 %v4085_v28, %v1887_v14  ;;  %v2502_v33 = vmul.f32 %v2194_v26, %v1578_v49  ;;  %v359_v28 = vld [vmem:[#allocation3 + $0x970] sm:$0xff]  ;;  %v668_v49 = vld [vmem:[#allocation6 + $0x978] sm:$0xff]  ;;  %v1588_v14 = vmin.f32 %v4121_v48, 1.0 }
 0x25e   :  { %v975_v45 = vsub.f32 %v359_v28, %v667_v39  ;;  %v1282_v3 = vand.u32 2147483647, %v974_v34  ;;  %v363_v26 = vld [vmem:[#allocation3 + $0x990] sm:$0xff] }
 0x25f   :  { %v2803_v53 = vadd.f32 %v2802_v42, %v2495_v43  ;;  %v2196_v43 = vsub.f32 %v4089_v37, %v1888_v23  ;;  %v2503_v42 = vmul.f32 %v2195_v35, %v1579_v59  ;;  %v360_v37 = vld [vmem:[#allocation3 + $0x978] sm:$0xff]  ;;  %v669_v59 = vld [vmem:[#allocation6 + $0x980] sm:$0xff]  ;;  %v1589_v23 = vmin.f32 %v4125_v56, 1.0 }
 0x260   :  { %v976_v54 = vsub.f32 %v360_v37, %v668_v49  ;;  %v1283_v12 = vand.u32 2147483647, %v975_v45  ;;  %v364_v35 = vld [vmem:[#allocation3 + $0x998] sm:$0xff] }
 0x261   :  { %v2804_v0 = vadd.f32 %v2803_v53, %v2496_v47  ;;  %v2197_v47 = vsub.f32 %v4093_v46, %v1889_v32  ;;  %v2504_v53 = vmul.f32 %v2196_v43, %v1580_v4  ;;  %v361_v46 = vld [vmem:[#allocation3 + $0x980] sm:$0xff]  ;;  %v1894_v4 = vmul.f32 0.5, %v1586_v60 }
 0x262   :  { %v977_v1 = vsub.f32 %v361_v46, %v669_v59  ;;  %v1284_v21 = vand.u32 2147483647, %v976_v54  ;;  %v1590_v32 = vmin.f32 %v1282_v3, 1.0  ;;  %v1897_v43 = vmul.f32 0.5, %v1589_v23 }
 0x263   :  { %v2805_v8 = vadd.f32 %v2804_v0, %v2497_v57  ;;  %v2198_v57 = vsub.f32 %v4097_v55, %v1890_v41  ;;  %v2505_v0 = vmul.f32 %v2197_v47, %v1581_v13  ;;  %v670_v55 = vld [vmem:[#allocation6 + $0x988] sm:$0xff]  ;;  %v2201_v13 = vsub.f32 %v4109_v20, %v1893_v6 }
 0x264   :  { %v978_v9 = vsub.f32 %v362_v17, %v670_v55  ;;  %v1285_v30 = vand.u32 2147483647, %v977_v1  ;;  %v1591_v41 = vmin.f32 %v1283_v12, 1.0  ;;  %v1592_v28 = vmin.f32 %v1284_v21, 1.0 }
 0x265   :  { %v2806_v18 = vadd.f32 %v2805_v8, %v2498_v62  ;;  %v2199_v62 = vsub.f32 %v4101_v2, %v1891_v52  ;;  %v2506_v8 = vmul.f32 %v2198_v57, %v1582_v22  ;;  %v1895_v2 = vmul.f32 0.5, %v1587_v5 }
 0x266   :  { %v1286_v25 = vand.u32 2147483647, %v978_v9  ;;  %v1898_v39 = vmul.f32 0.5, %v1590_v32  ;;  %v2205_v34 = vsub.f32 %v4125_v56, %v1897_v43 }
 0x267   :  { %v2807_v27 = vadd.f32 %v2806_v18, %v2499_v7  ;;  %v2200_v7 = vsub.f32 %v4105_v11, %v1892_v61  ;;  %v2507_v18 = vmul.f32 %v2199_v62, %v1583_v31  ;;  %v2202_v11 = vsub.f32 %v4113_v29, %v1894_v4 }
 0x268   :  { %v1593_v29 = vmin.f32 %v1285_v30, 1.0  ;;  %v1594_v57 = vmin.f32 %v1286_v25, 1.0  ;;  %v2513_v6 = vmul.f32 %v2205_v34, %v1589_v23 }
 0x269   :  { %v2808_v36 = vadd.f32 %v2807_v27, %v2500_v15  ;;  %v671_v15 = vld [vmem:[#allocation6 + $0x990] sm:$0xff]  ;;  %v1896_v27 = vmul.f32 0.5, %v1588_v14  ;;  %v2508_v22 = vmul.f32 %v2200_v7, %v1584_v40  ;;  %v2510_v47 = vmul.f32 %v2202_v11, %v1586_v60 }
 0x26a   :  { %v979_v19 = vsub.f32 %v363_v26, %v671_v15  ;;  %v1899_v40 = vmul.f32 0.5, %v1591_v41  ;;  %v1901_v46 = vmul.f32 0.5, %v1593_v29  ;;  %v1902_v62 = vmul.f32 0.5, %v1594_v57 }
 0x26b   :  { %v2809_v44 = vadd.f32 %v2808_v36, %v2501_v24  ;;  %v672_v24 = vld [vmem:[#allocation6 + $0x998] sm:$0xff]  ;;  %v2509_v36 = vmul.f32 %v2201_v13, %v1585_v51  ;;  %v2204_v52 = vsub.f32 %v4121_v48, %v1896_v27  ;;  %v2206_v51 = vsub.f32 %v1282_v3, %v1898_v39 }
 0x26c   :  { %v980_v31 = vsub.f32 %v364_v35, %v672_v24  ;;  %v2207_v59 = vsub.f32 %v1283_v12, %v1899_v40  ;;  %v2209_v56 = vsub.f32 %v1285_v30, %v1901_v46  ;;  %v2210_v7 = vsub.f32 %v1286_v25, %v1902_v62 }
 0x26d   :  { %v2810_v50 = vadd.f32 %v2809_v44, %v2502_v33  ;;  %v2203_v33 = vsub.f32 %v4117_v38, %v1895_v2  ;;  %v1287_v44 = vand.u32 2147483647, %v979_v19  ;;  %v1900_v38 = vmul.f32 0.5, %v1592_v28 }
 0x26e   :  { %v1288_v61 = vand.u32 2147483647, %v980_v31  ;;  %v2518_v12 = vmul.f32 %v2210_v7, %v1594_v57 }
 0x26f   :  { %v2811_v58 = vadd.f32 %v2810_v50, %v2503_v42  ;;  %v2511_v37 = vmul.f32 %v2203_v33, %v1587_v5  ;;  %v1595_v45 = vmin.f32 %v1287_v44, 1.0  ;;  %v2515_v5 = vmul.f32 %v2207_v59, %v1591_v41 }
 0x270   :  { %v1596_v60 = vmin.f32 %v1288_v61, 1.0 }
 0x271   :  { %v2812_v63 = vadd.f32 %v2811_v58, %v2504_v53  ;;  %v2512_v53 = vmul.f32 %v2204_v52, %v1588_v14  ;;  %v2514_v58 = vmul.f32 %v2206_v51, %v1590_v32  ;;  %v1903_v17 = vmul.f32 0.5, %v1595_v45 }
 0x272   :  { %v1904_v4 = vmul.f32 0.5, %v1596_v60 }
 0x273   :  { %v2813_v10 = vadd.f32 %v2812_v63, %v2505_v0  ;;  %v2208_v0 = vsub.f32 %v1284_v21, %v1900_v38  ;;  %v2211_v14 = vsub.f32 %v1287_v44, %v1903_v17  ;;  %v2517_v63 = vmul.f32 %v2209_v56, %v1593_v29 }
 0x274   :  { %v2212_v26 = vsub.f32 %v1288_v61, %v1904_v4 }
 0x275   :  { %v2814_v16 = vadd.f32 %v2813_v10, %v2506_v8  ;;  %v2516_v8 = vmul.f32 %v2208_v0, %v1592_v28  ;;  %v2519_v15 = vmul.f32 %v2211_v14, %v1595_v45 }
 0x276   :  { %v2520_v13 = vmul.f32 %v2212_v26, %v1596_v60 }
 0x277   :  { %v2815_v20 = vadd.f32 %v2814_v16, %v2507_v18 }
 0x279   :  { %v2816_v42 = vadd.f32 %v2815_v20, %v2508_v22 }
 0x27b   :  { %v2817_v49 = vadd.f32 %v2816_v42, %v2509_v36 }
 0x27d   :  { %v2818_v50 = vadd.f32 %v2817_v49, %v2510_v47 }
 0x27f   :  { %v2819_v48 = vadd.f32 %v2818_v50, %v2511_v37 }
 0x281   :  { %v2820_v54 = vadd.f32 %v2819_v48, %v2512_v53 }
 0x283   :  { %v2821_v55 = vadd.f32 %v2820_v54, %v2513_v6 }
 0x285   :  { %v2822_v3 = vadd.f32 %v2821_v55, %v2514_v58 }
 0x287   :  { %v2823_v1 = vadd.f32 %v2822_v3, %v2515_v5 }
 0x289   :  { %v2824_v23 = vadd.f32 %v2823_v1, %v2516_v8 }
 0x28b   :  { %v2825_v2 = vadd.f32 %v2824_v23, %v2517_v63 }
 0x28d   :  { %v2826_v18 = vadd.f32 %v2825_v2, %v2518_v12 }
 0x28f   :  { %v2827_v10 = vadd.f32 %v2826_v18, %v2519_v15 }
 0x291   :  { %v2828_v9 = vadd.f32 %v2827_v10, %v2520_v13 }
 0x293   :  { %2835 = vst [vmem:[#allocation8] sm:$0xff] %v2828_v9 }
 0x294   :  { %2908 = shalt.err (!%p2905_p0)
}
 0x295   :  { %2845 = dma.vmem_to_hbm [thread:$0]  %s2843_s1, 128, %s4142_s2, [#allocation5]  }
 0x296   :  { %2921 = dma.done.wait [#allocation5], 128  }
 0x297   :  { %2922 = vsyncadd [#allocation5], 4294967168 }
 0x298   :  { %2849 = vsyncpa [#allocation4], 1 }
 0x299   :  { %2850 = vsyncpa [#allocation7], 1 }
 0x29a   :  { %2851 = vsyncpa [#allocation5], 1 }

</bundles_post_ra>
